<compile_context>
chip_gen: v5e
topology: v5e:2x2
jax: 0.10.0
libtpu: 0.0.40
codegen_flags: <defaults>
</compile_context>

<pallas_src>
import functools

import jax
import jax.numpy as jnp
from jax import lax
from jax.experimental import pallas as pl
from jax.experimental.pallas import tpu as pltpu

_EPS = 1e-5


def _vmem_limit_bytes():
    """Generation-aware scoped-VMEM limit (v5e/v6e: 128 MiB phys, v7x: 64 MiB)."""
    try:
        kind = jax.devices()[0].device_kind.lower()
    except Exception:  # pragma: no cover - defensive
        kind = ""
    if "v5" in kind or "v6" in kind:
        return 96 * 1024 * 1024
    return 48 * 1024 * 1024            # v7x / unknown: stay well under 64 MiB


# ----------------------------- Pallas kernel --------------------------------

def _bilstm_block_kernel(dims, has_h1, has_h2, conv_sc, *refs):
    """One batch image per grid step.  All activations are (channels, L) with
    the flat (padded) spatial axis on lanes.  Gate rows are ordered
    (direction, gate, plane) with gate order (i, f, g, o)."""
    Cin, P, H, W = dims
    C2 = 2 * P
    Wp = W + 2
    Lp = (H + 2) * Wp                  # padded-image flat length
    s0 = Wp + 1                        # extra flat halo so every tap is a valid slice
    offs = [(kh - 1) * Wp + (kw - 1) for kh in range(3) for kw in range(3)]

    it = iter(refs)
    x_ref = next(it)                   # (1, Cin, Lpad) bf16
    mask_ref = next(it)                # (1, Lp) f32: 1 inside valid HxW, 0 on halo ring
    wih1_ref = next(it)                # (9, 8P, Cin) bf16
    wih2_ref = next(it)                # (9, 8P, C2)  bf16
    s1_ref, b1_ref = next(it), next(it)        # (C2, 1) f32 folded BN1
    s2_ref, b2_ref = next(it), next(it)        # (C2, 1) f32 folded BN2
    wsc_ref = next(it) if conv_sc else None    # (C2, Cin) bf16
    ssc_ref = next(it) if conv_sc else None
    bsc_ref = next(it) if conv_sc else None
    h01_ref = next(it) if has_h1 else None     # (1, C2, Lpad) bf16
    c01_ref = next(it) if has_h1 else None     # (1, C2, Lp)  f32
    whh1_ref = next(it) if has_h1 else None    # (18, 4P, P) bf16  (dir-major taps)
    h02_ref = next(it) if has_h2 else None
    c02_ref = next(it) if has_h2 else None
    whh2_ref = next(it) if has_h2 else None
    out_ref = next(it)                 # (1, C2, Lp) bf16
    h1_ref, c1_ref = next(it), next(it)        # (1, C2, Lp) f32
    h2_ref, c2_ref = next(it), next(it)        # (1, C2, Lp) f32

    def conv3x3(src, get_w):
        """3x3 'same' conv as 9 shifted-slice MXU matmuls, f32 accumulation.

        src: (C, Lpad) bf16 value, zero-padded spatially and on the flat halo.
        get_w(k): (G, C) bf16 weight for tap k.  Returns (G, Lp) f32.
        """
        acc = None
        for k, off in enumerate(offs):
            xs = src[:, s0 + off:s0 + off + Lp]
            a = jnp.dot(get_w(k), xs, preferred_element_type=jnp.float32)
            acc = a if acc is None else acc + a
        return acc

    def lstm_cell(gates, h0, c0, whh_ref_):
        """Bidirectional cell step.  gates: (8P, Lp) f32, rows (dir, gate, p)."""
        hs, cs = [], []
        for d in range(2):
            gd = gates[d * 4 * P:(d + 1) * 4 * P]
            if whh_ref_ is not None:
                # per-direction recurrent conv (half the MACs of a block-diag whh)
                gd = gd + conv3x3(h0[d * P:(d + 1) * P],
                                  lambda k, base=d * 9: whh_ref_[base + k])
            i = jax.nn.sigmoid(gd[0 * P:1 * P])
            f = jax.nn.sigmoid(gd[1 * P:2 * P])
            g = jnp.tanh(gd[2 * P:3 * P])
            o = jax.nn.sigmoid(gd[3 * P:4 * P])
            if c0 is not None:
                c = f * c0[d * P:(d + 1) * P] + i * g
            else:                       # zero initial state: f*c0 == 0
                c = i * g
            hs.append(o * jnp.tanh(c))
            cs.append(c)
        return jnp.concatenate(hs, axis=0), jnp.concatenate(cs, axis=0)  # (C2, Lp)

    x = x_ref[0]                        # (Cin, Lpad) bf16
    mask = mask_ref[...]                # (1, Lp) f32

    # ---- layer 1: bidirectional ConvLSTM cell + BN1 + ReLU -------------------
    gates1 = conv3x3(x, lambda k: wih1_ref[k])
    h0_1 = h01_ref[0] if has_h1 else None
    c0_1 = c01_ref[0] if has_h1 else None
    h1v, c1v = lstm_cell(gates1, h0_1, c0_1, whh1_ref)
    h1_ref[0] = h1v
    c1_ref[0] = c1v
    y1 = jnp.maximum(h1v * s1_ref[...] + b1_ref[...], 0.0) * mask   # zero halo ring
    # re-embed on the flat padded grid (zeros in the halo) for layer 2's conv
    zpad = jnp.zeros((C2, s0), dtype=jnp.bfloat16)
    out1 = jnp.concatenate([zpad, y1.astype(jnp.bfloat16), zpad], axis=1)  # (C2, Lpad)

    # ---- layer 2: bidirectional ConvLSTM cell + BN2 + shortcut + ReLU --------
    gates2 = conv3x3(out1, lambda k: wih2_ref[k])
    h0_2 = h02_ref[0] if has_h2 else None
    c0_2 = c02_ref[0] if has_h2 else None
    h2v, c2v = lstm_cell(gates2, h0_2, c0_2, whh2_ref)
    h2_ref[0] = h2v
    c2_ref[0] = c2v
    y2 = h2v * s2_ref[...] + b2_ref[...]

    x_c = x[:, s0:s0 + Lp]              # original x on the padded grid (zero ring)
    if conv_sc:
        sc = jnp.dot(wsc_ref[...], x_c, preferred_element_type=jnp.float32)
        sc = sc * ssc_ref[...] + bsc_ref[...]          # folded shortcut BN
    else:
        sc = x_c.astype(jnp.float32)    # identity shortcut (Cin == 2*planes)
    out_ref[0] = jnp.maximum(y2 + sc, 0.0).astype(out_ref.dtype)


# ----------------------------- pallas_call wrapper ---------------------------

def _run_block(xf, mask, wih1, wih2, s1, b1, s2, b2,
               wsc=None, ssc=None, bsc=None,
               h01=None, c01=None, whh1=None,
               h02=None, c02=None, whh2=None,
               *, planes, Cin, H, W):
    B = xf.shape[0]
    P = planes
    C2 = 2 * P
    Lp = (H + 2) * (W + 2)
    conv_sc = wsc is not None
    has_h1 = h01 is not None
    has_h2 = h02 is not None

    def batch_spec(a):
        return pl.BlockSpec((1,) + a.shape[1:], lambda b: (b,) + (0,) * (a.ndim - 1))

    def full_spec(a):
        return pl.BlockSpec(a.shape, lambda b: (0,) * a.ndim)

    inputs = [xf, mask, wih1, wih2, s1, b1, s2, b2]
    in_specs = [batch_spec(xf), full_spec(mask), full_spec(wih1), full_spec(wih2),
                full_spec(s1), full_spec(b1), full_spec(s2), full_spec(b2)]
    if conv_sc:
        inputs += [wsc, ssc, bsc]
        in_specs += [full_spec(wsc), full_spec(ssc), full_spec(bsc)]
    if has_h1:
        inputs += [h01, c01, whh1]
        in_specs += [batch_spec(h01), batch_spec(c01), full_spec(whh1)]
    if has_h2:
        inputs += [h02, c02, whh2]
        in_specs += [batch_spec(h02), batch_spec(c02), full_spec(whh2)]

    out_shape = (
        jax.ShapeDtypeStruct((B, C2, Lp), jnp.bfloat16),   # fused block output
        jax.ShapeDtypeStruct((B, C2, Lp), jnp.float32),    # h1
        jax.ShapeDtypeStruct((B, C2, Lp), jnp.float32),    # c1
        jax.ShapeDtypeStruct((B, C2, Lp), jnp.float32),    # h2
        jax.ShapeDtypeStruct((B, C2, Lp), jnp.float32),    # c2
    )
    out_specs = tuple(pl.BlockSpec((1, C2, Lp), lambda b: (b, 0, 0))
                      for _ in range(5))

    kernel = functools.partial(_bilstm_block_kernel, (Cin, P, H, W),
                               has_h1, has_h2, conv_sc)
    return pl.pallas_call(
        kernel,
        out_shape=out_shape,
        grid=(B,),
        in_specs=in_specs,
        out_specs=out_specs,
        compiler_params=pltpu.CompilerParams(
            dimension_semantics=("parallel",),
            vmem_limit_bytes=_vmem_limit_bytes()),
    )(*inputs)


# ------------------------------- JAX glue ------------------------------------

def _pad_flat(a_nchw, H, W, extra):
    """(B, C, H, W) -> zero-pad spatially by 1 -> flatten -> pad flat axis by `extra`."""
    a = jnp.pad(a_nchw, ((0, 0), (0, 0), (1, 1), (1, 1)))
    a = a.reshape(a.shape[0], a.shape[1], (H + 2) * (W + 2))
    if extra:
        a = jnp.pad(a, ((0, 0), (0, 0), (extra, extra)))
    return a


def _flatten_wih(w):
    """(2, 4P, Cin, 3, 3) -> (9, 8P, Cin) bf16; rows ordered (dir, gate, p)."""
    D, G4, Cin = w.shape[0], w.shape[1], w.shape[2]
    P = G4 // 4
    w = w.reshape(D, 4, P, Cin, 3, 3)
    w = jnp.transpose(w, (4, 5, 0, 1, 2, 3))      # (kh, kw, dir, gate, p, cin)
    return w.reshape(9, D * 4 * P, Cin).astype(jnp.bfloat16)


def _flatten_whh(w):
    """(2, 4P, P, 3, 3) -> (2*9, 4P, P) bf16; per-direction taps (no block-diag zeros)."""
    D, G4, Pin = w.shape[0], w.shape[1], w.shape[2]
    P = G4 // 4
    w = w.reshape(D, 4, P, Pin, 3, 3)
    w = jnp.transpose(w, (0, 4, 5, 1, 2, 3))      # (dir, kh, kw, gate, p, pin)
    return w.reshape(D * 9, 4 * P, Pin).astype(jnp.bfloat16)


def _fold_bn(gamma, beta, mean, var):
    scale = gamma * lax.rsqrt(var + _EPS)
    shift = beta - mean * scale
    return scale.reshape(-1, 1).astype(jnp.float32), shift.reshape(-1, 1).astype(jnp.float32)


def _prep_hidden(hidden, H, W, extra):
    """hidden: None or (h0, c0), each (2, B, P, H, W) NCHW.
    Returns (h0_flat bf16 (B, 2P, Lpad), c0_flat f32 (B, 2P, Lp)) in [fwd|bwd] order."""
    if hidden is None:
        return None, None
    h0, c0 = hidden
    h0 = jnp.concatenate([h0[0], h0[1]], axis=1)   # (B, 2P, H, W)
    c0 = jnp.concatenate([c0[0], c0[1]], axis=1)
    h0f = _pad_flat(h0.astype(jnp.float32), H, W, extra).astype(jnp.bfloat16)
    c0f = _pad_flat(c0.astype(jnp.float32), H, W, 0)
    return h0f, c0f


def _unflatten_center(a, B, C, H, W, dtype=None):
    a = a.reshape(B, C, H + 2, W + 2)[:, :, 1:H + 1, 1:W + 1]
    return a if dtype is None else a.astype(dtype)


def _to_state(h_flat, c_flat, B, P, H, W):
    """(B, 2P, Lp) [fwd|bwd] -> (2, B, P, H, W) NCHW stacked over directions."""
    def cvt(z):
        z = _unflatten_center(z, B, 2 * P, H, W)
        return jnp.stack([z[:, :P], z[:, P:]], axis=0)
    return cvt(h_flat), cvt(c_flat)


def bilstm_block_forward(x_nchw, params, planes, h1=None, h2=None):
    B, Cin, H, W = x_nchw.shape
    P = planes
    C2 = 2 * P
    Wp = W + 2
    Lp = (H + 2) * Wp
    s0 = Wp + 1

    xf = _pad_flat(x_nchw.astype(jnp.float32), H, W, s0).astype(jnp.bfloat16)
    mask = jnp.zeros((H + 2, W + 2), jnp.float32).at[1:H + 1, 1:W + 1].set(1.0)
    mask = mask.reshape(1, Lp)

    s1, b1 = _fold_bn(*params["bn1"])
    s2, b2 = _fold_bn(*params["bn2"])
    wih1 = _flatten_wih(params["w_ih1"])
    wih2 = _flatten_wih(params["w_ih2"])

    h01, c01 = _prep_hidden(h1, H, W, s0)
    h02, c02 = _prep_hidden(h2, H, W, s0)
    whh1 = _flatten_whh(params["w_hh1"]) if h1 is not None else None
    whh2 = _flatten_whh(params["w_hh2"]) if h2 is not None else None

    if Cin != C2:                       # conv1x1 + BN shortcut
        wsc = params["w_sc"].astype(jnp.bfloat16)         # (C2, Cin)
        ssc, bsc = _fold_bn(*params["bn_sc"])
    else:                               # empty nn.Sequential() == identity
        wsc = ssc = bsc = None

    out_f, h1f, c1f, h2f, c2f = _run_block(
        xf, mask, wih1, wih2, s1, b1, s2, b2,
        wsc=wsc, ssc=ssc, bsc=bsc,
        h01=h01, c01=c01, whh1=whh1,
        h02=h02, c02=c02, whh2=whh2,
        planes=planes, Cin=Cin, H=H, W=W)

    out = _unflatten_center(out_f, B, C2, H, W, jnp.float32)      # NCHW
    h1_out = _to_state(h1f, c1f, B, P, H, W)
    h2_out = _to_state(h2f, c2f, B, P, H, W)
    return out, h1_out, h2_out


# --------------------------- deterministic params ----------------------------

def init_params(key, inplanes, planes):
    C2 = 2 * planes
    ks = jax.random.split(key, 11)

    def w(k, shape, scale=0.1):
        return (scale * jax.random.normal(k, shape)).astype(jnp.float32)

    def bn(kg, kb, C):
        gamma = (1.0 + 0.1 * jax.random.normal(kg, (C,))).astype(jnp.float32)
        beta = (0.1 * jax.random.normal(kb, (C,))).astype(jnp.float32)
        mean = jnp.zeros((C,), jnp.float32)   # running stats (inference-mode BN)
        var = jnp.ones((C,), jnp.float32)
        return (gamma, beta, mean, var)

    params = {
        # per-direction weights, gate order (i, f, g, o):
        #   w_ih: (2, 4*planes, in_ch, 3, 3), w_hh: (2, 4*planes, planes, 3, 3)
        "w_ih1": w(ks[0], (2, 4 * planes, inplanes, 3, 3)),
        "w_hh1": w(ks[1], (2, 4 * planes, planes, 3, 3)),
        "w_ih2": w(ks[2], (2, 4 * planes, C2, 3, 3)),
        "w_hh2": w(ks[3], (2, 4 * planes, planes, 3, 3)),
        "bn1": bn(ks[4], ks[5], C2),
        "bn2": bn(ks[6], ks[7], C2),
    }
    if inplanes != C2:
        w1x1 = w(ks[8], (C2, inplanes, 1, 1))             # PyTorch conv1x1 weight
        params["w_sc"] = w1x1[:, :, 0, 0]                 # (C2, Cin)
        params["bn_sc"] = bn(ks[9], ks[10], C2)
    return params


if __name__ == "__main__":
    key = jax.random.PRNGKey(0)
    kx, kp = jax.random.split(key)
    B, Cin, H, W = 2, 4, 16, 16
    planes = 4  # bidirectional -> 2*planes = 8 output channels; conv1x1+bn shortcut

    x = jax.random.normal(kx, (B, Cin, H, W), dtype=jnp.float32)
    params = init_params(kp, Cin, planes)

    fwd = jax.jit(bilstm_block_forward, static_argnames=("planes",))

    # zero-initial-state call
    out, h1, h2 = fwd(x, params, planes=planes)
    jax.block_until_ready(out)
    jax.block_until_ready(h1)
    jax.block_until_ready(h2)
    assert out.shape == (B, 2 * planes, H, W)
    assert h1[0].shape == (2, B, planes, H, W) and h1[1].shape == (2, B, planes, H, W)
    assert h2[0].shape == (2, B, planes, H, W) and h2[1].shape == (2, B, planes, H, W)

    # stateful call (exercises the recurrent per-direction whh path)
    out_b, h1_b, h2_b = fwd(x, params, planes=planes, h1=h1, h2=h2)
    jax.block_until_ready(out_b)
    jax.block_until_ready(h1_b)
    jax.block_until_ready(h2_b)
    assert out_b.shape == (B, 2 * planes, H, W)
    assert h1_b[0].shape == (2, B, planes, H, W)
    assert h2_b[1].shape == (2, B, planes, H, W)

    print("KERNEL_OK")
</pallas_src>

<mosaic_0001>
module attributes {stable_mosaic.version = 11 : i64} {
  func.func @_bilstm_block_kernel(%arg0: i32, %arg1: memref<1x4x362xbf16, #tpu.memory_space<vmem>>, %arg2: memref<1x324xf32, #tpu.memory_space<vmem>>, %arg3: memref<9x32x4xbf16, #tpu.memory_space<vmem>>, %arg4: memref<9x32x8xbf16, #tpu.memory_space<vmem>>, %arg5: memref<8x1xf32, #tpu.memory_space<vmem>>, %arg6: memref<8x1xf32, #tpu.memory_space<vmem>>, %arg7: memref<8x1xf32, #tpu.memory_space<vmem>>, %arg8: memref<8x1xf32, #tpu.memory_space<vmem>>, %arg9: memref<8x4xbf16, #tpu.memory_space<vmem>>, %arg10: memref<8x1xf32, #tpu.memory_space<vmem>>, %arg11: memref<8x1xf32, #tpu.memory_space<vmem>>, %arg12: memref<1x8x324xbf16, #tpu.memory_space<vmem>>, %arg13: memref<1x8x324xf32, #tpu.memory_space<vmem>>, %arg14: memref<1x8x324xf32, #tpu.memory_space<vmem>>, %arg15: memref<1x8x324xf32, #tpu.memory_space<vmem>>, %arg16: memref<1x8x324xf32, #tpu.memory_space<vmem>>) attributes {dimension_semantics = [#tpu.dimension_semantics<parallel>], iteration_bounds = array<i64: 2>, scalar_prefetch = 0 : i64, scratch_operands = 0 : i64, tpu.core_type = #tpu.core_type<tc>, window_params = [{transform_indices = @transform_0, window_bounds = array<i64: 1, 4, 362>}, {pipeline_mode = #tpu.pipeline_mode<synchronous>, transform_indices = @transform_1, window_bounds = array<i64: 1, 324>}, {pipeline_mode = #tpu.pipeline_mode<synchronous>, transform_indices = @transform_2, window_bounds = array<i64: 9, 32, 4>}, {pipeline_mode = #tpu.pipeline_mode<synchronous>, transform_indices = @transform_3, window_bounds = array<i64: 9, 32, 8>}, {pipeline_mode = #tpu.pipeline_mode<synchronous>, transform_indices = @transform_4, window_bounds = array<i64: 8, 1>}, {pipeline_mode = #tpu.pipeline_mode<synchronous>, transform_indices = @transform_5, window_bounds = array<i64: 8, 1>}, {pipeline_mode = #tpu.pipeline_mode<synchronous>, transform_indices = @transform_6, window_bounds = array<i64: 8, 1>}, {pipeline_mode = #tpu.pipeline_mode<synchronous>, transform_indices = @transform_7, window_bounds = array<i64: 8, 1>}, {pipeline_mode = #tpu.pipeline_mode<synchronous>, transform_indices = @transform_8, window_bounds = array<i64: 8, 4>}, {pipeline_mode = #tpu.pipeline_mode<synchronous>, transform_indices = @transform_9, window_bounds = array<i64: 8, 1>}, {pipeline_mode = #tpu.pipeline_mode<synchronous>, transform_indices = @transform_10, window_bounds = array<i64: 8, 1>}, {transform_indices = @transform_11, window_bounds = array<i64: 1, 8, 324>}, {transform_indices = @transform_12, window_bounds = array<i64: 1, 8, 324>}, {transform_indices = @transform_13, window_bounds = array<i64: 1, 8, 324>}, {transform_indices = @transform_14, window_bounds = array<i64: 1, 8, 324>}, {transform_indices = @transform_15, window_bounds = array<i64: 1, 8, 324>}]} {
    %c0 = arith.constant 0 : index
    %c0_0 = arith.constant 0 : index
    %c0_1 = arith.constant 0 : index
    %0 = vector.load %arg1[%c0, %c0_0, %c0_1] : memref<1x4x362xbf16, #tpu.memory_space<vmem>>, vector<1x4x362xbf16>
    %1 = vector.shape_cast %0 : vector<1x4x362xbf16> to vector<4x362xbf16>
    %c0_2 = arith.constant 0 : index
    %c0_3 = arith.constant 0 : index
    %2 = vector.load %arg2[%c0_2, %c0_3] : memref<1x324xf32, #tpu.memory_space<vmem>>, vector<1x324xf32>
    %3 = vector.extract_strided_slice %1 {offsets = [0, 0], sizes = [4, 324], strides = [1, 1]} : vector<4x362xbf16> to vector<4x324xbf16>
    %c0_4 = arith.constant 0 : index
    %c0_5 = arith.constant 0 : index
    %c0_6 = arith.constant 0 : index
    %4 = vector.load %arg3[%c0_4, %c0_5, %c0_6] : memref<9x32x4xbf16, #tpu.memory_space<vmem>>, vector<1x32x4xbf16>
    %5 = vector.shape_cast %4 : vector<1x32x4xbf16> to vector<32x4xbf16>
    %cst = arith.constant dense<0.000000e+00> : vector<32x324xf32>
    %6 = tpu.matmul %5, %3, %cst {dimension_numbers = #tpu.dot_dimension_numbers<[1], [0], [0], [1], [0, 0, 1, 1], [], []>} : vector<32x4xbf16>, vector<4x324xbf16>, vector<32x324xf32> -> vector<32x324xf32>
    %7 = vector.extract_strided_slice %1 {offsets = [0, 1], sizes = [4, 324], strides = [1, 1]} : vector<4x362xbf16> to vector<4x324xbf16>
    %c1 = arith.constant 1 : index
    %c0_7 = arith.constant 0 : index
    %c0_8 = arith.constant 0 : index
    %8 = vector.load %arg3[%c1, %c0_7, %c0_8] : memref<9x32x4xbf16, #tpu.memory_space<vmem>>, vector<1x32x4xbf16>
    %9 = vector.shape_cast %8 : vector<1x32x4xbf16> to vector<32x4xbf16>
    %cst_9 = arith.constant dense<0.000000e+00> : vector<32x324xf32>
    %10 = tpu.matmul %9, %7, %cst_9 {dimension_numbers = #tpu.dot_dimension_numbers<[1], [0], [0], [1], [0, 0, 1, 1], [], []>} : vector<32x4xbf16>, vector<4x324xbf16>, vector<32x324xf32> -> vector<32x324xf32>
    %11 = arith.addf %6, %10 : vector<32x324xf32>
    %12 = vector.extract_strided_slice %1 {offsets = [0, 2], sizes = [4, 324], strides = [1, 1]} : vector<4x362xbf16> to vector<4x324xbf16>
    %c2 = arith.constant 2 : index
    %c0_10 = arith.constant 0 : index
    %c0_11 = arith.constant 0 : index
    %13 = vector.load %arg3[%c2, %c0_10, %c0_11] : memref<9x32x4xbf16, #tpu.memory_space<vmem>>, vector<1x32x4xbf16>
    %14 = vector.shape_cast %13 : vector<1x32x4xbf16> to vector<32x4xbf16>
    %cst_12 = arith.constant dense<0.000000e+00> : vector<32x324xf32>
    %15 = tpu.matmul %14, %12, %cst_12 {dimension_numbers = #tpu.dot_dimension_numbers<[1], [0], [0], [1], [0, 0, 1, 1], [], []>} : vector<32x4xbf16>, vector<4x324xbf16>, vector<32x324xf32> -> vector<32x324xf32>
    %16 = arith.addf %11, %15 : vector<32x324xf32>
    %17 = vector.extract_strided_slice %1 {offsets = [0, 18], sizes = [4, 324], strides = [1, 1]} : vector<4x362xbf16> to vector<4x324xbf16>
    %c3 = arith.constant 3 : index
    %c0_13 = arith.constant 0 : index
    %c0_14 = arith.constant 0 : index
    %18 = vector.load %arg3[%c3, %c0_13, %c0_14] : memref<9x32x4xbf16, #tpu.memory_space<vmem>>, vector<1x32x4xbf16>
    %19 = vector.shape_cast %18 : vector<1x32x4xbf16> to vector<32x4xbf16>
    %cst_15 = arith.constant dense<0.000000e+00> : vector<32x324xf32>
    %20 = tpu.matmul %19, %17, %cst_15 {dimension_numbers = #tpu.dot_dimension_numbers<[1], [0], [0], [1], [0, 0, 1, 1], [], []>} : vector<32x4xbf16>, vector<4x324xbf16>, vector<32x324xf32> -> vector<32x324xf32>
    %21 = arith.addf %16, %20 : vector<32x324xf32>
    %22 = vector.extract_strided_slice %1 {offsets = [0, 19], sizes = [4, 324], strides = [1, 1]} : vector<4x362xbf16> to vector<4x324xbf16>
    %c4 = arith.constant 4 : index
    %c0_16 = arith.constant 0 : index
    %c0_17 = arith.constant 0 : index
    %23 = vector.load %arg3[%c4, %c0_16, %c0_17] : memref<9x32x4xbf16, #tpu.memory_space<vmem>>, vector<1x32x4xbf16>
    %24 = vector.shape_cast %23 : vector<1x32x4xbf16> to vector<32x4xbf16>
    %cst_18 = arith.constant dense<0.000000e+00> : vector<32x324xf32>
    %25 = tpu.matmul %24, %22, %cst_18 {dimension_numbers = #tpu.dot_dimension_numbers<[1], [0], [0], [1], [0, 0, 1, 1], [], []>} : vector<32x4xbf16>, vector<4x324xbf16>, vector<32x324xf32> -> vector<32x324xf32>
    %26 = arith.addf %21, %25 : vector<32x324xf32>
    %27 = vector.extract_strided_slice %1 {offsets = [0, 20], sizes = [4, 324], strides = [1, 1]} : vector<4x362xbf16> to vector<4x324xbf16>
    %c5 = arith.constant 5 : index
    %c0_19 = arith.constant 0 : index
    %c0_20 = arith.constant 0 : index
    %28 = vector.load %arg3[%c5, %c0_19, %c0_20] : memref<9x32x4xbf16, #tpu.memory_space<vmem>>, vector<1x32x4xbf16>
    %29 = vector.shape_cast %28 : vector<1x32x4xbf16> to vector<32x4xbf16>
    %cst_21 = arith.constant dense<0.000000e+00> : vector<32x324xf32>
    %30 = tpu.matmul %29, %27, %cst_21 {dimension_numbers = #tpu.dot_dimension_numbers<[1], [0], [0], [1], [0, 0, 1, 1], [], []>} : vector<32x4xbf16>, vector<4x324xbf16>, vector<32x324xf32> -> vector<32x324xf32>
    %31 = arith.addf %26, %30 : vector<32x324xf32>
    %32 = vector.extract_strided_slice %1 {offsets = [0, 36], sizes = [4, 324], strides = [1, 1]} : vector<4x362xbf16> to vector<4x324xbf16>
    %c6 = arith.constant 6 : index
    %c0_22 = arith.constant 0 : index
    %c0_23 = arith.constant 0 : index
    %33 = vector.load %arg3[%c6, %c0_22, %c0_23] : memref<9x32x4xbf16, #tpu.memory_space<vmem>>, vector<1x32x4xbf16>
    %34 = vector.shape_cast %33 : vector<1x32x4xbf16> to vector<32x4xbf16>
    %cst_24 = arith.constant dense<0.000000e+00> : vector<32x324xf32>
    %35 = tpu.matmul %34, %32, %cst_24 {dimension_numbers = #tpu.dot_dimension_numbers<[1], [0], [0], [1], [0, 0, 1, 1], [], []>} : vector<32x4xbf16>, vector<4x324xbf16>, vector<32x324xf32> -> vector<32x324xf32>
    %36 = arith.addf %31, %35 : vector<32x324xf32>
    %37 = vector.extract_strided_slice %1 {offsets = [0, 37], sizes = [4, 324], strides = [1, 1]} : vector<4x362xbf16> to vector<4x324xbf16>
    %c7 = arith.constant 7 : index
    %c0_25 = arith.constant 0 : index
    %c0_26 = arith.constant 0 : index
    %38 = vector.load %arg3[%c7, %c0_25, %c0_26] : memref<9x32x4xbf16, #tpu.memory_space<vmem>>, vector<1x32x4xbf16>
    %39 = vector.shape_cast %38 : vector<1x32x4xbf16> to vector<32x4xbf16>
    %cst_27 = arith.constant dense<0.000000e+00> : vector<32x324xf32>
    %40 = tpu.matmul %39, %37, %cst_27 {dimension_numbers = #tpu.dot_dimension_numbers<[1], [0], [0], [1], [0, 0, 1, 1], [], []>} : vector<32x4xbf16>, vector<4x324xbf16>, vector<32x324xf32> -> vector<32x324xf32>
    %41 = arith.addf %36, %40 : vector<32x324xf32>
    %42 = vector.extract_strided_slice %1 {offsets = [0, 38], sizes = [4, 324], strides = [1, 1]} : vector<4x362xbf16> to vector<4x324xbf16>
    %c8 = arith.constant 8 : index
    %c0_28 = arith.constant 0 : index
    %c0_29 = arith.constant 0 : index
    %43 = vector.load %arg3[%c8, %c0_28, %c0_29] : memref<9x32x4xbf16, #tpu.memory_space<vmem>>, vector<1x32x4xbf16>
    %44 = vector.shape_cast %43 : vector<1x32x4xbf16> to vector<32x4xbf16>
    %cst_30 = arith.constant dense<0.000000e+00> : vector<32x324xf32>
    %45 = tpu.matmul %44, %42, %cst_30 {dimension_numbers = #tpu.dot_dimension_numbers<[1], [0], [0], [1], [0, 0, 1, 1], [], []>} : vector<32x4xbf16>, vector<4x324xbf16>, vector<32x324xf32> -> vector<32x324xf32>
    %46 = arith.addf %41, %45 : vector<32x324xf32>
    %47 = vector.extract_strided_slice %46 {offsets = [0, 0], sizes = [16, 324], strides = [1, 1]} : vector<32x324xf32> to vector<16x324xf32>
    %48 = vector.extract_strided_slice %47 {offsets = [0, 0], sizes = [4, 324], strides = [1, 1]} : vector<16x324xf32> to vector<4x324xf32>
    %49 = arith.negf %48 : vector<4x324xf32>
    %50 = math.exp %49 : vector<4x324xf32>
    %cst_31 = arith.constant 1.000000e+00 : f32
    %51 = vector.broadcast %cst_31 : f32 to vector<4x324xf32>
    %52 = arith.addf %51, %50 : vector<4x324xf32>
    %53 = arith.divf %51, %52 : vector<4x324xf32>
    %54 = vector.extract_strided_slice %47 {offsets = [8, 0], sizes = [4, 324], strides = [1, 1]} : vector<16x324xf32> to vector<4x324xf32>
    %55 = math.tanh %54 : vector<4x324xf32>
    %56 = vector.extract_strided_slice %47 {offsets = [12, 0], sizes = [4, 324], strides = [1, 1]} : vector<16x324xf32> to vector<4x324xf32>
    %57 = arith.negf %56 : vector<4x324xf32>
    %58 = math.exp %57 : vector<4x324xf32>
    %cst_32 = arith.constant 1.000000e+00 : f32
    %59 = vector.broadcast %cst_32 : f32 to vector<4x324xf32>
    %60 = arith.addf %59, %58 : vector<4x324xf32>
    %61 = arith.divf %59, %60 : vector<4x324xf32>
    %62 = arith.mulf %53, %55 : vector<4x324xf32>
    %63 = math.tanh %62 : vector<4x324xf32>
    %64 = arith.mulf %61, %63 : vector<4x324xf32>
    %65 = vector.extract_strided_slice %46 {offsets = [16, 0], sizes = [16, 324], strides = [1, 1]} : vector<32x324xf32> to vector<16x324xf32>
    %66 = vector.extract_strided_slice %65 {offsets = [0, 0], sizes = [4, 324], strides = [1, 1]} : vector<16x324xf32> to vector<4x324xf32>
    %67 = arith.negf %66 : vector<4x324xf32>
    %68 = math.exp %67 : vector<4x324xf32>
    %cst_33 = arith.constant 1.000000e+00 : f32
    %69 = vector.broadcast %cst_33 : f32 to vector<4x324xf32>
    %70 = arith.addf %69, %68 : vector<4x324xf32>
    %71 = arith.divf %69, %70 : vector<4x324xf32>
    %72 = vector.extract_strided_slice %65 {offsets = [8, 0], sizes = [4, 324], strides = [1, 1]} : vector<16x324xf32> to vector<4x324xf32>
    %73 = math.tanh %72 : vector<4x324xf32>
    %74 = vector.extract_strided_slice %65 {offsets = [12, 0], sizes = [4, 324], strides = [1, 1]} : vector<16x324xf32> to vector<4x324xf32>
    %75 = arith.negf %74 : vector<4x324xf32>
    %76 = math.exp %75 : vector<4x324xf32>
    %cst_34 = arith.constant 1.000000e+00 : f32
    %77 = vector.broadcast %cst_34 : f32 to vector<4x324xf32>
    %78 = arith.addf %77, %76 : vector<4x324xf32>
    %79 = arith.divf %77, %78 : vector<4x324xf32>
    %80 = arith.mulf %71, %73 : vector<4x324xf32>
    %81 = math.tanh %80 : vector<4x324xf32>
    %82 = arith.mulf %79, %81 : vector<4x324xf32>
    %83 = tpu.concatenate %64, %82 in 0 : vector<4x324xf32>, vector<4x324xf32> -> vector<8x324xf32>
    %84 = tpu.concatenate %62, %80 in 0 : vector<4x324xf32>, vector<4x324xf32> -> vector<8x324xf32>
    %c0_35 = arith.constant 0 : index
    %c0_36 = arith.constant 0 : index
    %c0_37 = arith.constant 0 : index
    %85 = vector.load %arg13[%c0_35, %c0_36, %c0_37] : memref<1x8x324xf32, #tpu.memory_space<vmem>>, vector<1x8x324xf32>
    %86 = vector.shape_cast %85 : vector<1x8x324xf32> to vector<8x324xf32>
    %87 = vector.shape_cast %83 : vector<8x324xf32> to vector<1x8x324xf32>
    tpu.vector_store %arg13[%c0_35, %c0_36, %c0_37], %87 {strides = array<i32>} : memref<1x8x324xf32, #tpu.memory_space<vmem>>, vector<1x8x324xf32>,
    %c0_38 = arith.constant 0 : index
    %c0_39 = arith.constant 0 : index
    %c0_40 = arith.constant 0 : index
    %88 = vector.load %arg14[%c0_38, %c0_39, %c0_40] : memref<1x8x324xf32, #tpu.memory_space<vmem>>, vector<1x8x324xf32>
    %89 = vector.shape_cast %88 : vector<1x8x324xf32> to vector<8x324xf32>
    %90 = vector.shape_cast %84 : vector<8x324xf32> to vector<1x8x324xf32>
    tpu.vector_store %arg14[%c0_38, %c0_39, %c0_40], %90 {strides = array<i32>} : memref<1x8x324xf32, #tpu.memory_space<vmem>>, vector<1x8x324xf32>,
    %c0_41 = arith.constant 0 : index
    %c0_42 = arith.constant 0 : index
    %91 = vector.load %arg5[%c0_41, %c0_42] : memref<8x1xf32, #tpu.memory_space<vmem>>, vector<8x1xf32>
    %92 = vector.broadcast %91 : vector<8x1xf32> to vector<8x324xf32>
    %93 = arith.mulf %83, %92 : vector<8x324xf32>
    %c0_43 = arith.constant 0 : index
    %c0_44 = arith.constant 0 : index
    %94 = vector.load %arg6[%c0_43, %c0_44] : memref<8x1xf32, #tpu.memory_space<vmem>>, vector<8x1xf32>
    %95 = vector.broadcast %94 : vector<8x1xf32> to vector<8x324xf32>
    %96 = arith.addf %93, %95 : vector<8x324xf32>
    %cst_45 = arith.constant 0.000000e+00 : f32
    %97 = vector.broadcast %cst_45 : f32 to vector<8x324xf32>
    %98 = arith.maximumf %96, %97 : vector<8x324xf32>
    %99 = vector.broadcast %2 : vector<1x324xf32> to vector<8x324xf32>
    %100 = arith.mulf %98, %99 : vector<8x324xf32>
    %cst_46 = arith.constant 0.000000e+00 : bf16
    %101 = vector.broadcast %cst_46 : bf16 to vector<8x19xbf16>
    %102 = arith.truncf %100 : vector<8x324xf32> to vector<8x324xbf16>
    %103 = tpu.concatenate %101, %102, %101 in 1 : vector<8x19xbf16>, vector<8x324xbf16>, vector<8x19xbf16> -> vector<8x362xbf16>
    %104 = vector.extract_strided_slice %103 {offsets = [0, 0], sizes = [8, 324], strides = [1, 1]} : vector<8x362xbf16> to vector<8x324xbf16>
    %c0_47 = arith.constant 0 : index
    %c0_48 = arith.constant 0 : index
    %c0_49 = arith.constant 0 : index
    %105 = vector.load %arg4[%c0_47, %c0_48, %c0_49] : memref<9x32x8xbf16, #tpu.memory_space<vmem>>, vector<1x32x8xbf16>
    %106 = vector.shape_cast %105 : vector<1x32x8xbf16> to vector<32x8xbf16>
    %cst_50 = arith.constant dense<0.000000e+00> : vector<32x324xf32>
    %107 = tpu.matmul %106, %104, %cst_50 {dimension_numbers = #tpu.dot_dimension_numbers<[1], [0], [0], [1], [0, 0, 1, 1], [], []>} : vector<32x8xbf16>, vector<8x324xbf16>, vector<32x324xf32> -> vector<32x324xf32>
    %108 = vector.extract_strided_slice %103 {offsets = [0, 1], sizes = [8, 324], strides = [1, 1]} : vector<8x362xbf16> to vector<8x324xbf16>
    %c1_51 = arith.constant 1 : index
    %c0_52 = arith.constant 0 : index
    %c0_53 = arith.constant 0 : index
    %109 = vector.load %arg4[%c1_51, %c0_52, %c0_53] : memref<9x32x8xbf16, #tpu.memory_space<vmem>>, vector<1x32x8xbf16>
    %110 = vector.shape_cast %109 : vector<1x32x8xbf16> to vector<32x8xbf16>
    %cst_54 = arith.constant dense<0.000000e+00> : vector<32x324xf32>
    %111 = tpu.matmul %110, %108, %cst_54 {dimension_numbers = #tpu.dot_dimension_numbers<[1], [0], [0], [1], [0, 0, 1, 1], [], []>} : vector<32x8xbf16>, vector<8x324xbf16>, vector<32x324xf32> -> vector<32x324xf32>
    %112 = arith.addf %107, %111 : vector<32x324xf32>
    %113 = vector.extract_strided_slice %103 {offsets = [0, 2], sizes = [8, 324], strides = [1, 1]} : vector<8x362xbf16> to vector<8x324xbf16>
    %c2_55 = arith.constant 2 : index
    %c0_56 = arith.constant 0 : index
    %c0_57 = arith.constant 0 : index
    %114 = vector.load %arg4[%c2_55, %c0_56, %c0_57] : memref<9x32x8xbf16, #tpu.memory_space<vmem>>, vector<1x32x8xbf16>
    %115 = vector.shape_cast %114 : vector<1x32x8xbf16> to vector<32x8xbf16>
    %cst_58 = arith.constant dense<0.000000e+00> : vector<32x324xf32>
    %116 = tpu.matmul %115, %113, %cst_58 {dimension_numbers = #tpu.dot_dimension_numbers<[1], [0], [0], [1], [0, 0, 1, 1], [], []>} : vector<32x8xbf16>, vector<8x324xbf16>, vector<32x324xf32> -> vector<32x324xf32>
    %117 = arith.addf %112, %116 : vector<32x324xf32>
    %118 = vector.extract_strided_slice %103 {offsets = [0, 18], sizes = [8, 324], strides = [1, 1]} : vector<8x362xbf16> to vector<8x324xbf16>
    %c3_59 = arith.constant 3 : index
    %c0_60 = arith.constant 0 : index
    %c0_61 = arith.constant 0 : index
    %119 = vector.load %arg4[%c3_59, %c0_60, %c0_61] : memref<9x32x8xbf16, #tpu.memory_space<vmem>>, vector<1x32x8xbf16>
    %120 = vector.shape_cast %119 : vector<1x32x8xbf16> to vector<32x8xbf16>
    %cst_62 = arith.constant dense<0.000000e+00> : vector<32x324xf32>
    %121 = tpu.matmul %120, %118, %cst_62 {dimension_numbers = #tpu.dot_dimension_numbers<[1], [0], [0], [1], [0, 0, 1, 1], [], []>} : vector<32x8xbf16>, vector<8x324xbf16>, vector<32x324xf32> -> vector<32x324xf32>
    %122 = arith.addf %117, %121 : vector<32x324xf32>
    %123 = vector.extract_strided_slice %103 {offsets = [0, 19], sizes = [8, 324], strides = [1, 1]} : vector<8x362xbf16> to vector<8x324xbf16>
    %c4_63 = arith.constant 4 : index
    %c0_64 = arith.constant 0 : index
    %c0_65 = arith.constant 0 : index
    %124 = vector.load %arg4[%c4_63, %c0_64, %c0_65] : memref<9x32x8xbf16, #tpu.memory_space<vmem>>, vector<1x32x8xbf16>
    %125 = vector.shape_cast %124 : vector<1x32x8xbf16> to vector<32x8xbf16>
    %cst_66 = arith.constant dense<0.000000e+00> : vector<32x324xf32>
    %126 = tpu.matmul %125, %123, %cst_66 {dimension_numbers = #tpu.dot_dimension_numbers<[1], [0], [0], [1], [0, 0, 1, 1], [], []>} : vector<32x8xbf16>, vector<8x324xbf16>, vector<32x324xf32> -> vector<32x324xf32>
    %127 = arith.addf %122, %126 : vector<32x324xf32>
    %128 = vector.extract_strided_slice %103 {offsets = [0, 20], sizes = [8, 324], strides = [1, 1]} : vector<8x362xbf16> to vector<8x324xbf16>
    %c5_67 = arith.constant 5 : index
    %c0_68 = arith.constant 0 : index
    %c0_69 = arith.constant 0 : index
    %129 = vector.load %arg4[%c5_67, %c0_68, %c0_69] : memref<9x32x8xbf16, #tpu.memory_space<vmem>>, vector<1x32x8xbf16>
    %130 = vector.shape_cast %129 : vector<1x32x8xbf16> to vector<32x8xbf16>
    %cst_70 = arith.constant dense<0.000000e+00> : vector<32x324xf32>
    %131 = tpu.matmul %130, %128, %cst_70 {dimension_numbers = #tpu.dot_dimension_numbers<[1], [0], [0], [1], [0, 0, 1, 1], [], []>} : vector<32x8xbf16>, vector<8x324xbf16>, vector<32x324xf32> -> vector<32x324xf32>
    %132 = arith.addf %127, %131 : vector<32x324xf32>
    %133 = vector.extract_strided_slice %103 {offsets = [0, 36], sizes = [8, 324], strides = [1, 1]} : vector<8x362xbf16> to vector<8x324xbf16>
    %c6_71 = arith.constant 6 : index
    %c0_72 = arith.constant 0 : index
    %c0_73 = arith.constant 0 : index
    %134 = vector.load %arg4[%c6_71, %c0_72, %c0_73] : memref<9x32x8xbf16, #tpu.memory_space<vmem>>, vector<1x32x8xbf16>
    %135 = vector.shape_cast %134 : vector<1x32x8xbf16> to vector<32x8xbf16>
    %cst_74 = arith.constant dense<0.000000e+00> : vector<32x324xf32>
    %136 = tpu.matmul %135, %133, %cst_74 {dimension_numbers = #tpu.dot_dimension_numbers<[1], [0], [0], [1], [0, 0, 1, 1], [], []>} : vector<32x8xbf16>, vector<8x324xbf16>, vector<32x324xf32> -> vector<32x324xf32>
    %137 = arith.addf %132, %136 : vector<32x324xf32>
    %138 = vector.extract_strided_slice %103 {offsets = [0, 37], sizes = [8, 324], strides = [1, 1]} : vector<8x362xbf16> to vector<8x324xbf16>
    %c7_75 = arith.constant 7 : index
    %c0_76 = arith.constant 0 : index
    %c0_77 = arith.constant 0 : index
    %139 = vector.load %arg4[%c7_75, %c0_76, %c0_77] : memref<9x32x8xbf16, #tpu.memory_space<vmem>>, vector<1x32x8xbf16>
    %140 = vector.shape_cast %139 : vector<1x32x8xbf16> to vector<32x8xbf16>
    %cst_78 = arith.constant dense<0.000000e+00> : vector<32x324xf32>
    %141 = tpu.matmul %140, %138, %cst_78 {dimension_numbers = #tpu.dot_dimension_numbers<[1], [0], [0], [1], [0, 0, 1, 1], [], []>} : vector<32x8xbf16>, vector<8x324xbf16>, vector<32x324xf32> -> vector<32x324xf32>
    %142 = arith.addf %137, %141 : vector<32x324xf32>
    %143 = vector.extract_strided_slice %103 {offsets = [0, 38], sizes = [8, 324], strides = [1, 1]} : vector<8x362xbf16> to vector<8x324xbf16>
    %c8_79 = arith.constant 8 : index
    %c0_80 = arith.constant 0 : index
    %c0_81 = arith.constant 0 : index
    %144 = vector.load %arg4[%c8_79, %c0_80, %c0_81] : memref<9x32x8xbf16, #tpu.memory_space<vmem>>, vector<1x32x8xbf16>
    %145 = vector.shape_cast %144 : vector<1x32x8xbf16> to vector<32x8xbf16>
    %cst_82 = arith.constant dense<0.000000e+00> : vector<32x324xf32>
    %146 = tpu.matmul %145, %143, %cst_82 {dimension_numbers = #tpu.dot_dimension_numbers<[1], [0], [0], [1], [0, 0, 1, 1], [], []>} : vector<32x8xbf16>, vector<8x324xbf16>, vector<32x324xf32> -> vector<32x324xf32>
    %147 = arith.addf %142, %146 : vector<32x324xf32>
    %148 = vector.extract_strided_slice %147 {offsets = [0, 0], sizes = [16, 324], strides = [1, 1]} : vector<32x324xf32> to vector<16x324xf32>
    %149 = vector.extract_strided_slice %148 {offsets = [0, 0], sizes = [4, 324], strides = [1, 1]} : vector<16x324xf32> to vector<4x324xf32>
    %150 = arith.negf %149 : vector<4x324xf32>
    %151 = math.exp %150 : vector<4x324xf32>
    %cst_83 = arith.constant 1.000000e+00 : f32
    %152 = vector.broadcast %cst_83 : f32 to vector<4x324xf32>
    %153 = arith.addf %152, %151 : vector<4x324xf32>
    %154 = arith.divf %152, %153 : vector<4x324xf32>
    %155 = vector.extract_strided_slice %148 {offsets = [8, 0], sizes = [4, 324], strides = [1, 1]} : vector<16x324xf32> to vector<4x324xf32>
    %156 = math.tanh %155 : vector<4x324xf32>
    %157 = vector.extract_strided_slice %148 {offsets = [12, 0], sizes = [4, 324], strides = [1, 1]} : vector<16x324xf32> to vector<4x324xf32>
    %158 = arith.negf %157 : vector<4x324xf32>
    %159 = math.exp %158 : vector<4x324xf32>
    %cst_84 = arith.constant 1.000000e+00 : f32
    %160 = vector.broadcast %cst_84 : f32 to vector<4x324xf32>
    %161 = arith.addf %160, %159 : vector<4x324xf32>
    %162 = arith.divf %160, %161 : vector<4x324xf32>
    %163 = arith.mulf %154, %156 : vector<4x324xf32>
    %164 = math.tanh %163 : vector<4x324xf32>
    %165 = arith.mulf %162, %164 : vector<4x324xf32>
    %166 = vector.extract_strided_slice %147 {offsets = [16, 0], sizes = [16, 324], strides = [1, 1]} : vector<32x324xf32> to vector<16x324xf32>
    %167 = vector.extract_strided_slice %166 {offsets = [0, 0], sizes = [4, 324], strides = [1, 1]} : vector<16x324xf32> to vector<4x324xf32>
    %168 = arith.negf %167 : vector<4x324xf32>
    %169 = math.exp %168 : vector<4x324xf32>
    %cst_85 = arith.constant 1.000000e+00 : f32
    %170 = vector.broadcast %cst_85 : f32 to vector<4x324xf32>
    %171 = arith.addf %170, %169 : vector<4x324xf32>
    %172 = arith.divf %170, %171 : vector<4x324xf32>
    %173 = vector.extract_strided_slice %166 {offsets = [8, 0], sizes = [4, 324], strides = [1, 1]} : vector<16x324xf32> to vector<4x324xf32>
    %174 = math.tanh %173 : vector<4x324xf32>
    %175 = vector.extract_strided_slice %166 {offsets = [12, 0], sizes = [4, 324], strides = [1, 1]} : vector<16x324xf32> to vector<4x324xf32>
    %176 = arith.negf %175 : vector<4x324xf32>
    %177 = math.exp %176 : vector<4x324xf32>
    %cst_86 = arith.constant 1.000000e+00 : f32
    %178 = vector.broadcast %cst_86 : f32 to vector<4x324xf32>
    %179 = arith.addf %178, %177 : vector<4x324xf32>
    %180 = arith.divf %178, %179 : vector<4x324xf32>
    %181 = arith.mulf %172, %174 : vector<4x324xf32>
    %182 = math.tanh %181 : vector<4x324xf32>
    %183 = arith.mulf %180, %182 : vector<4x324xf32>
    %184 = tpu.concatenate %165, %183 in 0 : vector<4x324xf32>, vector<4x324xf32> -> vector<8x324xf32>
    %185 = tpu.concatenate %163, %181 in 0 : vector<4x324xf32>, vector<4x324xf32> -> vector<8x324xf32>
    %c0_87 = arith.constant 0 : index
    %c0_88 = arith.constant 0 : index
    %c0_89 = arith.constant 0 : index
    %186 = vector.load %arg15[%c0_87, %c0_88, %c0_89] : memref<1x8x324xf32, #tpu.memory_space<vmem>>, vector<1x8x324xf32>
    %187 = vector.shape_cast %186 : vector<1x8x324xf32> to vector<8x324xf32>
    %188 = vector.shape_cast %184 : vector<8x324xf32> to vector<1x8x324xf32>
    tpu.vector_store %arg15[%c0_87, %c0_88, %c0_89], %188 {strides = array<i32>} : memref<1x8x324xf32, #tpu.memory_space<vmem>>, vector<1x8x324xf32>,
    %c0_90 = arith.constant 0 : index
    %c0_91 = arith.constant 0 : index
    %c0_92 = arith.constant 0 : index
    %189 = vector.load %arg16[%c0_90, %c0_91, %c0_92] : memref<1x8x324xf32, #tpu.memory_space<vmem>>, vector<1x8x324xf32>
    %190 = vector.shape_cast %189 : vector<1x8x324xf32> to vector<8x324xf32>
    %191 = vector.shape_cast %185 : vector<8x324xf32> to vector<1x8x324xf32>
    tpu.vector_store %arg16[%c0_90, %c0_91, %c0_92], %191 {strides = array<i32>} : memref<1x8x324xf32, #tpu.memory_space<vmem>>, vector<1x8x324xf32>,
    %c0_93 = arith.constant 0 : index
    %c0_94 = arith.constant 0 : index
    %192 = vector.load %arg7[%c0_93, %c0_94] : memref<8x1xf32, #tpu.memory_space<vmem>>, vector<8x1xf32>
    %193 = vector.broadcast %192 : vector<8x1xf32> to vector<8x324xf32>
    %194 = arith.mulf %184, %193 : vector<8x324xf32>
    %c0_95 = arith.constant 0 : index
    %c0_96 = arith.constant 0 : index
    %195 = vector.load %arg8[%c0_95, %c0_96] : memref<8x1xf32, #tpu.memory_space<vmem>>, vector<8x1xf32>
    %196 = vector.broadcast %195 : vector<8x1xf32> to vector<8x324xf32>
    %197 = arith.addf %194, %196 : vector<8x324xf32>
    %198 = vector.extract_strided_slice %1 {offsets = [0, 19], sizes = [4, 324], strides = [1, 1]} : vector<4x362xbf16> to vector<4x324xbf16>
    %c0_97 = arith.constant 0 : index
    %c0_98 = arith.constant 0 : index
    %199 = vector.load %arg9[%c0_97, %c0_98] : memref<8x4xbf16, #tpu.memory_space<vmem>>, vector<8x4xbf16>
    %cst_99 = arith.constant dense<0.000000e+00> : vector<8x324xf32>
    %200 = tpu.matmul %199, %198, %cst_99 {dimension_numbers = #tpu.dot_dimension_numbers<[1], [0], [0], [1], [0, 0, 1, 1], [], []>} : vector<8x4xbf16>, vector<4x324xbf16>, vector<8x324xf32> -> vector<8x324xf32>
    %c0_100 = arith.constant 0 : index
    %c0_101 = arith.constant 0 : index
    %201 = vector.load %arg10[%c0_100, %c0_101] : memref<8x1xf32, #tpu.memory_space<vmem>>, vector<8x1xf32>
    %202 = vector.broadcast %201 : vector<8x1xf32> to vector<8x324xf32>
    %203 = arith.mulf %200, %202 : vector<8x324xf32>
    %c0_102 = arith.constant 0 : index
    %c0_103 = arith.constant 0 : index
    %204 = vector.load %arg11[%c0_102, %c0_103] : memref<8x1xf32, #tpu.memory_space<vmem>>, vector<8x1xf32>
    %205 = vector.broadcast %204 : vector<8x1xf32> to vector<8x324xf32>
    %206 = arith.addf %203, %205 : vector<8x324xf32>
    %207 = arith.addf %197, %206 : vector<8x324xf32>
    %cst_104 = arith.constant 0.000000e+00 : f32
    %208 = vector.broadcast %cst_104 : f32 to vector<8x324xf32>
    %209 = arith.maximumf %207, %208 : vector<8x324xf32>
    %210 = arith.truncf %209 : vector<8x324xf32> to vector<8x324xbf16>
    %c0_105 = arith.constant 0 : index
    %c0_106 = arith.constant 0 : index
    %c0_107 = arith.constant 0 : index
    %211 = vector.load %arg12[%c0_105, %c0_106, %c0_107] : memref<1x8x324xbf16, #tpu.memory_space<vmem>>, vector<1x8x324xbf16>
    %212 = vector.shape_cast %211 : vector<1x8x324xbf16> to vector<8x324xbf16>
    %213 = vector.shape_cast %210 : vector<8x324xbf16> to vector<1x8x324xbf16>
    tpu.vector_store %arg12[%c0_105, %c0_106, %c0_107], %213 {strides = array<i32>} : memref<1x8x324xbf16, #tpu.memory_space<vmem>>, vector<1x8x324xbf16>,
    return
  }
  func.func @transform_0(%arg0: i32) -> (i32, i32, i32) {
    %c0_i32 = arith.constant 0 : i32
    %c0_i32_0 = arith.constant 0 : i32
    %c0_i32_1 = arith.constant 0 : i32
    return %arg0, %c0_i32, %c0_i32_0 : i32, i32, i32
  }
  func.func @transform_1(%arg0: i32) -> (i32, i32) {
    %c0_i32 = arith.constant 0 : i32
    %c0_i32_0 = arith.constant 0 : i32
    %c0_i32_1 = arith.constant 0 : i32
    return %c0_i32, %c0_i32_0 : i32, i32
  }
  func.func @transform_2(%arg0: i32) -> (i32, i32, i32) {
    %c0_i32 = arith.constant 0 : i32
    %c0_i32_0 = arith.constant 0 : i32
    %c0_i32_1 = arith.constant 0 : i32
    %c0_i32_2 = arith.constant 0 : i32
    return %c0_i32, %c0_i32_0, %c0_i32_1 : i32, i32, i32
  }
  func.func @transform_3(%arg0: i32) -> (i32, i32, i32) {
    %c0_i32 = arith.constant 0 : i32
    %c0_i32_0 = arith.constant 0 : i32
    %c0_i32_1 = arith.constant 0 : i32
    %c0_i32_2 = arith.constant 0 : i32
    return %c0_i32, %c0_i32_0, %c0_i32_1 : i32, i32, i32
  }
  func.func @transform_4(%arg0: i32) -> (i32, i32) {
    %c0_i32 = arith.constant 0 : i32
    %c0_i32_0 = arith.constant 0 : i32
    %c0_i32_1 = arith.constant 0 : i32
    return %c0_i32, %c0_i32_0 : i32, i32
  }
  func.func @transform_5(%arg0: i32) -> (i32, i32) {
    %c0_i32 = arith.constant 0 : i32
    %c0_i32_0 = arith.constant 0 : i32
    %c0_i32_1 = arith.constant 0 : i32
    return %c0_i32, %c0_i32_0 : i32, i32
  }
  func.func @transform_6(%arg0: i32) -> (i32, i32) {
    %c0_i32 = arith.constant 0 : i32
    %c0_i32_0 = arith.constant 0 : i32
    %c0_i32_1 = arith.constant 0 : i32
    return %c0_i32, %c0_i32_0 : i32, i32
  }
  func.func @transform_7(%arg0: i32) -> (i32, i32) {
    %c0_i32 = arith.constant 0 : i32
    %c0_i32_0 = arith.constant 0 : i32
    %c0_i32_1 = arith.constant 0 : i32
    return %c0_i32, %c0_i32_0 : i32, i32
  }
  func.func @transform_8(%arg0: i32) -> (i32, i32) {
    %c0_i32 = arith.constant 0 : i32
    %c0_i32_0 = arith.constant 0 : i32
    %c0_i32_1 = arith.constant 0 : i32
    return %c0_i32, %c0_i32_0 : i32, i32
  }
  func.func @transform_9(%arg0: i32) -> (i32, i32) {
    %c0_i32 = arith.constant 0 : i32
    %c0_i32_0 = arith.constant 0 : i32
    %c0_i32_1 = arith.constant 0 : i32
    return %c0_i32, %c0_i32_0 : i32, i32
  }
  func.func @transform_10(%arg0: i32) -> (i32, i32) {
    %c0_i32 = arith.constant 0 : i32
    %c0_i32_0 = arith.constant 0 : i32
    %c0_i32_1 = arith.constant 0 : i32
    return %c0_i32, %c0_i32_0 : i32, i32
  }
  func.func @transform_11(%arg0: i32) -> (i32, i32, i32) {
    %c0_i32 = arith.constant 0 : i32
    %c0_i32_0 = arith.constant 0 : i32
    %c0_i32_1 = arith.constant 0 : i32
    return %arg0, %c0_i32, %c0_i32_0 : i32, i32, i32
  }
  func.func @transform_12(%arg0: i32) -> (i32, i32, i32) {
    %c0_i32 = arith.constant 0 : i32
    %c0_i32_0 = arith.constant 0 : i32
    %c0_i32_1 = arith.constant 0 : i32
    return %arg0, %c0_i32, %c0_i32_0 : i32, i32, i32
  }
  func.func @transform_13(%arg0: i32) -> (i32, i32, i32) {
    %c0_i32 = arith.constant 0 : i32
    %c0_i32_0 = arith.constant 0 : i32
    %c0_i32_1 = arith.constant 0 : i32
    return %arg0, %c0_i32, %c0_i32_0 : i32, i32, i32
  }
  func.func @transform_14(%arg0: i32) -> (i32, i32, i32) {
    %c0_i32 = arith.constant 0 : i32
    %c0_i32_0 = arith.constant 0 : i32
    %c0_i32_1 = arith.constant 0 : i32
    return %arg0, %c0_i32, %c0_i32_0 : i32, i32, i32
  }
  func.func @transform_15(%arg0: i32) -> (i32, i32, i32) {
    %c0_i32 = arith.constant 0 : i32
    %c0_i32_0 = arith.constant 0 : i32
    %c0_i32_1 = arith.constant 0 : i32
    return %arg0, %c0_i32, %c0_i32_0 : i32, i32, i32
  }
}

</mosaic_0001>

<bundles_post_ra>
// kernel: bilstm_block_forward.1
= control target key start
LH: loop header
LB: loop body
LE: loop exit
PB: predicated region body
PF: predicated region fallthrough
CT: control target
= control target key end

     0   :  { %s4094_s18 = smov 0   ;;  %s5374_s0 = inlined_call_operand.vmem [shape: bf16[2,4,362], index: 0, kind: input, shape index: {}]   ;;  %s5375_s1 = inlined_call_operand.vmem [shape: f32[1,324], index: 1, kind: input, shape index: {}]   ;;  %s5376_s2 = inlined_call_operand.vmem [shape: bf16[9,32,4], index: 2, kind: input, shape index: {}]   ;;  %s5377_s3 = inlined_call_operand.vmem [shape: bf16[9,32,8], index: 3, kind: input, shape index: {}]   ;;  %s5378_s4 = inlined_call_operand.vmem [shape: f32[8,1], index: 4, kind: input, shape index: {}]   ;;  %s5379_s5 = inlined_call_operand.vmem [shape: f32[8,1], index: 5, kind: input, shape index: {}]   ;;  %s5380_s6 = inlined_call_operand.vmem [shape: f32[8,1], index: 6, kind: input, shape index: {}]   ;;  %s5381_s7 = inlined_call_operand.vmem [shape: f32[8,1], index: 7, kind: input, shape index: {}]   ;;  %s5382_s8 = inlined_call_operand.vmem [shape: bf16[8,4], index: 8, kind: input, shape index: {}]   ;;  %s5383_s9 = inlined_call_operand.vmem [shape: f32[8,1], index: 9, kind: input, shape index: {}]   ;;  %s5384_s10 = inlined_call_operand.vmem [shape: f32[8,1], index: 10, kind: input, shape index: {}]   ;;  %s5385_s11 = inlined_call_operand.vmem [shape: bf16[2,8,324], index: 11, kind: output, shape index: {0}]   ;;  %s5386_s12 = inlined_call_operand.vmem [shape: f32[2,8,324], index: 12, kind: output, shape index: {1}]   ;;  %s5387_s13 = inlined_call_operand.vmem [shape: f32[2,8,324], index: 13, kind: output, shape index: {2}]   ;;  %s5388_s14 = inlined_call_operand.vmem [shape: f32[2,8,324], index: 14, kind: output, shape index: {3}]   ;;  %s5389_s15 = inlined_call_operand.vmem [shape: f32[2,8,324], index: 15, kind: output, shape index: {4}]  }
   0x1 LB: > { %s3436_s19 = sadd.s32 4294967295, %s4002_s18   ;;  %p3440_p0 = scmp.ge.s32.totalorder %s4002_s18, 1  ;;  %s4002_s18 = sphi %s4094_s18, %s26_s18  }
   0x2   : > { %p446_p1 = scmp.lt.s32.totalorder %s4002_s18, 3 }
   0x4   : > { %p447_p2 = pnand %p3440_p0, %p446_p1 }
   0x6   : > { %450 = sbr.rel (%p447_p2) target bundleno = 1189 (0x4a5), region = 64 }
   0xb   : > { %p514_p3 = scmp.lt.s32.totalorder %s3436_s19, 1  ;;  %s4004_s24 = smov 127   ;;  %vm5392_vm0 = vcmask 1041408   ;;  %v4140_v20 = vld [vmem:[%s5376_s2] sm:$0xff]  ;;  %vm5390_vm1 = vcmask 31744   ;;  %v4148_v22 = vld [vmem:[%s5376_s2 + $0x8] sm:$0xff] }
   0xc   : > { %s4005_s25 = smov 126   ;;  %s4006_s26 = smov 110   ;;  %v3794_v28 = vld [vmem:[%s5376_s2 + $0x10] sm:$0xff]  ;;  %vm768_vm2 = vcmask 1031168   ;;  %vm580_vm3 = vcmask 1039360   ;;  %v4165_v34 = vld [vmem:[%s5376_s2 + $0x20] sm:$0xff] }
   0xd   : > { %s5474_s19 = smov (!%p514_p3, %s3436_s19), 1  ;;  %s4007_s27 = smov 109   ;;  %v3795_v44 = vld [vmem:[%s5376_s2 + $0x18] sm:$0xff]  ;;  %v4191_v48 = vld [vmem:[%s5376_s2 + $0x28] sm:$0xff]  ;;  %vm883_vm4 = vcmask 900096   ;;  %v3798_v57 = vld [vmem:[%s5376_s2 + $0x30] sm:$0xff] }
   0xe   : > { %s3828_s20 = smul.u32 6, %s5474_s19  ;;  %s4008_s28 = smov 108   ;;  %vm5395_vm5 = vcmask 891904   ;;  %vm1113_vm6 = vcmask 883712   ;;  %vm5394_vm7 = vcmask 752640   ;;  %vm5393_vm8 = vcmask 744448  }
   0xf   : > { %s4009_s16 = smov 92   ;;  %s4010_s30 = smov 91   ;;  %vm5391_vm9 = vcmask 736256  }
  0x10   : > { %s518_s23 = scalar_lea.vmem %s5374_s0, %s3828_s20  ;;  %s5396_s17 = smov 90  }
  0x11   : > { %v4108_v0 = vld [vmem:[%s518_s23] sm:$0x3f]  ;;  %s4695_s21 = smul.u32 24, %s5474_s19  ;;  %s5442_s20 = smov 90  }
  0x12   : > { %567 = vst [vmem:[#allocation1] ss:$4 sm:$0xff] %v4108_v0 }
  0x13   : > { %s4723_s29 = scalar_lea.vmem %s5387_s13, %s4695_s21  ;;  %s528_s23 = scalar_lea.vmem %s5386_s12, %s4695_s21 }
  0x19   : > { %v572_v1 = vld.sshfl [vmem:[#allocation1 + $0x10] sm:$0xff pattern:$0x73625140]  ;;  %v568_v2 = vld.sshfl [vmem:[#allocation1] sm:$0xff pattern:$0x73625140] }
  0x1a   : > { %578 = vrot.lane.b32.xlu1 %v572_v1, %s4004_s24  ;;  %574 = vrot.lane.b32.xlu0 %v568_v2, %s4004_s24  ;;  %v570_v3 = vld.sshfl [vmem:[#allocation1 + $0x8] sm:$0xff pattern:$0x73625140]  ;;  %v3799_v1 = vld [vmem:[%s5376_s2 + $0x38] sm:$0xff] }
  0x1b   : > { %667 = vst [vmem:[#allocation1] ss:$4 sm:$0xff] %v4108_v0 }
  0x22   : > { %576 = vrot.lane.b32.xlu0 %v570_v3, %s4004_s24  ;;  %v668_v4 = vld.sshfl [vmem:[#allocation1] sm:$0xff pattern:$0x73625140]  ;;  %v4115_v5 = vld.sshfl [vmem:[#allocation1 + $0x8] sm:$0xff pattern:$0x73625140] }
  0x23   : > { %v4117_v6 = vld.sshfl [vmem:[#allocation1 + $0x10] sm:$0xff pattern:$0x73625140]  ;;  %v677_v19 = vsel %vm5392_vm0, %v668_v4, 0  ;;  %v679_v37 = vsel %vm5392_vm0, %v4115_v5, 0 }
  0x24   : > { %755 = vst [vmem:[#allocation1] ss:$4 sm:$0xff] %v4108_v0  ;;  %690 = vmatpush.bf16.msra.mxu3 %v677_v19  ;;  %v681_v38 = vsel %vm5392_vm0, %v4117_v6, 0 }
  0x27   : > { %3473 = vmatmul.msk.bf16.vlgmr.msra.gmra.mxu3 %vm5390_vm1, %v4140_v20 }
  0x2b   : > { %v756_v7 = vld.sshfl [vmem:[#allocation1] sm:$0xff pattern:$0x73625140]  ;;  %v758_v8 = vld.sshfl [vmem:[#allocation1 + $0x8] sm:$0xff pattern:$0x73625140] }
  0x2c   : > { %762 = vrot.lane.b32.xlu1 %v756_v7, %s4005_s25  ;;  %764 = vrot.lane.b32.xlu2 %v758_v8, %s4005_s25  ;;  %v760_v9 = vld.sshfl [vmem:[#allocation1 + $0x10] sm:$0xff pattern:$0x73625140] }
  0x2d   : > { %870 = vst [vmem:[#allocation1] ss:$4 sm:$0xff] %v4108_v0 }
  0x34   : > { %766 = vrot.lane.b32.xlu2 %v760_v9, %s4005_s25  ;;  %v875_v10 = vld.sshfl [vmem:[#allocation1 + $0x10] sm:$0xff pattern:$0x73625140]  ;;  %v871_v11 = vld.sshfl [vmem:[#allocation1] sm:$0xff pattern:$0x73625140] }
  0x35   : > { %881 = vrot.lane.b32.xlu1 %v875_v10, %s4006_s26  ;;  %v873_v12 = vld.sshfl [vmem:[#allocation1 + $0x8] sm:$0xff pattern:$0x73625140] }
  0x36   : > { %879 = vrot.lane.b32.xlu0 %v873_v12, %s4006_s26  ;;  %985 = vst [vmem:[#allocation1] ss:$4 sm:$0xff] %v4108_v0  ;;  %v3802_v12 = vld [vmem:[%s5376_s2 + $0x50] sm:$0xff] }
  0x37   : > { %3474 = vmatmul.msk.bf16.gmra.mxu3 %vm5390_vm1, %v4148_v22 }
  0x3c   : > { %877 = vrot.lane.b32.xlu2 %v871_v11, %s4006_s26 }
  0x3d   : > { %v988_v13 = vld.sshfl [vmem:[#allocation1 + $0x8] sm:$0xff pattern:$0x73625140]  ;;  %v990_v14 = vld.sshfl [vmem:[#allocation1 + $0x10] sm:$0xff pattern:$0x73625140] }
  0x3e   : > { %994 = vrot.lane.b32.xlu1 %v988_v13, %s4007_s27  ;;  %v986_v15 = vld.sshfl [vmem:[#allocation1] sm:$0xff pattern:$0x73625140]  ;;  %v4247_v13 = vld [vmem:[%s5376_s2 + $0x58] sm:$0xff] }
  0x3f   : > { %992 = vrot.lane.b32.xlu0 %v986_v15, %s4007_s27  ;;  %1100 = vst [vmem:[#allocation1] ss:$4 sm:$0xff] %v4108_v0 }
  0x44   : > { %996 = vrot.lane.b32.xlu2 %v990_v14, %s4007_s27 }
  0x46   : > { %v1103_v16 = vld.sshfl [vmem:[#allocation1 + $0x8] sm:$0xff pattern:$0x73625140]  ;;  %v1105_v17 = vld.sshfl [vmem:[#allocation1 + $0x10] sm:$0xff pattern:$0x73625140] }
  0x47   : > { %1109 = vrot.lane.b32.xlu1 %v1103_v16, %s4008_s28  ;;  %v1101_v18 = vld.sshfl [vmem:[#allocation1] sm:$0xff pattern:$0x73625140] }
  0x48   : > { %1107 = vrot.lane.b32.xlu0 %v1101_v18, %s4008_s28  ;;  %1215 = vst [vmem:[#allocation1] ss:$4 sm:$0xff] %v4108_v0 }
  0x4f   : > { %1111 = vrot.lane.b32.xlu1 %v1105_v17, %s4008_s28  ;;  %v1218_v21 = vld.sshfl [vmem:[#allocation1 + $0x8] sm:$0xff pattern:$0x73625140]  ;;  %v1216_v24 = vld.sshfl [vmem:[#allocation1] sm:$0xff pattern:$0x73625140] }
  0x50   : > { %1224 = vrot.lane.b32.xlu0 %v1218_v21, %s4009_s16  ;;  %1222 = vrot.lane.b32.xlu2 %v1216_v24, %s4009_s16  ;;  %v1220_v30 = vld.sshfl [vmem:[#allocation1 + $0x10] sm:$0xff pattern:$0x73625140]  ;;  %v3800_v21 = vld [vmem:[%s5376_s2 + $0x40] sm:$0xff] }
  0x51   : > { %1330 = vst [vmem:[#allocation1] ss:$4 sm:$0xff] %v4108_v0 }
  0x58   : > { %1226 = vrot.lane.b32.xlu2 %v1220_v30, %s4009_s16  ;;  %v1335_v42 = vld.sshfl [vmem:[#allocation1 + $0x10] sm:$0xff pattern:$0x73625140]  ;;  %v1333_v43 = vld.sshfl [vmem:[#allocation1 + $0x8] sm:$0xff pattern:$0x73625140] }
  0x59   : > { %1341 = vrot.lane.b32.xlu1 %v1335_v42, %s4010_s30  ;;  %1339 = vrot.lane.b32.xlu0 %v1333_v43, %s4010_s30  ;;  %v1331_v58 = vld.sshfl [vmem:[#allocation1] sm:$0xff pattern:$0x73625140] }
  0x5a   : > { %1445 = vst [vmem:[#allocation1] ss:$4 sm:$0xff] %v4108_v0 }
  0x60   : > { %1337 = vrot.lane.b32.xlu2 %v1331_v58, %s4010_s30 }
  0x61   : > { %v1448_v59 = vld.sshfl [vmem:[#allocation1 + $0x8] sm:$0xff pattern:$0x73625140]  ;;  %v1446_v60 = vld.sshfl [vmem:[#allocation1] sm:$0xff pattern:$0x73625140] }
  0x62   : > { %1454 = vrot.lane.b32.xlu1 %v1448_v59, %s5396_s17  ;;  %1452 = vrot.lane.b32.xlu0 %v1446_v60, %s5396_s17  ;;  %v1450_v11 = vld.sshfl [vmem:[#allocation1 + $0x10] sm:$0xff pattern:$0x73625140] }
  0x63   : > { %3154 = vst [vmem:[#allocation1] ss:$4 sm:$0xff] %v4108_v0 }
  0x68   : > { %1456 = vrot.lane.b32.xlu2 %v1450_v11, %s5396_s17  ;;  %s4013_s17 = smov 19  }
  0x86   : > { %v765_v23 = vpop.permute.xlu2 %764 }
  0x8c   : > { %v579_v25 = vpop.permute.xlu1 %578  ;;  %v575_v26 = vpop.permute.xlu0 %574 }
  0x8d   : > { %v598_v27 = vsel %vm5392_vm0, %v579_v25, 0 }
  0x8e   : > { %645 = vmatpush.bf16.msra.mxu2 %v598_v27  ;;  %v767_v29 = vpop.permute.xlu2 %766  ;;  %v3801_v27 = vld [vmem:[%s5376_s2 + $0x48] sm:$0xff] }
  0x8f   : > { %v770_v31 = vsel %vm768_vm2, %v765_v23, %v767_v29  ;;  %v784_v41 = vsel %vm5392_vm0, %v767_v29, 0  ;;  %v4282_v29 = vld [vmem:[%s5376_s2 + $0x68] sm:$0xff] }
  0x90   : > { %v781_v32 = vsel %vm5392_vm0, %v770_v31, 0 }
  0x91   : > { %3463 = vmatmul.msk.bf16.vlgmr.msra.gmra.mxu2 %vm5390_vm1, %v3794_v28  ;;  %812 = vmatpush.bf16.msrb.mxu3 %v781_v32 }
  0x94   : > { %v577_v33 = vpop.permute.xlu0 %576  ;;  %3493 = vmatmul.msk.bf16.vlgmr.msrb.gmra.mxu3 %vm5390_vm1, %v4165_v34 }
  0x95   : > { %v581_v35 = vsel %vm580_vm3, %v575_v26, %v577_v33  ;;  %v582_v36 = vsel %vm580_vm3, %v577_v33, %v579_v25  ;;  %v4268_v25 = vld [vmem:[%s5376_s2 + $0x60] sm:$0xff] }
  0x96   : > { %v592_v39 = vsel %vm5392_vm0, %v581_v35, 0  ;;  %v595_v40 = vsel %vm5392_vm0, %v582_v36, 0  ;;  %v878_v54 = vpop.permute.xlu2 %877 }
  0x97   : > { %607 = vmatpush.bf16.msra.mxu0 %v592_v39  ;;  %626 = vmatpush.bf16.msra.mxu1 %v595_v40 }
  0x9a   : > { %3459 = vmatmul.msk.bf16.vlgmr.msra.gmra.mxu0 %vm5390_vm1, %v3794_v28  ;;  %3461 = vmatmul.msk.bf16.vlgmr.msra.gmra.mxu1 %vm5390_vm1, %v3794_v28 }
  0x9b   : > { %709 = vmatpush.bf16.msrb.mxu0 %v679_v37  ;;  %728 = vmatpush.bf16.msrb.mxu1 %v681_v38  ;;  %v3806_v38 = vld [vmem:[%s5376_s2 + $0x70] sm:$0xff] }
  0x9e   : > { %v763_v45 = vpop.permute.xlu1 %762  ;;  %v997_v3 = vpop.permute.xlu2 %996 }
  0x9f   : > { %831 = vmatpush.bf16.msra.mxu0 %v784_v41  ;;  %v769_v46 = vsel %vm768_vm2, %v763_v45, %v765_v23  ;;  %v1014_v6 = vsel %vm5392_vm0, %v997_v3, 0 }
  0xa0   : > { %v778_v47 = vsel %vm5392_vm0, %v769_v46, 0 }
  0xa1   : > { %3464 = vmatmul.msk.bf16.gmra.mxu2 %vm5390_vm1, %v3795_v44 }
  0xa2   : > { %793 = vmatpush.bf16.msrb.mxu2 %v778_v47 }
  0xa4   : > { %3494 = vmatmul.msk.bf16.gmra.mxu3 %vm5390_vm1, %v4191_v48 }
  0xa7   : > { %v882_v49 = vpop.permute.xlu1 %881 }
  0xa8   : > { %v880_v50 = vpop.permute.xlu0 %879  ;;  %v899_v51 = vsel %vm5392_vm0, %v882_v49, 0 }
  0xa9   : > { %v885_v52 = vsel %vm883_vm4, %v880_v50, %v882_v49  ;;  %946 = vmatpush.bf16.msra.mxu3 %v899_v51  ;;  %v884_v55 = vsel %vm883_vm4, %v878_v54, %v880_v50  ;;  %v3807_v50 = vld [vmem:[%s5376_s2 + $0x78] sm:$0xff] }
  0xaa   : > { %3460 = vmatmul.msk.bf16.gmra.mxu0 %vm5390_vm1, %v3795_v44  ;;  %3462 = vmatmul.msk.bf16.gmra.mxu1 %vm5390_vm1, %v3795_v44  ;;  %v896_v53 = vsel %vm5392_vm0, %v885_v52, 0  ;;  %v893_v56 = vsel %vm5392_vm0, %v884_v55, 0  ;;  %v1223_v14 = vpop.permute.xlu2 %1222  ;;  %v692_v28 = vpop.f32.mrf.mxu3 }
  0xab   : > { %927 = vmatpush.bf16.msra.mxu2 %v896_v53  ;;  %908 = vmatpush.bf16.msra.mxu1 %v893_v56 }
  0xb0   : > { %v995_v61 = vpop.permute.xlu1 %994 }
  0xb1   : > { %3491 = vmatmul.msk.bf16.vlgmr.msrb.gmra.mxu2 %vm5390_vm1, %v4165_v34  ;;  %v993_v62 = vpop.permute.xlu0 %992  ;;  %v1000_v5 = vsel %vm5395_vm5, %v995_v61, %v997_v3 }
  0xb2   : > { %v999_v63 = vsel %vm5395_vm5, %v993_v62, %v995_v61  ;;  %v1011_v8 = vsel %vm5392_vm0, %v1000_v5, 0  ;;  %1061 = vmatpush.bf16.msrb.mxu2 %v1014_v6  ;;  %v4288_v30 = vpop.f32.mrf.mxu3 }
  0xb3   : > { %v1008_v2 = vsel %vm5392_vm0, %v999_v63, 0 }
  0xb4   : > { %3513 = vmatmul.msk.bf16.vlgmr.msra.gmra.mxu3 %vm5390_vm1, %v3798_v57 }
  0xb9   : > { %v1110_v4 = vpop.permute.xlu1 %1109 }
  0xba   : > { %3475 = vmatmul.msk.bf16.vlgmr.msrb.gmra.mxu0 %vm5390_vm1, %v4140_v20  ;;  %3477 = vmatmul.msk.bf16.vlgmr.msrb.gmra.mxu1 %vm5390_vm1, %v4140_v20  ;;  %v1108_v7 = vpop.permute.xlu0 %1107  ;;  %v697_v37 = vpop.f32.mrf.mxu3 }
  0xbb   : > { %1023 = vmatpush.bf16.msrb.mxu0 %v1008_v2  ;;  %v1114_v9 = vsel %vm1113_vm6, %v1108_v7, %v1110_v4  ;;  %1042 = vmatpush.bf16.msrb.mxu1 %v1011_v8 }
  0xbc   : > { %v1123_v10 = vsel %vm5392_vm0, %v1114_v9, 0 }
  0xbd   : > { %1138 = vmatpush.bf16.msrb.mxu3 %v1123_v10 }
  0xc1   : > { %3492 = vmatmul.msk.bf16.gmra.mxu2 %vm5390_vm1, %v4191_v48  ;;  %v1112_v15 = vpop.permute.xlu1 %1111 }
  0xc2   : > { %v1225_v0 = vpop.permute.xlu0 %1224  ;;  %v1115_v17 = vsel %vm1113_vm6, %v1110_v4, %v1112_v15  ;;  %v1129_v18 = vsel %vm5392_vm0, %v1112_v15, 0  ;;  %v4305_v46 = vpop.f32.mrf.mxu3 }
  0xc3   : > { %v1229_v16 = vsel %vm5394_vm7, %v1223_v14, %v1225_v0  ;;  %v1126_v20 = vsel %vm5392_vm0, %v1115_v17, 0 }
  0xc4   : > { %3514 = vmatmul.msk.bf16.gmra.mxu3 %vm5390_vm1, %v3799_v1  ;;  %v1238_v19 = vsel %vm5392_vm0, %v1229_v16, 0 }
  0xca   : > { %3476 = vmatmul.msk.bf16.gmra.mxu0 %vm5390_vm1, %v4148_v22  ;;  %3478 = vmatmul.msk.bf16.gmra.mxu1 %vm5390_vm1, %v4148_v22  ;;  %v1227_v22 = vpop.permute.xlu2 %1226 }
  0xcb   : > { %v1230_v23 = vsel %vm5394_vm7, %v1225_v0, %v1227_v22  ;;  %v1244_v26 = vsel %vm5392_vm0, %v1227_v22, 0  ;;  %v1342_v31 = vpop.permute.xlu1 %1341  ;;  %v1340_v32 = vpop.permute.xlu0 %1339  ;;  %vm1824_vm7 = vcmask 1043456  }
  0xcc   : > { %v1241_v24 = vsel %vm5392_vm0, %v1230_v23, 0  ;;  %v1359_v33 = vsel %vm5392_vm0, %v1342_v31, 0  ;;  %v3808_v23 = vld [vmem:[%s5376_s2 + $0x80] sm:$0xff] }
  0xcd   : > { %1272 = vmatpush.bf16.msra.mxu3 %v1241_v24 }
  0xd1   : > { %3511 = vmatmul.msk.bf16.vlgmr.msra.gmra.mxu2 %vm5390_vm1, %v3798_v57 }
  0xd2   : > { %1253 = vmatpush.bf16.msra.mxu2 %v1238_v19  ;;  %v1338_v39 = vpop.permute.xlu2 %1337 }
  0xd3   : > { %v1344_v40 = vsel %vm5393_vm8, %v1338_v39, %v1340_v32 }
  0xd4   : > { %3545 = vmatmul.msk.bf16.vlgmr.msrb.gmra.mxu3 %vm5390_vm1, %v3802_v12  ;;  %v1353_v43 = vsel %vm5392_vm0, %v1344_v40, 0  ;;  %v1455_v62 = vpop.permute.xlu1 %1454  ;;  %v1453_v2 = vpop.permute.xlu0 %1452 }
  0xd5   : > { %1406 = vmatpush.bf16.msrb.mxu3 %v1359_v33  ;;  %v1459_v4 = vsel %vm5391_vm9, %v1453_v2, %v1455_v62 }
  0xd6   : > { %v1468_v7 = vsel %vm5392_vm0, %v1459_v4, 0 }
  0xda   : > { %3495 = vmatmul.msk.bf16.vlgmr.msra.gmra.mxu0 %vm5390_vm1, %v4165_v34  ;;  %3509 = vmatmul.msk.bf16.vlgmr.msra.gmra.mxu1 %vm5390_vm1, %v3798_v57  ;;  %v1345_v34 = vsel %vm5393_vm8, %v1340_v32, %v1342_v31  ;;  %v1457_v56 = vpop.permute.xlu2 %1456 }
  0xdb   : > { %1176 = vmatpush.bf16.msra.mxu1 %v1129_v18  ;;  %1157 = vmatpush.bf16.msra.mxu0 %v1126_v20  ;;  %v1356_v35 = vsel %vm5392_vm0, %v1345_v34, 0  ;;  %v1474_v57 = vsel %vm5392_vm0, %v1457_v56, 0 }
  0xe1   : > { %3512 = vmatmul.msk.bf16.gmra.mxu2 %vm5390_vm1, %v3799_v1 }
  0xe4   : > { %3546 = vmatmul.msk.bf16.gmra.mxu3 %vm5390_vm1, %v4247_v13 }
  0xea   : > { %3496 = vmatmul.msk.bf16.gmra.mxu0 %vm5390_vm1, %v4191_v48  ;;  %3510 = vmatmul.msk.bf16.gmra.mxu1 %vm5390_vm1, %v3799_v1  ;;  %v1460_v1 = vsel %vm5391_vm9, %v1455_v62, %v1457_v56 }
  0xeb   : > { %v1471_v3 = vsel %vm5392_vm0, %v1460_v1, 0 }
  0xf1   : > { %3531 = vmatmul.msk.bf16.vlgmr.msrb.gmra.mxu2 %vm5390_vm1, %v3800_v21 }
  0xf2   : > { %1387 = vmatpush.bf16.msrb.mxu2 %v1356_v35 }
  0xf4   : > { %3565 = vmatmul.msk.bf16.vlgmr.msra.gmra.mxu3 %vm5390_vm1, %v4268_v25 }
  0xfa   : > { %3527 = vmatmul.msk.bf16.vlgmr.msrb.gmra.mxu0 %vm5390_vm1, %v3800_v21  ;;  %3529 = vmatmul.msk.bf16.vlgmr.msrb.gmra.mxu1 %vm5390_vm1, %v3800_v21 }
  0xfb   : > { %1291 = vmatpush.bf16.msrb.mxu0 %v1244_v26  ;;  %1368 = vmatpush.bf16.msrb.mxu1 %v1353_v43 }
 0x101   : > { %3532 = vmatmul.msk.bf16.gmra.mxu2 %vm5390_vm1, %v3801_v27 }
 0x104   : > { %3566 = vmatmul.msk.bf16.gmra.mxu3 %vm5390_vm1, %v4282_v29 }
 0x10a   : > { %3528 = vmatmul.msk.bf16.gmra.mxu0 %vm5390_vm1, %v3801_v27  ;;  %3530 = vmatmul.msk.bf16.gmra.mxu1 %vm5390_vm1, %v3801_v27 }
 0x111   : > { %3563 = vmatmul.msk.bf16.vlgmr.msra.gmra.mxu2 %vm5390_vm1, %v4268_v25 }
 0x112   : > { %1521 = vmatpush.bf16.msra.mxu2 %v1474_v57 }
 0x114   : > { %v647_v36 = vpop.f32.mrf.mxu2  ;;  %3585 = vmatmul.msk.bf16.vlgmr.msrb.gmra.mxu3 %vm5390_vm1, %v3806_v38 }
 0x117   : > { %v609_v41 = vpop.f32.mrf.mxu0  ;;  %v628_v42 = vpop.f32.mrf.mxu1 }
 0x118   : > { %v693_v44 = vadd.f32 %v692_v28, %v609_v41  ;;  %v814_v51 = vpop.f32.mrf.mxu3 }
 0x11a   : > { %3547 = vmatmul.msk.bf16.vlgmr.msra.gmra.mxu0 %vm5390_vm1, %v3802_v12  ;;  %3549 = vmatmul.msk.bf16.vlgmr.msra.gmra.mxu1 %vm5390_vm1, %v3802_v12 }
 0x11b   : > { %1502 = vmatpush.bf16.msra.mxu1 %v1471_v3  ;;  %1483 = vmatpush.bf16.msra.mxu0 %v1468_v7  ;;  %v1847_v7 = vld [vmem:[%s5378_s4] sm:$0xff] }
 0x11c   : > { %v4303_v45 = vpop.f32.mrf.mxu2 }
 0x11f   : > { %v4307_v47 = vpop.f32.mrf.mxu0  ;;  %v4309_v48 = vpop.f32.mrf.mxu1 }
 0x120   : > { %v4328_v60 = vpop.f32.mrf.mxu3 }
 0x121   : > { %3564 = vmatmul.msk.bf16.gmra.mxu2 %vm5390_vm1, %v4282_v29 }
 0x124   : > { %v652_v49 = vpop.f32.mrf.mxu2  ;;  %3586 = vmatmul.msk.bf16.gmra.mxu3 %vm5390_vm1, %v3807_v50 }
 0x127   : > { %v614_v52 = vpop.f32.mrf.mxu0  ;;  %v633_v53 = vpop.f32.mrf.mxu1 }
 0x128   : > { %v698_v54 = vadd.f32 %v697_v37, %v614_v52  ;;  %v819_v11 = vpop.f32.mrf.mxu3  ;;  %v3809_v37 = vld [vmem:[%s5376_s2 + $0x88] sm:$0xff] }
 0x12a   : > { %3548 = vmatmul.msk.bf16.gmra.mxu0 %vm5390_vm1, %v4247_v13  ;;  %3550 = vmatmul.msk.bf16.gmra.mxu1 %vm5390_vm1, %v4247_v13 }
 0x12c   : > { %v4321_v55 = vpop.f32.mrf.mxu2 }
 0x12f   : > { %v4324_v58 = vpop.f32.mrf.mxu0  ;;  %v4326_v59 = vpop.f32.mrf.mxu1 }
 0x130   : > { %v4345_v15 = vpop.f32.mrf.mxu3 }
 0x131   : > { %3583 = vmatmul.msk.bf16.vlgmr.msrb.gmra.mxu2 %vm5390_vm1, %v3806_v38 }
 0x134   : > { %v795_v61 = vpop.f32.mrf.mxu2 }
 0x135   : > { %v843_v63 = vadd.f32 %v795_v61, %v693_v44 }
 0x137   : > { %v711_v5 = vpop.f32.mrf.mxu0  ;;  %v730_v6 = vpop.f32.mrf.mxu1 }
 0x138   : > { %v712_v8 = vadd.f32 %v711_v5, %v628_v42  ;;  %v731_v9 = vadd.f32 %v730_v6, %v647_v36  ;;  %v948_v24 = vpop.f32.mrf.mxu3  ;;  %v4012_v6 = vmov 0  }
 0x139   : > { %3849 = vset.pattern.permute.xlu0 %v4012_v6  ;;  %3850 = vset.pattern.permute.xlu1 %v4012_v6 }
 0x13a   : > { %v844_v10 = vadd.f32 %v814_v51, %v712_v8  ;;  %3567 = vmatmul.msk.bf16.vlgmr.msrb.gmra.mxu0 %vm5390_vm1, %v4268_v25  ;;  %3581 = vmatmul.msk.bf16.vlgmr.msrb.gmra.mxu1 %vm5390_vm1, %v3806_v38 }
 0x13b   : > { %1850 = vperm.xlu0 %3849, %v1847_v7   ;;  %3851 = vset.pattern.permute.xlu2 %v4012_v6 }
 0x13c   : > { %v4338_v12 = vpop.f32.mrf.mxu2 }
 0x13f   : > { %v4340_v13 = vpop.f32.mrf.mxu0  ;;  %v4342_v14 = vpop.f32.mrf.mxu1 }
 0x140   : > { %v4360_v34 = vpop.f32.mrf.mxu3 }
 0x141   : > { %3584 = vmatmul.msk.bf16.gmra.mxu2 %vm5390_vm1, %v3807_v50 }
 0x144   : > { %v800_v0 = vpop.f32.mrf.mxu2 }
 0x145   : > { %v849_v16 = vadd.f32 %v800_v0, %v698_v54 }
 0x147   : > { %v716_v17 = vpop.f32.mrf.mxu0  ;;  %v735_v18 = vpop.f32.mrf.mxu1 }
 0x148   : > { %v717_v19 = vadd.f32 %v716_v17, %v633_v53  ;;  %v736_v20 = vadd.f32 %v735_v18, %v652_v49  ;;  %v953_v40 = vpop.f32.mrf.mxu3 }
 0x14a   : > { %v850_v21 = vadd.f32 %v819_v11, %v717_v19  ;;  %3568 = vmatmul.msk.bf16.gmra.mxu0 %vm5390_vm1, %v4282_v29  ;;  %3582 = vmatmul.msk.bf16.gmra.mxu1 %vm5390_vm1, %v3807_v50 }
 0x14c   : > { %v4350_v22 = vpop.f32.mrf.mxu2 }
 0x14f   : > { %v4355_v25 = vpop.f32.mrf.mxu0  ;;  %v4357_v26 = vpop.f32.mrf.mxu1 }
 0x150   : > { %v4378_v53 = vpop.f32.mrf.mxu3 }
 0x151   : > { %3603 = vmatmul.msk.bf16.vlgmr.msra.gmra.mxu2 %vm5390_vm1, %v3808_v23 }
 0x154   : > { %v929_v27 = vpop.f32.mrf.mxu2 }
 0x155   : > { %v959_v28 = vadd.f32 %v929_v27, %v844_v10  ;;  %v1856_v10 = vld [vmem:[%s5379_s5] sm:$0xff] }
 0x156   : > { %1859 = vperm.xlu1 %3850, %v1856_v10  }
 0x157   : > { %v833_v31 = vpop.f32.mrf.mxu0  ;;  %v910_v32 = vpop.f32.mrf.mxu1 }
 0x158   : > { %v845_v29 = vadd.f32 %v833_v31, %v731_v9  ;;  %v958_v33 = vadd.f32 %v910_v32, %v843_v63  ;;  %v1140_v62 = vpop.f32.mrf.mxu3 }
 0x15a   : > { %v960_v35 = vadd.f32 %v948_v24, %v845_v29  ;;  %3599 = vmatmul.msk.bf16.vlgmr.msra.gmra.mxu0 %vm5390_vm1, %v3808_v23  ;;  %3601 = vmatmul.msk.bf16.vlgmr.msra.gmra.mxu1 %vm5390_vm1, %v3808_v23 }
 0x15c   : > { %v4364_v36 = vpop.f32.mrf.mxu2 }
 0x15f   : > { %v4369_v38 = vpop.f32.mrf.mxu0  ;;  %v4371_v39 = vpop.f32.mrf.mxu1 }
 0x160   : > { %v4396_v11 = vpop.f32.mrf.mxu3 }
 0x161   : > { %3604 = vmatmul.msk.bf16.gmra.mxu2 %vm5390_vm1, %v3809_v37 }
 0x164   : > { %v934_v41 = vpop.f32.mrf.mxu2 }
 0x165   : > { %v965_v42 = vadd.f32 %v934_v41, %v850_v21 }
 0x167   : > { %v838_v43 = vpop.f32.mrf.mxu0  ;;  %v915_v44 = vpop.f32.mrf.mxu1 }
 0x168   : > { %v851_v49 = vadd.f32 %v838_v43, %v736_v20  ;;  %v964_v50 = vadd.f32 %v915_v44, %v849_v16  ;;  %v4402_v21 = vpop.f32.mrf.mxu3 }
 0x16a   : > { %v966_v51 = vadd.f32 %v953_v40, %v851_v49  ;;  %3600 = vmatmul.msk.bf16.gmra.mxu0 %vm5390_vm1, %v3809_v37  ;;  %3602 = vmatmul.msk.bf16.gmra.mxu1 %vm5390_vm1, %v3809_v37 }
 0x16c   : > { %v4376_v52 = vpop.f32.mrf.mxu2 }
 0x16f   : > { %v4380_v54 = vpop.f32.mrf.mxu0  ;;  %v4382_v56 = vpop.f32.mrf.mxu1 }
 0x174   : > { %v1063_v57 = vpop.f32.mrf.mxu2 }
 0x175   : > { %v1075_v61 = vadd.f32 %v1063_v57, %v960_v35 }
 0x177   : > { %v1025_v63 = vpop.f32.mrf.mxu0  ;;  %v1044_v1 = vpop.f32.mrf.mxu1 }
 0x178   : > { %v1073_v2 = vadd.f32 %v1025_v63, %v958_v33  ;;  %v1074_v3 = vadd.f32 %v1044_v1, %v959_v28  ;;  %v4410_v28 = vpop.f32.mrf.mxu3 }
 0x17a   : > { %v1188_v4 = vadd.f32 %v1140_v62, %v1073_v2 }
 0x17c   : > { %v4384_v5 = vpop.f32.mrf.mxu2 }
 0x17f   : > { %v4389_v8 = vpop.f32.mrf.mxu0  ;;  %v4391_v9 = vpop.f32.mrf.mxu1 }
 0x180   : > { %v1274_v41 = vpop.f32.mrf.mxu3 }
 0x184   : > { %v1068_v0 = vpop.f32.mrf.mxu2 }
 0x185   : > { %v1081_v16 = vadd.f32 %v1068_v0, %v966_v51 }
 0x187   : > { %v1030_v17 = vpop.f32.mrf.mxu0  ;;  %v1049_v18 = vpop.f32.mrf.mxu1 }
 0x188   : > { %v4398_v19 = vadd.f32 %v1030_v17, %v964_v50  ;;  %v4400_v20 = vadd.f32 %v1049_v18, %v965_v42  ;;  %v4418_v51 = vpop.f32.mrf.mxu3 }
 0x18c   : > { %v4404_v23 = vpop.f32.mrf.mxu2 }
 0x18f   : > { %v4406_v24 = vpop.f32.mrf.mxu0  ;;  %v4408_v27 = vpop.f32.mrf.mxu1 }
 0x194   : > { %v1255_v31 = vpop.f32.mrf.mxu2 }
 0x195   : > { %v1303_v32 = vadd.f32 %v1255_v31, %v1188_v4 }
 0x197   : > { %v1159_v29 = vpop.f32.mrf.mxu0  ;;  %v1178_v33 = vpop.f32.mrf.mxu1 }
 0x198   : > { %v1189_v35 = vadd.f32 %v1159_v29, %v1074_v3  ;;  %v1190_v37 = vadd.f32 %v1178_v33, %v1075_v61  ;;  %v4428_v61 = vpop.f32.mrf.mxu3  ;;  %v733_v29 = vadd.f32 %v4342_v14, %v4303_v45 }
 0x199   : > { %5400 = vst [vmem:[#allocation4_spill] sm:$0xff] %v4428_v61 }
 0x19c   : > { %v4412_v40 = vpop.f32.mrf.mxu2 }
 0x19f   : > { %v1161_v42 = vpop.f32.mrf.mxu0  ;;  %v1180_v43 = vpop.f32.mrf.mxu1 }
 0x1a0   : > { %v4430_v6 = vpop.f32.mrf.mxu3 }
 0x1a1   : > { %5401 = vst [vmem:[#allocation5_spill] sm:$0xff] %v4430_v6  ;;  %v714_v6 = vadd.f32 %v4340_v13, %v4309_v48  ;;  %v719_v48 = vadd.f32 %v4355_v25, %v4326_v59  ;;  %v738_v59 = vadd.f32 %v4357_v26, %v4321_v55 }
 0x1a3   : > { %v847_v14 = vadd.f32 %v4328_v60, %v714_v6 }
 0x1a4   : > { %v4414_v44 = vpop.f32.mrf.mxu2 }
 0x1a5   : > { %v962_v13 = vadd.f32 %v4364_v36, %v847_v14 }
 0x1a7   : > { %v4416_v49 = vpop.f32.mrf.mxu0  ;;  %v1183_v50 = vpop.f32.mrf.mxu1  ;;  %v1077_v60 = vadd.f32 %v4391_v9, %v962_v13 }
 0x1a8   : > { %v4420_v57 = vadd.f32 %v1183_v50, %v1081_v16  ;;  %v1408_v16 = vpop.f32.mrf.mxu3  ;;  %v848_v50 = vadd.f32 %v4369_v38, %v733_v29  ;;  %v5410_v13 = vld [vmem:[#allocation5_spill] sm:$0xff] }
 0x1aa   : > { %5398 = vst [vmem:[#allocation2_spill] sm:$0xff] %v4420_v57 }
 0x1ac   : > { %v4422_v62 = vpop.f32.mrf.mxu2 }
 0x1ad   : > { %5399 = vst [vmem:[#allocation3_spill] sm:$0xff] %v4422_v62 }
 0x1af   : > { %v4424_v63 = vpop.f32.mrf.mxu0  ;;  %v4426_v1 = vpop.f32.mrf.mxu1 }
 0x1b4   : > { %v1389_v2 = vpop.f32.mrf.mxu2 }
 0x1b7   : > { %v1293_v3 = vpop.f32.mrf.mxu0  ;;  %v1370_v4 = vpop.f32.mrf.mxu1 }
 0x1b8   : > { %v1305_v62 = vadd.f32 %v1293_v3, %v1190_v37  ;;  %v1304_v3 = vadd.f32 %v1274_v41, %v1189_v35  ;;  %v853_v41 = vadd.f32 %v4345_v15, %v719_v48 }
 0x1ba   : > { %v1420_v29 = vadd.f32 %v1408_v16, %v1305_v62  ;;  %v1418_v62 = vadd.f32 %v1370_v4, %v1303_v32  ;;  %v968_v32 = vadd.f32 %v4376_v52, %v853_v41 }
 0x1bc   : > { %v4432_v7 = vpop.f32.mrf.mxu2  ;;  %v1083_v15 = vadd.f32 %v4408_v27, %v968_v32  ;;  %v1194_v27 = vadd.f32 %v4402_v21, %v4398_v19  ;;  %v5408_v21 = vld [vmem:[#allocation4_spill] sm:$0xff] }
 0x1bf   : > { %v1295_v10 = vpop.f32.mrf.mxu0  ;;  %v1372_v0 = vpop.f32.mrf.mxu1 }
 0x1c4   : > { %v4434_v17 = vpop.f32.mrf.mxu2 }
 0x1c5   : > { %5402 = vst [vmem:[#allocation6_spill] sm:$0xff] %v4434_v17  ;;  %v695_v17 = vadd.f32 %v4288_v30, %v4307_v47  ;;  %v700_v30 = vadd.f32 %v4305_v46, %v4324_v58  ;;  %v1192_v46 = vadd.f32 %v1161_v42, %v1077_v60 }
 0x1c7   : > { %v4436_v18 = vpop.f32.mrf.mxu0  ;;  %v4438_v31 = vpop.f32.mrf.mxu1  ;;  %v846_v45 = vadd.f32 %v4338_v12, %v695_v17  ;;  %v852_v6 = vadd.f32 %v4350_v22, %v700_v30  ;;  %v1198_v17 = vadd.f32 %v4424_v63, %v1083_v15 }
 0x1c8   : > { %5403 = vst [vmem:[#allocation7_spill] sm:$0xff] %v4436_v18  ;;  %v1410_v18 = vpop.f32.mrf.mxu3 }
 0x1c9   : > { %5404 = vst [vmem:[#allocation8_spill] sm:$0xff] %v4438_v31  ;;  %v963_v31 = vadd.f32 %v4360_v34, %v848_v50  ;;  %v961_v37 = vadd.f32 %v4371_v39, %v846_v45  ;;  %v967_v9 = vadd.f32 %v4382_v56, %v852_v6 }
 0x1cb   : > { %v1078_v38 = vadd.f32 %v4384_v5, %v963_v31  ;;  %v1076_v12 = vadd.f32 %v4389_v8, %v961_v37  ;;  %v1419_v5 = vadd.f32 %v1389_v2, %v1304_v3  ;;  %v854_v8 = vadd.f32 %v4380_v54, %v738_v59 }
 0x1cc   : > { %v4442_v33 = vpop.f32.mrf.mxu2  ;;  %v1082_v2 = vadd.f32 %v4406_v24, %v967_v9  ;;  %v1313_v37 = vadd.f32 %v5410_v13, %v1198_v17 }
 0x1cd   : > { %v1193_v47 = vadd.f32 %v1180_v43, %v1078_v38  ;;  %v1191_v22 = vadd.f32 %v4396_v11, %v1076_v12  ;;  %v969_v56 = vadd.f32 %v4378_v53, %v854_v8  ;;  %v1195_v11 = vadd.f32 %v4416_v49, %v4400_v20 }
 0x1ce   : > { %v1197_v53 = vadd.f32 %v4410_v28, %v1082_v2  ;;  %v1309_v49 = vadd.f32 %v4414_v44, %v1194_v27 }
 0x1cf   : > { %v4447_v61 = vpop.f32.mrf.mxu0  ;;  %v4449_v57 = vpop.f32.mrf.mxu1  ;;  %v1308_v25 = vadd.f32 %v1295_v10, %v1193_v47  ;;  %v1306_v42 = vadd.f32 %v4412_v40, %v1191_v22  ;;  %v1307_v10 = vadd.f32 %v4418_v51, %v1192_v46  ;;  %v1084_v40 = vadd.f32 %v4404_v23, %v969_v56 }
 0x1d0   : > { %5405 = vst [vmem:[#allocation9_spill] sm:$0xff] %v4449_v57  ;;  %v1310_v23 = vadd.f32 %v5408_v21, %v1195_v11 }
 0x1d1   : > { %v1423_v4 = vadd.f32 %v1410_v18, %v1308_v25  ;;  %v1422_v24 = vadd.f32 %v4432_v7, %v1307_v10  ;;  %v1421_v16 = vadd.f32 %v1372_v0, %v1306_v42  ;;  %v1199_v63 = vadd.f32 %v4426_v1, %v1084_v40  ;;  %v5406_v7 = vld [vmem:[#allocation2_spill] sm:$0xff]  ;;  %v5407_v0 = vld [vmem:[#allocation7_spill] sm:$0xff] }
 0x1d2   : > { %v1311_v38 = vadd.f32 %v5407_v0, %v5406_v7 }
 0x1d3   : > { %v1314_v3 = vadd.f32 %v4447_v61, %v1199_v63  ;;  %v5412_v61 = vld [vmem:[#allocation8_spill] sm:$0xff] }
 0x1d4   : > { %v1523_v57 = vpop.f32.mrf.mxu2  ;;  %v1424_v25 = vadd.f32 %v5412_v61, %v1309_v49 }
 0x1d5   : > { %v1535_v34 = vadd.f32 %v1523_v57, %v1420_v29  ;;  %v1413_v57 = vpop.f32.mrf.mxu3  ;;  %v5409_v29 = vld [vmem:[#allocation3_spill] sm:$0xff] }
 0x1d6   : > { %v1312_v48 = vadd.f32 %v5409_v29, %v1197_v53  ;;  %v1426_v6 = vadd.f32 %v1413_v57, %v1311_v38 }
 0x1d7   : > { %v3607_v36 = vmul.f32 -1.442695, %v1535_v34  ;;  %v1485_v39 = vpop.f32.mrf.mxu0  ;;  %v1504_v35 = vpop.f32.mrf.mxu1 }
 0x1d8   : > { %v1533_v58 = vadd.f32 %v1485_v39, %v1418_v62  ;;  %v1534_v43 = vadd.f32 %v1504_v35, %v1419_v5  ;;  %v5411_v5 = vld [vmem:[#allocation6_spill] sm:$0xff]  ;;  %v5413_v39 = vld [vmem:[#allocation9_spill] sm:$0xff] }
 0x1d9   : > { %3852 = vpow2.f32 %v3607_v36  ;;  %v1425_v62 = vadd.f32 %v5411_v5, %v1310_v23  ;;  %v4507_v36 = vadd.f32 %v4442_v33, %v1313_v37  ;;  %v4510_v35 = vadd.f32 %v5413_v39, %v1312_v48 }
 0x1da   : > { %v3605_v55 = vmul.f32 -1.442695, %v1533_v58  ;;  %v3606_v26 = vmul.f32 -1.442695, %v1534_v43 }
 0x1dc   : > { %3854 = vpow2.f32 %v3605_v55  ;;  %v1525_v54 = vpop.f32.mrf.mxu2 }
 0x1dd   : > { %3856 = vpow2.f32 %v3606_v26  ;;  %v1538_v52 = vadd.f32 %v1525_v54, %v1423_v4  ;;  %v1415_v1 = vpop.f32.mrf.mxu3 }
 0x1de   : > { %v1429_v46 = vadd.f32 %v1415_v1, %v1314_v3 }
 0x1df   : > { %v3853_v18 = vpop.eup %3852  ;;  %v3610_v51 = vmul.f32 -1.442695, %v1538_v52  ;;  %v1487_v31 = vpop.f32.mrf.mxu0 }
 0x1e0   : > { %v1506_v50 = vpop.f32.mrf.mxu1  ;;  %v4486_v45 = vadd.f32 1.0, %v3853_v18  ;;  %v1536_v14 = vadd.f32 %v1487_v31, %v1421_v16 }
 0x1e1   : > { %v1537_v20 = vadd.f32 %v1506_v50, %v1422_v24  ;;  %3858 = vpow2.f32 %v3610_v51 }
 0x1e2   : > { %v3855_v19 = vpop.eup %3854  ;;  %3860 = vrcp.f32 %v4486_v45  ;;  %v3608_v44 = vmul.f32 -1.442695, %v1536_v14  ;;  %v1598_v47 = vand.u32 2147483648, %v4486_v45  ;;  %v1596_v59 = vand.u32 2147483647, %v4486_v45 }
 0x1e3   : > { %v3857_v28 = vpop.eup %3856  ;;  %v4497_v30 = vadd.f32 1.0, %v3855_v19  ;;  %3862 = vtanh.f32 %v1538_v52  ;;  %v3609_v12 = vmul.f32 -1.442695, %v1537_v20  ;;  %vm1592_vm10 = vweird.f32 %v4486_v45 }
 0x1e4   : > { %v4500_v34 = vadd.f32 1.0, %v3857_v28  ;;  %3864 = vtanh.f32 %v1536_v14  ;;  %v1528_v60 = vpop.f32.mrf.mxu2  ;;  %v1599_v32 = vor.u32 1.1754944e-38, %v1598_v47  ;;  %vm4518_vm11 = vcmp.eq.f32.partialorder %v1596_v59, 8.507059e+37 }
 0x1e5   : > { %3866 = vrcp.f32 %v4497_v30  ;;  %v1541_v58 = vadd.f32 %v1528_v60, %v1426_v6  ;;  %v1566_v33 = vand.u32 2147483647, %v4497_v30  ;;  %vm1562_vm12 = vweird.f32 %v4497_v30 }
 0x1e6   : > { %3868 = vrcp.f32 %v4500_v34  ;;  %v1568_v42 = vand.u32 2147483648, %v4497_v30  ;;  %vm1577_vm13 = vweird.f32 %v4500_v34  ;;  %v1583_v52 = vand.u32 2147483648, %v4500_v34 }
 0x1e7   : > { %v3859_v41 = vpop.eup %3858  ;;  %3870 = vpow2.f32 %v3608_v44  ;;  %v1490_v43 = vpop.f32.mrf.mxu0  ;;  %v3613_v2 = vmul.f32 -1.442695, %v1541_v58  ;;  %vm4530_vm14 = vcmp.eq.f32.partialorder %v1566_v33, 8.507059e+37  ;;  %v1581_v18 = vand.u32 2147483647, %v4500_v34 }
 0x1e8   : > { %v1509_v8 = vpop.f32.mrf.mxu1  ;;  %v3861_v9 = vpop.eup %3860  ;;  %v4514_v22 = vadd.f32 1.0, %v3859_v41  ;;  %3872 = vpow2.f32 %v3609_v12  ;;  %v1539_v4 = vadd.f32 %v1490_v43, %v1424_v25  ;;  %v1569_v38 = vor.u32 1.1754944e-38, %v1568_v42 }
 0x1e9   : > { %v3863_v57 = vpop.eup %3862  ;;  %v1588_v55 = vmul.f32 %v3861_v9, %v4486_v45  ;;  %3874 = vtanh.f32 %v1537_v20  ;;  %v1540_v10 = vadd.f32 %v1509_v8, %v1425_v62  ;;  %vm1593_vm15 = vweird.f32 %v3861_v9 }
 0x1ea   : > { %v4522_v15 = vpop.eup %3864  ;;  %3876 = vrcp.f32 %v4514_v22  ;;  %v3611_v11 = vmul.f32 -1.442695, %v1539_v4  ;;  %vm1594_vm1 = vmor %vm1592_vm10, %vm1593_vm15  ;;  %vm4548_vm8 = vcmp.eq.f32.partialorder %v1581_v18, 8.507059e+37  ;;  %v1658_v60 = vand.u32 2147483648, %v4514_v22 }
 0x1eb   : > { %v3867_v54 = vpop.eup %3866  ;;  %v1589_v56 = vsub.f32 1.0, %v1588_v55  ;;  %3878 = vpow2.f32 %v3613_v2  ;;  %v3612_v27 = vmul.f32 -1.442695, %v1540_v10  ;;  %v1584_v59 = vor.u32 1.1754944e-38, %v1583_v52 }
 0x1ec   : > { %v3869_v17 = vpop.eup %3868  ;;  %v1558_v24 = vmul.f32 %v3867_v54, %v4497_v30  ;;  %v1530_v40 = vpop.f32.mrf.mxu2  ;;  %3880 = vpow2.f32 %v3611_v11  ;;  %vm1563_vm9 = vweird.f32 %v3867_v54  ;;  %v1656_v41 = vand.u32 2147483647, %v4514_v22 }
 0x1ed   : > { %v3871_v51 = vpop.eup %3870  ;;  %v1590_v31 = vmul.f32 %v3861_v9, %v1589_v56  ;;  %v1573_v50 = vmul.f32 %v3869_v17, %v4500_v34  ;;  %3882 = vpow2.f32 %v3612_v27  ;;  %v1544_v49 = vadd.f32 %v1530_v40, %v1429_v46  ;;  %vm1564_vm10 = vmor %vm1562_vm12, %vm1563_vm9 }
 0x1ee   : > { %v3873_v53 = vpop.eup %3872  ;;  %v1559_v14 = vsub.f32 1.0, %v1558_v24  ;;  %v4536_v20 = vadd.f32 1.0, %v3871_v51  ;;  %vm1578_vm0 = vweird.f32 %v3869_v17  ;;  %v4588_v33 = vor.u32 1.1754944e-38, %v1658_v60 }
 0x1ef   : > { %v3875_v63 = vpop.eup %3874  ;;  %v1574_v7 = vsub.f32 1.0, %v1573_v50  ;;  %v1591_v0 = vadd.f32 %v3861_v9, %v1590_v31  ;;  %v4538_v19 = vadd.f32 1.0, %v3873_v53  ;;  %v3616_v29 = vmul.f32 -1.442695, %v1544_v49  ;;  %v1492_v39 = vpop.f32.mrf.mxu0 }
 0x1f0   : > { %v4540_v21 = vpop.eup %3876  ;;  %v1560_v23 = vmul.f32 %v3867_v54, %v1559_v14  ;;  %3884 = vrcp.f32 %v4536_v20  ;;  %v1542_v26 = vadd.f32 %v1492_v39, %v4510_v35  ;;  %v1511_v42 = vpop.f32.mrf.mxu1  ;;  %vm1622_vm5 = vweird.f32 %v4536_v20 }
 0x1f1   : > { %v3879_v48 = vpop.eup %3878  ;;  %v1575_v13 = vmul.f32 %v3869_v17, %v1574_v7  ;;  %v1595_v37 = vsel %vm1594_vm1, %v3861_v9, %v1591_v0  ;;  %3886 = vrcp.f32 %v4538_v19  ;;  %v4561_v62 = vmul.f32 %v4540_v21, %v4514_v22  ;;  %vm1579_vm1 = vmor %vm1577_vm13, %vm1578_vm0 }
 0x1f2   : > { %v1600_v28 = vsel %vm4518_vm11, %v1599_v32, %v1595_v37  ;;  %v1561_v3 = vadd.f32 %v3867_v54, %v1560_v23  ;;  %v4552_v45 = vadd.f32 1.0, %v3879_v48  ;;  %v3881_v1 = vpop.eup %3880  ;;  %3888 = vpow2.f32 %v3616_v29 }
 0x1f3   : > { %v4554_v47 = vmul.f32 %v3863_v57, %v1600_v28  ;;  %v1576_v12 = vadd.f32 %v3869_v17, %v1575_v13  ;;  %v3883_v5 = vpop.eup %3882  ;;  %v4569_v25 = vadd.f32 1.0, %v3881_v1  ;;  %v1649_v57 = vsub.f32 1.0, %v4561_v62 }
 0x1f4   : > { %v1565_v6 = vsel %vm1564_vm10, %v3867_v54, %v1561_v3  ;;  %3890 = vrcp.f32 %v4552_v45  ;;  %v4579_v43 = vadd.f32 1.0, %v3883_v5  ;;  %v1731_v55 = vand.u32 2147483647, %v4552_v45 }
 0x1f5   : > { %v1570_v30 = vsel %vm4530_vm14, %v1569_v38, %v1565_v6  ;;  %v1580_v61 = vsel %vm1579_vm1, %v3869_v17, %v1576_v12  ;;  %3892 = vtanh.f32 %v1544_v49  ;;  %vm1727_vm0 = vweird.f32 %v4552_v45 }
 0x1f6   : > { %v4572_v46 = vpop.eup %3884  ;;  %v4575_v58 = vmul.f32 %v4522_v15, %v1570_v30  ;;  %v1585_v34 = vsel %vm4548_vm8, %v1584_v59, %v1580_v61  ;;  %3894 = vrcp.f32 %v4569_v25  ;;  %v1733_v15 = vand.u32 2147483648, %v4552_v45 }
 0x1f7   : > { %v4581_v8 = vpop.eup %3886  ;;  %v1618_v9 = vmul.f32 %v4572_v46, %v4536_v20  ;;  %v4585_v32 = vmul.f32 %v3875_v63, %v1585_v34  ;;  %3896 = vtanh.f32 %v4554_v47  ;;  %v1703_v56 = vand.u32 2147483648, %v4569_v25 }
 0x1f8   : > { %v3889_v2 = vpop.eup %3888  ;;  %3898 = vtanh.f32 %v4575_v58  ;;  %v4597_v4 = vmul.f32 %v4581_v8, %v4538_v19  ;;  %vm1697_vm8 = vweird.f32 %v4569_v25  ;;  %v1718_v11 = vand.u32 2147483648, %v4579_v43 }
 0x1f9   : > { %v1619_v54 = vsub.f32 1.0, %v1618_v9  ;;  %3900 = vrcp.f32 %v4579_v43  ;;  %v4603_v52 = vadd.f32 1.0, %v3889_v2  ;;  %v1701_v17 = vand.u32 2147483647, %v4569_v25 }
 0x1fa   : > { %v3891_v10 = vpop.eup %3890  ;;  %3902 = vtanh.f32 %v4585_v32  ;;  %vm4610_vm9 = vcmp.eq.f32.partialorder %v1731_v55, 8.507059e+37  ;;  %v3614_v18 = vmul.f32 -1.442695, %v1542_v26  ;;  %v1543_v27 = vadd.f32 %v1511_v42, %v4507_v36 }
 0x1fb   : > { %v1723_v35 = vmul.f32 %v3891_v10, %v4552_v45  ;;  %v3893_v24 = vpop.eup %3892  ;;  %3904 = vrcp.f32 %v4603_v52  ;;  %v1634_v51 = vsub.f32 1.0, %v4597_v4  ;;  %v1734_v50 = vor.u32 1.1754944e-38, %v1733_v15 }
 0x1fc   : > { %v3895_v40 = vpop.eup %3894  ;;  %v1716_v53 = vand.u32 2147483647, %v4579_v43  ;;  %vm1728_vm11 = vweird.f32 %v3891_v10  ;;  %v1704_v63 = vor.u32 1.1754944e-38, %v1703_v56  ;;  %3906 = vpow2.f32 %v3614_v18 }
 0x1fd   : > { %v1724_v31 = vsub.f32 1.0, %v1723_v35  ;;  %v4618_v14 = vpop.eup %3896  ;;  %v1693_v49 = vmul.f32 %v3895_v40, %v4569_v25  ;;  %vm1712_vm12 = vweird.f32 %v4579_v43  ;;  %vm4624_vm13 = vcmp.eq.f32.partialorder %v1701_v17, 8.507059e+37  ;;  %vm1729_vm10 = vmor %vm1727_vm0, %vm1728_vm11 }
 0x1fe   : > { %v4621_v7 = vpop.eup %3898  ;;  %3908 = vtanh.f32 %v1542_v26  ;;  %v3615_v38 = vmul.f32 -1.442695, %v1543_v27  ;;  %vm1698_vm14 = vweird.f32 %v3895_v40  ;;  %v1719_v48 = vor.u32 1.1754944e-38, %v1718_v11 }
 0x1ff   : > { %v1725_v0 = vmul.f32 %v3891_v10, %v1724_v31  ;;  %v3901_v23 = vpop.eup %3900  ;;  %v1694_v29 = vsub.f32 1.0, %v1693_v49  ;;  %v1620_v13 = vmul.f32 %v4572_v46, %v1619_v54  ;;  %vm4632_vm15 = vcmp.eq.f32.partialorder %v1716_v53, 8.507059e+37  ;;  %vm4650_vm0 = vmor %vm1697_vm8, %vm1698_vm14  ;;  %v3813_v54 = vld [vmem:[%s5377_s3 + $0x18] sm:$0xff] }
 0x200   : > { %v4629_v37 = vpop.eup %3902  ;;  %v1708_v28 = vmul.f32 %v3901_v23, %v4579_v43  ;;  %3910 = vpow2.f32 %v3615_v38  ;;  %vm1623_vm1 = vweird.f32 %v4572_v46  ;;  %v1626_v5 = vand.u32 2147483647, %v4536_v20 }
 0x201   : > { %v1726_v3 = vadd.f32 %v3891_v10, %v1725_v0  ;;  %v4636_v1 = vpop.eup %3904  ;;  %v1695_v12 = vmul.f32 %v3895_v40, %v1694_v29  ;;  %v1621_v60 = vadd.f32 %v4572_v46, %v1620_v13  ;;  %3912 = vtanh.f32 %v1543_v27  ;;  %vm4666_vm8 = vmor %vm1622_vm5, %vm1623_vm1 }
 0x202   : > { %v1709_v6 = vsub.f32 1.0, %v1708_v28  ;;  %v1628_v30 = vand.u32 2147483648, %v4536_v20  ;;  %v3907_v61 = vpop.eup %3906  ;;  %vm1713_vm11 = vweird.f32 %v3901_v23  ;;  %v4658_v26 = vmul.f32 %v4636_v1, %v4603_v52 }
 0x203   : > { %v1730_v59 = vsel %vm1729_vm10, %v3891_v10, %v1726_v3  ;;  %v1696_v34 = vadd.f32 %v3895_v40, %v1695_v12  ;;  %vm1652_vm10 = vweird.f32 %v4514_v22  ;;  %v4662_v4 = vadd.f32 1.0, %v3907_v61  ;;  %vm1714_vm5 = vmor %vm1712_vm12, %vm1713_vm11 }
 0x204   : > { %v1735_v39 = vsel %vm4610_vm9, %v1734_v50, %v1730_v59  ;;  %v3909_v9 = vpop.eup %3908  ;;  %v1710_v55 = vmul.f32 %v3901_v23, %v1709_v6  ;;  %v1625_v15 = vsel %vm4666_vm8, %v4572_v46, %v1621_v60  ;;  %vm4675_vm9 = vcmp.eq.f32.partialorder %v1626_v5, 8.507059e+37 }
 0x205   : > { %v4660_v2 = vmul.f32 %v3893_v24, %v1735_v39  ;;  %v1700_v20 = vsel %vm4650_vm0, %v3895_v40, %v1696_v34  ;;  %v1635_v10 = vmul.f32 %v4581_v8, %v1634_v51  ;;  %vm4682_vm14 = vcmp.eq.f32.partialorder %v1656_v41, 8.507059e+37 }
 0x206   : > { %v3911_v56 = vpop.eup %3910  ;;  %v1705_v35 = vsel %vm4624_vm13, %v1704_v63, %v1700_v20  ;;  %3914 = vrcp.f32 %v4662_v4  ;;  %v1711_v11 = vadd.f32 %v3901_v23, %v1710_v55  ;;  %v1629_v46 = vor.u32 1.1754944e-38, %v1628_v30 }
 0x207   : > { %v1797_v17 = vmul.f32 %v3909_v9, %v1705_v35  ;;  %v4692_v24 = vadd.f32 1.0, %v3911_v56  ;;  %v1636_v41 = vadd.f32 %v4581_v8, %v1635_v10  ;;  %vm1637_vm1 = vweird.f32 %v4538_v19  ;;  %v3913_v16 = vpop.eup %3912 }
 0x208   : > { %v1715_v18 = vsel %vm1714_vm5, %v3901_v23, %v1711_v11  ;;  %vm1638_vm13 = vweird.f32 %v4581_v8  ;;  %v1641_v27 = vand.u32 2147483647, %v4538_v19  ;;  %v1643_v40 = vand.u32 2147483648, %v4538_v19 }
 0x209   : > { %v1831_v51 = vrot.slane %v1797_v17, 4  ;;  %v1720_v43 = vsel %vm4632_vm15, %v1719_v48, %v1715_v18  ;;  %3916 = vrcp.f32 %v4692_v24  ;;  %vm4705_vm12 = vmor %vm1637_vm1, %vm1638_vm13  ;;  %v1650_v50 = vmul.f32 %v4540_v21, %v1649_v57 }
 0x20a   : > { %v1798_v53 = vmul.f32 %v3913_v16, %v1720_v43  ;;  %v1630_v49 = vsel %vm4675_vm9, %v1629_v46, %v1625_v15  ;;  %v1640_v19 = vsel %vm4705_vm12, %v4581_v8, %v1636_v41  ;;  %v1644_v63 = vor.u32 1.1754944e-38, %v1643_v40 }
 0x20b   : > { %v1837_v0 = vsel %vm1824_vm7, %v4575_v58, %v1831_v51  ;;  %v1651_v62 = vadd.f32 %v4540_v21, %v1650_v50  ;;  %vm1653_vm15 = vweird.f32 %v4540_v21  ;;  %v1671_v57 = vrot.slane %v4621_v7, 4  ;;  %v1851_v51 = vpop.permute.xlu0 %1850 }
 0x20c   : > { %v3915_v36 = vpop.eup %3914  ;;  %v1832_v38 = vrot.slane %v1798_v53, 4  ;;  %vm1642_vm0 = vcmp.eq.f32.partialorder %v1641_v27, 8.507059e+37  ;;  %vm1654_vm11 = vmor %vm1652_vm10, %vm1653_vm15  ;;  %v1672_v58 = vrot.slane %v4629_v37, 4  ;;  %v1673_v8 = vrot.slane %v4618_v14, 4  ;;  %1844 = vst [vmem:[%s4723_s29] sm:$0xff] %v1837_v0  ;;  %v1860_v0 = vpop.permute.xlu1 %1859 }
 0x20d   : > { %v1753_v23 = vmul.f32 %v3915_v36, %v4662_v4  ;;  %v1645_v29 = vsel %vm1642_vm0, %v1644_v63, %v1640_v19  ;;  %v1655_v48 = vsel %vm1654_vm11, %v4540_v21, %v1651_v62  ;;  %v4735_v13 = vmul.f32 %v1671_v57, %v1630_v49  ;;  %v546_v63 = vld [vmem:[%s5375_s1] sm:$0x7] }
 0x20e   : > { %v1838_v7 = vsel %vm1824_vm7, %v4585_v32, %v1832_v38  ;;  %v1660_v22 = vsel %vm4682_vm14, %v4588_v33, %v1655_v48  ;;  %v4742_v28 = vmul.f32 %v1672_v58, %v1645_v29  ;;  %v1784_v44 = vsub.f32 1.0, %v4658_v26 }
 0x20f   : > { %v3917_v37 = vpop.eup %3916  ;;  %v1754_v3 = vsub.f32 1.0, %v1753_v23  ;;  %v4744_v14 = vmul.f32 %v1673_v8, %v1660_v22  ;;  %1845 = vst [vmem:[%s4723_s29 + $0x8] sm:$0xff] %v1838_v7  ;;  %v1833_v5 = vrot.slane %v4660_v2, 4  ;;  %3918 = vtanh.f32 %v1797_v17 }
 0x210   : > { %v1768_v21 = vmul.f32 %v3917_v37, %v4692_v24  ;;  %v1785_v6 = vmul.f32 %v4636_v1, %v1784_v44  ;;  %vm1842_vm10 = vcmask 556032   ;;  %vm1758_vm8 = vweird.f32 %v3915_v36 }
 0x211   : > { %v1755_v12 = vmul.f32 %v3915_v36, %v1754_v3  ;;  %3920 = vtanh.f32 %v1798_v53  ;;  %vm1757_vm9 = vweird.f32 %v4662_v4  ;;  %v1763_v59 = vand.u32 2147483648, %v4662_v4 }
 0x212   : > { %v1769_v60 = vsub.f32 1.0, %v1768_v21  ;;  %vm1773_vm14 = vweird.f32 %v3917_v37  ;;  %v1761_v61 = vand.u32 2147483647, %v4662_v4  ;;  %v1778_v39 = vand.u32 2147483648, %v4692_v24  ;;  %vm4758_vm5 = vmor %vm1757_vm9, %vm1758_vm8 }
 0x213   : > { %v1756_v33 = vadd.f32 %v3915_v36, %v1755_v12  ;;  %3922 = vtanh.f32 %v4660_v2  ;;  %v1839_v34 = vsel %vm1824_vm7, %v4554_v47, %v1833_v5  ;;  %vm1772_vm1 = vweird.f32 %v4692_v24  ;;  %v3157_v2 = vld.sshfl [vmem:[#allocation1 + $0x8] sm:$0xff pattern:$0x73625140] }
 0x214   : > { %v1770_v32 = vmul.f32 %v3917_v37, %v1769_v60  ;;  %v1776_v9 = vand.u32 2147483647, %v4692_v24  ;;  %v1786_v55 = vadd.f32 %v4636_v1, %v1785_v6  ;;  %vm1788_vm13 = vweird.f32 %v4636_v1  ;;  %1846 = vst.msk [vmem:[%s4723_s29 + $0x10] sm:$0xff] %vm1842_vm10, %v1839_v34  ;;  %vm4770_vm12 = vmor %vm1772_vm1, %vm1773_vm14 }
 0x215   : > { %v1760_v26 = vsel %vm4758_vm5, %v3915_v36, %v1756_v33  ;;  %v1793_v47 = vand.u32 2147483648, %v4603_v52  ;;  %v3919_v4 = vpop.eup %3918  ;;  %v1764_v25 = vor.u32 1.1754944e-38, %v1763_v59  ;;  %vm1787_vm15 = vweird.f32 %v4603_v52 }
 0x216   : > { %v1771_v30 = vadd.f32 %v3917_v37, %v1770_v32  ;;  %v1791_v15 = vand.u32 2147483647, %v4603_v52  ;;  %vm1762_vm0 = vcmp.eq.f32.partialorder %v1761_v61, 8.507059e+37  ;;  %v1779_v10 = vor.u32 1.1754944e-38, %v1778_v39  ;;  %vm4779_vm11 = vmor %vm1787_vm15, %vm1788_vm13 }
 0x217   : > { %v3921_v42 = vpop.eup %3920  ;;  %v1806_v56 = vrot.slane %v3919_v4, 4  ;;  %v1765_v35 = vsel %vm1762_vm0, %v1764_v25, %v1760_v26  ;;  %vm1777_vm8 = vcmp.eq.f32.partialorder %v1776_v9, 8.507059e+37  ;;  %v1790_v11 = vsel %vm4779_vm11, %v4636_v1, %v1786_v55  ;;  %v3155_v9 = vld.sshfl [vmem:[#allocation1] sm:$0xff pattern:$0x73625140]  ;;  %v4846_v25 = vld [vmem:[%s5377_s3 + $0x8] sm:$0xff] }
 0x218   : > { %v1775_v20 = vsel %vm4770_vm12, %v3917_v37, %v1771_v30  ;;  %v1807_v46 = vrot.slane %v3921_v42, 4  ;;  %v1794_v41 = vor.u32 1.1754944e-38, %v1793_v47  ;;  %v1818_v16 = vrot.slane %v4735_v13, 4  ;;  %v3135_v55 = vld [vmem:[%s5380_s6] sm:$0xff]  ;;  %v3812_v42 = vld [vmem:[%s5377_s3 + $0x10] sm:$0xff] }
 0x219   : > { %v3923_v17 = vpop.eup %3922  ;;  %v1780_v24 = vsel %vm1777_vm8, %v1779_v10, %v1775_v20  ;;  %v1812_v52 = vmul.f32 %v1806_v56, %v1765_v35  ;;  %vm1792_vm9 = vcmp.eq.f32.partialorder %v1791_v15, 8.507059e+37  ;;  %v1819_v40 = vrot.slane %v4742_v28, 4  ;;  %v3229_v26 = vld [vmem:[%s5384_s10] sm:$0xff] }
 0x21a   : > { %v1808_v18 = vrot.slane %v3923_v17, 4  ;;  %v1813_v27 = vmul.f32 %v1807_v46, %v1780_v24  ;;  %v1795_v43 = vsel %vm1792_vm9, %v1794_v41, %v1790_v11  ;;  %v1820_v50 = vrot.slane %v4744_v14, 4  ;;  %v4836_v47 = vld [vmem:[%s5377_s3] sm:$0xff] }
 0x21b   : > { %v1825_v1 = vsel %vm1824_vm7, %v1818_v16, %v1812_v52  ;;  %v1869_v57 = vperm.slane %v546_v63, 0  ;;  %v1870_v58 = vperm.slane %v546_v63, 1  ;;  %v1871_v13 = vperm.slane %v546_v63, 2  ;;  %v3220_v4 = vld [vmem:[%s5383_s9] sm:$0xff] }
 0x21c   : > { %v1814_v31 = vmul.f32 %v1808_v18, %v1795_v43  ;;  %v1826_v53 = vsel %vm1824_vm7, %v1819_v40, %v1813_v27  ;;  %1840 = vst [vmem:[%s528_s23] sm:$0xff] %v1825_v1  ;;  %v1853_v49 = vmul.f32 %v1851_v51, %v1825_v1  ;;  %vm1894_vm14 = vcmask 154624  }
 0x21d   : > { %1841 = vst [vmem:[%s528_s23 + $0x8] sm:$0xff] %v1826_v53  ;;  %v1854_v19 = vmul.f32 %v1851_v51, %v1826_v53  ;;  %vm1901_vm5 = vcmask 711680   ;;  %vm1933_vm1 = vcmask 64512   ;;  %vm5450_vm0 = vcmask 1041408  }
 0x21e   : > { %v1827_v62 = vsel %vm1824_vm7, %v1820_v50, %v1814_v31  ;;  %v1862_v36 = vadd.f32 %v1860_v0, %v1853_v49  ;;  %v3814_v50 = vld [vmem:[%s5377_s3 + $0x20] sm:$0xff]  ;;  %vm5451_vm11 = vcmask 736256   ;;  %vm5453_vm9 = vmmov %vm5450_vm0 }
 0x21f   : > { %1843 = vst.msk [vmem:[%s528_s23 + $0x10] sm:$0xff] %vm1842_vm10, %v1827_v62  ;;  %v1855_v38 = vmul.f32 %v1851_v51, %v1827_v62  ;;  %v1863_v8 = vadd.f32 %v1860_v0, %v1854_v19  ;;  %vm5452_vm8 = vmmov %vm5451_vm11 }
 0x220   : > { %v1865_v23 = vmax.f32 %v1862_v36, 0.0 }
 0x221   : > { %v1864_v29 = vadd.f32 %v1860_v0, %v1855_v38  ;;  %v1866_v48 = vmax.f32 %v1863_v8, 0.0 }
 0x222   : > { %v1875_v7 = vmul.f32 %v1869_v57, %v1865_v23  ;;  %v3815_v23 = vld [vmem:[%s5377_s3 + $0x28] sm:$0xff] }
 0x223   : > { %v1867_v22 = vmax.f32 %v1864_v29, 0.0  ;;  %v1876_v28 = vmul.f32 %v1870_v58, %v1866_v48 }
 0x225   : > { %v1878_v37 = vpack.c.bf16 %v1876_v28, %v1875_v7  ;;  %v1877_v3 = vmul.f32 %v1871_v13, %v1867_v22 }
 0x227   : > { %v1883_v14 = vunpack.c.h.b16 %v1878_v37  ;;  %v1882_v44 = vunpack.c.l.b16 %v1878_v37  ;;  %v1879_v60 = vpack.c.bf16 %v1877_v3, %v1877_v3 }
 0x229   : > { %v1886_v21 = vpack.c.b16 %v1883_v14, %v1883_v14  ;;  %v1885_v12 = vpack.c.b16 %v1882_v44, %v1882_v44  ;;  %v1884_v5 = vunpack.c.l.b16 %v1879_v60  ;;  %v3816_v60 = vld [vmem:[%s5377_s3 + $0x30] sm:$0xff] }
 0x22b   : > { %1890 = vrot.lane.b32.xlu1 %v1886_v21, %s4013_s17  ;;  %1888 = vrot.lane.b32.xlu2 %v1885_v12, %s4013_s17  ;;  %v1887_v32 = vpack.c.b16 %v1884_v5, %v1884_v5 }
 0x233   : > { %1892 = vrot.lane.b32.xlu2 %v1887_v32, %s4013_s17 }
 0x285   : > { %v1889_v6 = vpop.permute.xlu2 %1888 }
 0x286   : > { %v1900_v33 = vsel %vm1894_vm14, 0, %v1889_v6 }
 0x287   : > { %1925 = vrot.lane.b32.xlu0 %v1900_v33, %s4004_s24  ;;  %v2022_v59 = vsel %vm1824_vm7, %v1900_v33, 0 }
 0x288   : > { %2036 = vmatpush.bf16.msrb.mxu2 %v2022_v59  ;;  %v3817_v59 = vld [vmem:[%s5377_s3 + $0x38] sm:$0xff] }
 0x28b   : > { %3643 = vmatmul.msk.bf16.vlgmr.msrb.gmra.mxu2 %vm1933_vm1, %v4836_v47 }
 0x28d   : > { %v1893_v30 = vpop.permute.xlu2 %1892 }
 0x28f   : > { %2101 = vrot.lane.b32.xlu0 %v1900_v33, %s4005_s25 }
 0x297   : > { %2208 = vrot.lane.b32.xlu0 %v1900_v33, %s4006_s26 }
 0x29b   : > { %3644 = vmatmul.msk.bf16.gmra.mxu2 %vm1933_vm1, %v4846_v25 }
 0x29d   : > { %v1891_v61 = vpop.permute.xlu1 %1890 }
 0x29e   : > { %v1895_v39 = vsel %vm1894_vm14, %v1889_v6, %v1891_v61  ;;  %v1896_v34 = vsel %vm1894_vm14, %v1891_v61, %v1893_v30  ;;  %v3159_v30 = vld.sshfl [vmem:[#allocation1 + $0x10] sm:$0xff pattern:$0x73625140] }
 0x29f   : > { %v1903_v45 = vsel %vm1901_vm5, %v1896_v34, 0  ;;  %2315 = vrot.lane.b32.xlu0 %v1900_v33, %s4007_s27  ;;  %1927 = vrot.lane.b32.xlu1 %v1895_v39, %s4004_s24  ;;  %v2025_v52 = vsel %vm1824_vm7, %v1895_v39, 0  ;;  %vm5455_vm5 = vmmov %vm5450_vm0 }
 0x2a0   : > { %1929 = vrot.lane.b32.xlu2 %v1903_v45, %s4004_s24  ;;  %v2027_v16 = vsel %vm1824_vm7, %v1903_v45, 0 }
 0x2a7   : > { %2422 = vrot.lane.b32.xlu0 %v1900_v33, %s4008_s28  ;;  %2103 = vrot.lane.b32.xlu1 %v1895_v39, %s4005_s25 }
 0x2a8   : > { %2105 = vrot.lane.b32.xlu2 %v1903_v45, %s4005_s25 }
 0x2af   : > { %2529 = vrot.lane.b32.xlu0 %v1900_v33, %s4009_s16  ;;  %2210 = vrot.lane.b32.xlu1 %v1895_v39, %s4006_s26 }
 0x2b0   : > { %2212 = vrot.lane.b32.xlu2 %v1903_v45, %s4006_s26  ;;  %s5188_s26 = scalar_lea.vmem %s5389_s15, %s4695_s21 }
 0x2b7   : > { %2636 = vrot.lane.b32.xlu0 %v1900_v33, %s4010_s30  ;;  %2317 = vrot.lane.b32.xlu1 %v1895_v39, %s4007_s27 }
 0x2b8   : > { %2319 = vrot.lane.b32.xlu2 %v1903_v45, %s4007_s27 }
 0x2bf   : > { %2743 = vrot.lane.b32.xlu0 %v1900_v33, %s5442_s20  ;;  %2424 = vrot.lane.b32.xlu1 %v1895_v39, %s4008_s28 }
 0x2c0   : > { %2426 = vrot.lane.b32.xlu2 %v1903_v45, %s4008_s28  ;;  %s5331_s28 = scalar_lea.vmem %s5388_s14, %s4695_s21  ;;  %s3829_s21 = smul.u32 12, %s5474_s19 }
 0x2c2   : > { %s523_s23 = scalar_lea.vmem %s5385_s11, %s3829_s21 }
 0x2c7   : > { %3161 = vrot.lane.b32.xlu0 %v3155_v9, %s4007_s27  ;;  %2531 = vrot.lane.b32.xlu1 %v1895_v39, %s4009_s16 }
 0x2c8   : > { %2533 = vrot.lane.b32.xlu2 %v1903_v45, %s4009_s16 }
 0x2cf   : > { %3138 = vperm.xlu0 %3849, %v3135_v55   ;;  %2638 = vrot.lane.b32.xlu1 %v1895_v39, %s4010_s30  ;;  %v3818_v55 = vld [vmem:[%s5377_s3 + $0x40] sm:$0xff] }
 0x2d0   : > { %2640 = vrot.lane.b32.xlu2 %v1903_v45, %s4010_s30 }
 0x2d7   : > { %3232 = vperm.xlu0 %3849, %v3229_v26   ;;  %2745 = vrot.lane.b32.xlu1 %v1895_v39, %s5442_s20  ;;  %v3820_v26 = vld [vmem:[%s5377_s3 + $0x50] sm:$0xff] }
 0x2d8   : > { %2747 = vrot.lane.b32.xlu2 %v1903_v45, %s5442_s20 }
 0x2df   : > { %3163 = vrot.lane.b32.xlu1 %v3157_v2, %s4007_s27 }
 0x2e0   : > { %3165 = vrot.lane.b32.xlu2 %v3159_v30, %s4007_s27 }
 0x2e7   : > { %3223 = vperm.xlu1 %3850, %v3220_v4  }
 0x2f9   : > { %v1926_v10 = vpop.permute.xlu0 %1925 }
 0x2fa   : > { %v1930_v20 = vpop.permute.xlu2 %1929 }
 0x2fb   : > { %v1947_v15 = vsel %vm1824_vm7, %v1930_v20, 0 }
 0x2fc   : > { %1994 = vmatpush.bf16.msrb.mxu1 %v1947_v15  ;;  %v3821_v15 = vld [vmem:[%s5377_s3 + $0x58] sm:$0xff] }
 0x2ff   : > { %3633 = vmatmul.msk.bf16.vlgmr.msrb.gmra.mxu1 %vm1933_vm1, %v3812_v42 }
 0x301   : > { %v2102_v11 = vpop.permute.xlu0 %2101 }
 0x302   : > { %v2106_v56 = vpop.permute.xlu2 %2105 }
 0x303   : > { %v2122_v18 = vsel %vm1824_vm7, %v2106_v56, 0 }
 0x309   : > { %v2209_v53 = vpop.permute.xlu0 %2208 }
 0x30a   : > { %v2213_v27 = vpop.permute.xlu2 %2212 }
 0x30b   : > { %v2229_v49 = vsel %vm1824_vm7, %v2213_v27, 0 }
 0x30f   : > { %3634 = vmatmul.msk.bf16.gmra.mxu1 %vm1933_vm1, %v3813_v54 }
 0x311   : > { %v1928_v35 = vpop.permute.xlu1 %1927  ;;  %v2316_v58 = vpop.permute.xlu0 %2315 }
 0x312   : > { %v1931_v46 = vsel %vm580_vm3, %v1926_v10, %v1928_v35  ;;  %v1932_v17 = vsel %vm580_vm3, %v1928_v35, %v1930_v20  ;;  %v2320_v19 = vpop.permute.xlu2 %2319  ;;  %v3819_v20 = vld [vmem:[%s5377_s3 + $0x48] sm:$0xff] }
 0x313   : > { %v1941_v24 = vsel %vm1824_vm7, %v1931_v46, 0  ;;  %v1944_v41 = vsel %vm1824_vm7, %v1932_v17, 0  ;;  %v2336_v38 = vsel %vm1824_vm7, %v2320_v19, 0 }
 0x314   : > { %1956 = vmatpush.bf16.msra.mxu3 %v1941_v24  ;;  %1975 = vmatpush.bf16.msrb.mxu0 %v1944_v41  ;;  %v2038_v24 = vpop.f32.mrf.mxu2  ;;  %v4957_v41 = vld [vmem:[%s5377_s3 + $0x60] sm:$0xff] }
 0x317   : > { %3629 = vmatmul.msk.bf16.vlgmr.msra.gmra.mxu3 %vm1933_vm1, %v3812_v42  ;;  %3631 = vmatmul.msk.bf16.vlgmr.msrb.gmra.mxu0 %vm1933_vm1, %v3812_v42 }
 0x318   : > { %2055 = vmatpush.bf16.msrb.mxu3 %v2025_v52  ;;  %2074 = vmatpush.bf16.msra.mxu0 %v2027_v16 }
 0x319   : > { %v2104_v40 = vpop.permute.xlu1 %2103  ;;  %v2423_v29 = vpop.permute.xlu0 %2422 }
 0x31a   : > { %v2107_v51 = vsel %vm768_vm2, %v2102_v11, %v2104_v40  ;;  %v2108_v43 = vsel %vm768_vm2, %v2104_v40, %v2106_v56  ;;  %v2427_v48 = vpop.permute.xlu2 %2426  ;;  %vm5443_vm2 = vcmask 891904  }
 0x31b   : > { %v2116_v1 = vsel %vm1824_vm7, %v2107_v51, 0  ;;  %v2119_v31 = vsel %vm1824_vm7, %v2108_v43, 0  ;;  %vm5444_vm3 = vmmov %vm5443_vm2  ;;  %v2443_v39 = vsel %vm1824_vm7, %v2427_v48, 0  ;;  %v4972_v43 = vld [vmem:[%s5377_s3 + $0x68] sm:$0xff] }
 0x31c   : > { %2169 = vmatpush.bf16.msra.mxu3 %v2122_v18  ;;  %2131 = vmatpush.bf16.msra.mxu1 %v2116_v1  ;;  %vm5449_vm15 = vmmov %vm5443_vm2  ;;  %v2040_v51 = vpop.f32.mrf.mxu2 }
 0x31d   : > { %2150 = vmatpush.bf16.msra.mxu2 %v2119_v31  ;;  %vm5454_vm14 = vmmov %vm5443_vm2 }
 0x31f   : > { %3661 = vmatmul.msk.bf16.vlgmr.msra.gmra.mxu1 %vm1933_vm1, %v3814_v50 }
 0x320   : > { %3663 = vmatmul.msk.bf16.vlgmr.msra.gmra.mxu2 %vm1933_vm1, %v3814_v50 }
 0x321   : > { %2276 = vmatpush.bf16.msrb.mxu2 %v2229_v49  ;;  %v2211_v63 = vpop.permute.xlu1 %2210  ;;  %v2530_v21 = vpop.permute.xlu0 %2529 }
 0x322   : > { %v2214_v0 = vsel %vm883_vm4, %v2209_v53, %v2211_v63  ;;  %v2215_v62 = vsel %vm883_vm4, %v2211_v63, %v2213_v27  ;;  %v2534_v12 = vpop.permute.xlu2 %2533  ;;  %vm5445_vm4 = vcmask 752640  }
 0x323   : > { %v2223_v57 = vsel %vm1824_vm7, %v2214_v0, 0  ;;  %v2226_v36 = vsel %vm1824_vm7, %v2215_v62, 0  ;;  %vm5446_vm13 = vmmov %vm5445_vm4  ;;  %v2550_v56 = vsel %vm1824_vm7, %v2534_v12, 0 }
 0x324   : > { %2238 = vmatpush.bf16.msrb.mxu0 %v2223_v57  ;;  %2257 = vmatpush.bf16.msrb.mxu1 %v2226_v36  ;;  %v2043_v31 = vpop.f32.mrf.mxu2 }
 0x327   : > { %3630 = vmatmul.msk.bf16.gmra.mxu3 %vm1933_vm1, %v3813_v54  ;;  %3632 = vmatmul.msk.bf16.gmra.mxu0 %vm1933_vm1, %v3813_v54 }
 0x328   : > { %2383 = vmatpush.bf16.msra.mxu1 %v2336_v38  ;;  %v3824_v38 = vld [vmem:[%s5377_s3 + $0x70] sm:$0xff] }
 0x329   : > { %v2318_v8 = vpop.permute.xlu1 %2317 }
 0x32a   : > { %v2321_v28 = vsel %vm5443_vm2, %v2316_v58, %v2318_v8  ;;  %v2322_v37 = vsel %vm5444_vm3, %v2318_v8, %v2320_v19  ;;  %v2641_v9 = vpop.permute.xlu2 %2640  ;;  %vm5456_vm2 = vcmask 31744  }
 0x32b   : > { %v2330_v3 = vsel %vm1824_vm7, %v2321_v28, 0  ;;  %v2333_v14 = vsel %vm1824_vm7, %v2322_v37, 0  ;;  %vm5457_vm3 = vmmov %vm5456_vm2 }
 0x32c   : > { %v2045_v62 = vpop.f32.mrf.mxu2 }
 0x32f   : > { %3662 = vmatmul.msk.bf16.gmra.mxu1 %vm1933_vm1, %v3815_v23 }
 0x330   : > { %3664 = vmatmul.msk.bf16.gmra.mxu2 %vm1933_vm1, %v3815_v23 }
 0x331   : > { %v2425_v13 = vpop.permute.xlu1 %2424 }
 0x332   : > { %v2428_v7 = vsel %vm1113_vm6, %v2423_v29, %v2425_v13  ;;  %v2429_v61 = vsel %vm1113_vm6, %v2425_v13, %v2427_v48  ;;  %vm5447_vm6 = vcmask 744448   ;;  %v2748_v52 = vpop.permute.xlu2 %2747 }
 0x333   : > { %v2437_v22 = vsel %vm1824_vm7, %v2428_v7, 0  ;;  %v2440_v34 = vsel %vm1824_vm7, %v2429_v61, 0  ;;  %vm5448_vm12 = vmmov %vm5447_vm6  ;;  %v2764_v27 = vsel %vm1824_vm7, %v2748_v52, 0 }
 0x334   : > { %2452 = vmatpush.bf16.msra.mxu2 %v2437_v22 }
 0x337   : > { %3645 = vmatmul.msk.bf16.vlgmr.msrb.gmra.mxu3 %vm1933_vm1, %v4836_v47  ;;  %3647 = vmatmul.msk.bf16.vlgmr.msra.gmra.mxu0 %vm1933_vm1, %v4836_v47  ;;  %v2657_v47 = vsel %vm1824_vm7, %v2641_v9, 0 }
 0x338   : > { %2345 = vmatpush.bf16.msrb.mxu3 %v2330_v3  ;;  %2364 = vmatpush.bf16.msra.mxu0 %v2333_v14 }
 0x339   : > { %v2532_v44 = vpop.permute.xlu1 %2531 }
 0x33a   : > { %v2535_v5 = vsel %vm5445_vm4, %v2530_v21, %v2532_v44  ;;  %v2536_v32 = vsel %vm5446_vm13, %v2532_v44, %v2534_v12  ;;  %v3825_v44 = vld [vmem:[%s5377_s3 + $0x78] sm:$0xff]  ;;  %v3166_v21 = vpop.permute.xlu2 %3165 }
 0x33b   : > { %v2544_v6 = vsel %vm1824_vm7, %v2535_v5, 0  ;;  %v2547_v33 = vsel %vm1824_vm7, %v2536_v32, 0  ;;  %v3179_v5 = vsel %vm5453_vm9, %v3166_v21, 0 }
 0x33f   : > { %3681 = vmatmul.msk.bf16.vlgmr.msrb.gmra.mxu1 %vm1933_vm1, %v3816_v60 }
 0x340   : > { %3683 = vmatmul.msk.bf16.vlgmr.msrb.gmra.mxu2 %vm1933_vm1, %v3816_v60  ;;  %2559 = vmatpush.bf16.msrb.mxu1 %v2544_v6 }
 0x341   : > { %2578 = vmatpush.bf16.msrb.mxu2 %v2547_v33  ;;  %v2639_v45 = vpop.permute.xlu1 %2638 }
 0x342   : > { %v2643_v2 = vsel %vm5447_vm6, %v2639_v45, %v2641_v9 }
 0x343   : > { %v2654_v4 = vsel %vm1824_vm7, %v2643_v2, 0 }
 0x347   : > { %3646 = vmatmul.msk.bf16.gmra.mxu3 %vm1933_vm1, %v4846_v25  ;;  %3648 = vmatmul.msk.bf16.gmra.mxu0 %vm1933_vm1, %v4846_v25  ;;  %v2637_v25 = vpop.permute.xlu0 %2636 }
 0x348   : > { %v2642_v54 = vsel %vm5448_vm12, %v2637_v25, %v2639_v45 }
 0x349   : > { %v2746_v10 = vpop.permute.xlu1 %2745  ;;  %v2651_v35 = vsel %vm1824_vm7, %v2642_v54, 0 }
 0x34a   : > { %v2750_v53 = vsel %vm5452_vm8, %v2746_v10, %v2748_v52 }
 0x34b   : > { %v2761_v0 = vsel %vm1824_vm7, %v2750_v53, 0 }
 0x34f   : > { %3682 = vmatmul.msk.bf16.gmra.mxu1 %vm1933_vm1, %v3817_v59  ;;  %v2744_v42 = vpop.permute.xlu0 %2743 }
 0x350   : > { %3684 = vmatmul.msk.bf16.gmra.mxu2 %vm1933_vm1, %v3817_v59 }
 0x351   : > { %v4950_v46 = vpop.permute.xlu1 %3163 }
 0x357   : > { %3665 = vmatmul.msk.bf16.vlgmr.msra.gmra.mxu3 %vm1933_vm1, %v3814_v50  ;;  %3679 = vmatmul.msk.bf16.vlgmr.msrb.gmra.mxu0 %vm1933_vm1, %v3816_v60  ;;  %v3162_v11 = vpop.permute.xlu0 %3161  ;;  %v2749_v50 = vsel %vm5451_vm11, %v2744_v42, %v2746_v10 }
 0x358   : > { %2471 = vmatpush.bf16.msra.mxu3 %v2440_v34  ;;  %2490 = vmatpush.bf16.msrb.mxu0 %v2443_v39  ;;  %v3167_v17 = vsel %vm5449_vm15, %v3162_v11, %v4950_v46  ;;  %v2758_v63 = vsel %vm1824_vm7, %v2749_v50, 0 }
 0x359   : > { %v3173_v18 = vsel %vm5450_vm0, %v3167_v17, 0 }
 0x35f   : > { %3701 = vmatmul.msk.bf16.vlgmr.msra.gmra.mxu1 %vm1933_vm1, %v3818_v55 }
 0x360   : > { %3715 = vmatmul.msk.bf16.vlgmr.msra.gmra.mxu2 %vm1933_vm1, %v3820_v26  ;;  %2685 = vmatpush.bf16.msra.mxu1 %v2654_v4 }
 0x361   : > { %2704 = vmatpush.bf16.msra.mxu2 %v2657_v47  ;;  %v3826_v47 = vld [vmem:[%s5377_s3 + $0x80] sm:$0xff] }
 0x367   : > { %3666 = vmatmul.msk.bf16.gmra.mxu3 %vm1933_vm1, %v3815_v23  ;;  %3680 = vmatmul.msk.bf16.gmra.mxu0 %vm1933_vm1, %v3817_v59  ;;  %v3168_v59 = vsel %vm5454_vm14, %v4950_v46, %v3166_v21 }
 0x368   : > { %v3176_v9 = vsel %vm5455_vm5, %v3168_v59, 0 }
 0x36f   : > { %3702 = vmatmul.msk.bf16.gmra.mxu1 %vm1933_vm1, %v3819_v20 }
 0x370   : > { %3716 = vmatmul.msk.bf16.gmra.mxu2 %vm1933_vm1, %v3821_v15 }
 0x377   : > { %3697 = vmatmul.msk.bf16.vlgmr.msrb.gmra.mxu3 %vm1933_vm1, %v3818_v55  ;;  %3699 = vmatmul.msk.bf16.vlgmr.msra.gmra.mxu0 %vm1933_vm1, %v3818_v55 }
 0x378   : > { %2597 = vmatpush.bf16.msrb.mxu3 %v2550_v56  ;;  %2666 = vmatpush.bf16.msra.mxu0 %v2651_v35 }
 0x37c   : > { %v1996_v16 = vpop.f32.mrf.mxu1 }
 0x37f   : > { %3733 = vmatmul.msk.bf16.vlgmr.msrb.gmra.mxu1 %vm1933_vm1, %v4957_v41 }
 0x380   : > { %3735 = vmatmul.msk.bf16.vlgmr.msrb.gmra.mxu2 %vm1933_vm1, %v4957_v41  ;;  %2811 = vmatpush.bf16.msrb.mxu1 %v2764_v27  ;;  %v3827_v27 = vld [vmem:[%s5377_s3 + $0x88] sm:$0xff] }
 0x381   : > { %3188 = vmatpush.bf16.msrb.mxu2 %v3173_v18 }
 0x384   : > { %v4965_v40 = vpop.f32.mrf.mxu1 }
 0x387   : > { %3698 = vmatmul.msk.bf16.gmra.mxu3 %vm1933_vm1, %v3819_v20  ;;  %3700 = vmatmul.msk.bf16.gmra.mxu0 %vm1933_vm1, %v3819_v20  ;;  %v5021_v20 = vld [vmem:[%s5382_s8] sm:$0xf] }
 0x38c   : > { %v4974_v1 = vpop.f32.mrf.mxu1 }
 0x38f   : > { %3734 = vmatmul.msk.bf16.gmra.mxu1 %vm1933_vm1, %v4972_v43 }
 0x390   : > { %3736 = vmatmul.msk.bf16.gmra.mxu2 %vm1933_vm1, %v4972_v43 }
 0x394   : > { %v1977_v49 = vpop.f32.mrf.mxu0  ;;  %v4982_v19 = vpop.f32.mrf.mxu1 }
 0x397   : > { %3717 = vmatmul.msk.bf16.vlgmr.msra.gmra.mxu3 %vm1933_vm1, %v3820_v26  ;;  %3719 = vmatmul.msk.bf16.vlgmr.msrb.gmra.mxu0 %vm1933_vm1, %v3820_v26 }
 0x398   : > { %2773 = vmatpush.bf16.msra.mxu3 %v2758_v63  ;;  %2792 = vmatpush.bf16.msrb.mxu0 %v2761_v0 }
 0x39a   : > { %v1958_v57 = vpop.f32.mrf.mxu3 }
 0x39b   : > { %v2039_v36 = vadd.f32 %v2038_v24, %v1958_v57 }
 0x39c   : > { %v1979_v58 = vpop.f32.mrf.mxu0  ;;  %v2133_v8 = vpop.f32.mrf.mxu1 }
 0x39d   : > { %v4991_v23 = vadd.f32 %v2133_v8, %v2039_v36 }
 0x39f   : > { %3753 = vmatmul.msk.bf16.vlgmr.msra.gmra.mxu1 %vm1933_vm1, %v3824_v38 }
 0x3a0   : > { %3755 = vmatmul.msk.bf16.vlgmr.msra.gmra.mxu2 %vm1933_vm1, %v3824_v38 }
 0x3a1   : > { %3214 = vmatpush.bf16.msra.mxu2 %v3179_v5 }
 0x3a2   : > { %v1960_v29 = vpop.f32.mrf.mxu3 }
 0x3a3   : > { %v2152_v48 = vpop.f32.mrf.mxu2  ;;  %v2041_v13 = vadd.f32 %v2040_v51, %v1960_v29 }
 0x3a4   : > { %v1982_v7 = vpop.f32.mrf.mxu0  ;;  %v2135_v22 = vpop.f32.mrf.mxu1 }
 0x3a5   : > { %v4995_v28 = vadd.f32 %v2135_v22, %v2041_v13 }
 0x3a7   : > { %3718 = vmatmul.msk.bf16.gmra.mxu3 %vm1933_vm1, %v3821_v15  ;;  %3720 = vmatmul.msk.bf16.gmra.mxu0 %vm1933_vm1, %v3821_v15 }
 0x3aa   : > { %v1963_v37 = vpop.f32.mrf.mxu3 }
 0x3ab   : > { %v2154_v3 = vpop.f32.mrf.mxu2  ;;  %v2044_v14 = vadd.f32 %v2043_v31, %v1963_v37 }
 0x3ac   : > { %v1984_v12 = vpop.f32.mrf.mxu0  ;;  %v2138_v60 = vpop.f32.mrf.mxu1 }
 0x3ad   : > { %v5003_v32 = vadd.f32 %v2138_v60, %v2044_v14 }
 0x3af   : > { %3754 = vmatmul.msk.bf16.gmra.mxu1 %vm1933_vm1, %v3825_v44 }
 0x3b0   : > { %3756 = vmatmul.msk.bf16.gmra.mxu2 %vm1933_vm1, %v3825_v44 }
 0x3b2   : > { %v1965_v6 = vpop.f32.mrf.mxu3 }
 0x3b3   : > { %v2157_v33 = vpop.f32.mrf.mxu2  ;;  %v2046_v30 = vadd.f32 %v2045_v62, %v1965_v6 }
 0x3b4   : > { %v2076_v61 = vpop.f32.mrf.mxu0  ;;  %v2140_v39 = vpop.f32.mrf.mxu1 }
 0x3b5   : > { %v2077_v34 = vadd.f32 %v2076_v61, %v1996_v16  ;;  %v5009_v45 = vadd.f32 %v2140_v39, %v2046_v30 }
 0x3b7   : > { %3737 = vmatmul.msk.bf16.vlgmr.msrb.gmra.mxu3 %vm1933_vm1, %v4957_v41  ;;  %3751 = vmatmul.msk.bf16.vlgmr.msra.gmra.mxu0 %vm1933_vm1, %v3824_v38 }
 0x3b8   : > { %3201 = vmatpush.bf16.msrb.mxu3 %v3176_v9 }
 0x3ba   : > { %v2057_v55 = vpop.f32.mrf.mxu3 }
 0x3bb   : > { %v2159_v26 = vpop.f32.mrf.mxu2  ;;  %v2058_v2 = vadd.f32 %v2057_v55, %v1977_v49 }
 0x3bc   : > { %v2078_v4 = vpop.f32.mrf.mxu0  ;;  %v2259_v25 = vpop.f32.mrf.mxu1 }
 0x3bd   : > { %v2079_v15 = vadd.f32 %v2078_v4, %v4965_v40  ;;  %v2182_v42 = vadd.f32 %v2152_v48, %v2058_v2 }
 0x3bf   : > { %v5024_v10 = vadd.f32 %v2259_v25, %v2182_v42  ;;  %3773 = vmatmul.msk.bf16.vlgmr.msrb.gmra.mxu1 %vm1933_vm1, %v3826_v47 }
 0x3c0   : > { %3787 = vmatmul.msk.bf16.vlgmr.msrb.gmra.mxu2 %vm5456_vm2, %v5021_v20 }
 0x3c2   : > { %v2059_v54 = vpop.f32.mrf.mxu3 }
 0x3c3   : > { %v2278_v56 = vpop.f32.mrf.mxu2  ;;  %v2060_v35 = vadd.f32 %v2059_v54, %v1979_v58 }
 0x3c4   : > { %v2081_v11 = vpop.f32.mrf.mxu0  ;;  %v2261_v46 = vpop.f32.mrf.mxu1 }
 0x3c5   : > { %v2082_v17 = vadd.f32 %v2081_v11, %v4974_v1  ;;  %v2185_v24 = vadd.f32 %v2154_v3, %v2060_v35 }
 0x3c7   : > { %v5030_v41 = vadd.f32 %v2261_v46, %v2185_v24  ;;  %3738 = vmatmul.msk.bf16.gmra.mxu3 %vm1933_vm1, %v4972_v43  ;;  %3752 = vmatmul.msk.bf16.gmra.mxu0 %vm1933_vm1, %v3825_v44 }
 0x3ca   : > { %v2062_v52 = vpop.f32.mrf.mxu3 }
 0x3cb   : > { %v2280_v16 = vpop.f32.mrf.mxu2  ;;  %v2063_v18 = vadd.f32 %v2062_v52, %v1982_v7 }
 0x3cc   : > { %v2083_v40 = vpop.f32.mrf.mxu0  ;;  %v2264_v51 = vpop.f32.mrf.mxu1 }
 0x3cd   : > { %v2084_v31 = vadd.f32 %v2083_v40, %v4982_v19  ;;  %v2188_v1 = vadd.f32 %v2157_v33, %v2063_v18 }
 0x3cf   : > { %v5039_v50 = vadd.f32 %v2264_v51, %v2188_v1  ;;  %3774 = vmatmul.msk.bf16.gmra.mxu1 %vm1933_vm1, %v3827_v27 }
 0x3d0   : > { %3789 = vmatmul.msk.bf16.vlgmr.msra.gmra.mxu2 %vm5457_vm3, %v5021_v20 }
 0x3d2   : > { %v2064_v43 = vpop.f32.mrf.mxu3 }
 0x3d3   : > { %v2283_v53 = vpop.f32.mrf.mxu2  ;;  %v2065_v49 = vadd.f32 %v2064_v43, %v1984_v12 }
 0x3d4   : > { %v2240_v63 = vpop.f32.mrf.mxu0  ;;  %v2266_v0 = vpop.f32.mrf.mxu1 }
 0x3d5   : > { %v2288_v62 = vadd.f32 %v2240_v63, %v4991_v23  ;;  %v2191_v57 = vadd.f32 %v2159_v26, %v2065_v49 }
 0x3d7   : > { %v2298_v36 = vadd.f32 %v2266_v0, %v2191_v57  ;;  %3769 = vmatmul.msk.bf16.vlgmr.msra.gmra.mxu3 %vm1933_vm1, %v3826_v47  ;;  %3771 = vmatmul.msk.bf16.vlgmr.msrb.gmra.mxu0 %vm1933_vm1, %v3826_v47 }
 0x3da   : > { %v2171_v19 = vpop.f32.mrf.mxu3 }
 0x3db   : > { %v2285_v38 = vpop.f32.mrf.mxu2  ;;  %v2183_v58 = vadd.f32 %v2171_v19, %v2077_v34 }
 0x3dc   : > { %v2242_v8 = vpop.f32.mrf.mxu0  ;;  %v2385_v29 = vpop.f32.mrf.mxu1 }
 0x3dd   : > { %v2291_v48 = vadd.f32 %v2242_v8, %v4995_v28  ;;  %v2290_v13 = vadd.f32 %v2278_v56, %v2183_v58 }
 0x3df   : > { %v5048_v7 = vadd.f32 %v2385_v29, %v2290_v13 }
 0x3e2   : > { %v2173_v22 = vpop.f32.mrf.mxu3 }
 0x3e3   : > { %v2454_v37 = vpop.f32.mrf.mxu2  ;;  %v2186_v3 = vadd.f32 %v2173_v22, %v2079_v15 }
 0x3e4   : > { %v2245_v23 = vpop.f32.mrf.mxu0  ;;  %v2387_v14 = vpop.f32.mrf.mxu1 }
 0x3e5   : > { %v2294_v44 = vadd.f32 %v2245_v23, %v5003_v32  ;;  %v2293_v21 = vadd.f32 %v2280_v16, %v2186_v3 }
 0x3e7   : > { %v2400_v12 = vadd.f32 %v2387_v14, %v2293_v21  ;;  %3770 = vmatmul.msk.bf16.gmra.mxu3 %vm1933_vm1, %v3827_v27  ;;  %3772 = vmatmul.msk.bf16.gmra.mxu0 %vm1933_vm1, %v3827_v27  ;;  %vm5458_vm1 = vmmov %vm5456_vm2 }
 0x3ea   : > { %v2176_v60 = vpop.f32.mrf.mxu3 }
 0x3eb   : > { %v2456_v5 = vpop.f32.mrf.mxu2  ;;  %v2189_v6 = vadd.f32 %v2176_v60, %v2082_v17 }
 0x3ec   : > { %v2247_v28 = vpop.f32.mrf.mxu0  ;;  %v2390_v33 = vpop.f32.mrf.mxu1 }
 0x3ed   : > { %v2297_v59 = vadd.f32 %v2247_v28, %v5009_v45  ;;  %v2296_v30 = vadd.f32 %v2283_v53, %v2189_v6 }
 0x3ef   : > { %v5054_v61 = vadd.f32 %v2390_v33, %v2296_v30 }
 0x3f2   : > { %v2178_v39 = vpop.f32.mrf.mxu3 }
 0x3f3   : > { %v2459_v34 = vpop.f32.mrf.mxu2  ;;  %v2192_v9 = vadd.f32 %v2178_v39, %v2084_v31 }
 0x3f4   : > { %v2366_v32 = vpop.f32.mrf.mxu0  ;;  %v2392_v55 = vpop.f32.mrf.mxu1 }
 0x3f5   : > { %v2396_v26 = vadd.f32 %v2366_v32, %v5024_v10  ;;  %v2299_v2 = vadd.f32 %v2285_v38, %v2192_v9  ;;  %v3144_v10 = vld [vmem:[%s5381_s7] sm:$0xff] }
 0x3f6   : > { %3147 = vperm.xlu2 %3851, %v3144_v10  }
 0x3f7   : > { %v5057_v47 = vadd.f32 %v2392_v55, %v2299_v2  ;;  %3788 = vmatmul.msk.bf16.vlgmr.msrb.gmra.mxu3 %vm5458_vm1, %v5021_v20 }
 0x3fa   : > { %v2347_v4 = vpop.f32.mrf.mxu3 }
 0x3fb   : > { %v2461_v25 = vpop.f32.mrf.mxu2  ;;  %v2395_v15 = vadd.f32 %v2347_v4, %v2288_v62 }
 0x3fc   : > { %v2368_v45 = vpop.f32.mrf.mxu0  ;;  %v2561_v42 = vpop.f32.mrf.mxu1 }
 0x3fd   : > { %v2399_v54 = vadd.f32 %v2368_v45, %v5030_v41  ;;  %v2502_v56 = vadd.f32 %v2454_v37, %v2395_v15 }
 0x3ff   : > { %v5062_v35 = vadd.f32 %v2561_v42, %v2502_v56 }
 0x402   : > { %v2349_v11 = vpop.f32.mrf.mxu3 }
 0x403   : > { %v2580_v46 = vpop.f32.mrf.mxu2  ;;  %v2398_v17 = vadd.f32 %v2349_v11, %v2291_v48 }
 0x404   : > { %v2371_v24 = vpop.f32.mrf.mxu0  ;;  %v2563_v20 = vpop.f32.mrf.mxu1 }
 0x405   : > { %v2402_v52 = vadd.f32 %v2371_v24, %v5039_v50  ;;  %v2505_v16 = vadd.f32 %v2456_v5, %v2398_v17 }
 0x407   : > { %v5068_v18 = vadd.f32 %v2563_v20, %v2505_v16 }
 0x40a   : > { %v2352_v27 = vpop.f32.mrf.mxu3 }
 0x40b   : > { %v2582_v41 = vpop.f32.mrf.mxu2  ;;  %v2401_v40 = vadd.f32 %v2352_v27, %v2294_v44 }
 0x40c   : > { %v2373_v51 = vpop.f32.mrf.mxu0  ;;  %v2566_v31 = vpop.f32.mrf.mxu1 }
 0x40d   : > { %v2405_v1 = vadd.f32 %v2373_v51, %v2298_v36  ;;  %v2508_v43 = vadd.f32 %v2459_v34, %v2401_v40 }
 0x40f   : > { %v5070_v53 = vadd.f32 %v2566_v31, %v2508_v43 }
 0x412   : > { %v2354_v49 = vpop.f32.mrf.mxu3 }
 0x413   : > { %v2585_v63 = vpop.f32.mrf.mxu2  ;;  %v2404_v0 = vadd.f32 %v2354_v49, %v2297_v59 }
 0x414   : > { %v2492_v62 = vpop.f32.mrf.mxu0  ;;  %v2568_v57 = vpop.f32.mrf.mxu1 }
 0x415   : > { %v2511_v19 = vadd.f32 %v2461_v25, %v2404_v0 }
 0x417   : > { %v5072_v38 = vadd.f32 %v2568_v57, %v2511_v19 }
 0x41a   : > { %v2473_v50 = vpop.f32.mrf.mxu3 }
 0x41b   : > { %v2587_v58 = vpop.f32.mrf.mxu2  ;;  %v2503_v8 = vadd.f32 %v2473_v50, %v2396_v26  ;;  %v2504_v26 = vadd.f32 %v2492_v62, %v5048_v7 }
 0x41c   : > { %v2494_v29 = vpop.f32.mrf.mxu0  ;;  %v2687_v48 = vpop.f32.mrf.mxu1 }
 0x41d   : > { %v2507_v13 = vadd.f32 %v2494_v29, %v2400_v12  ;;  %v2610_v22 = vadd.f32 %v2580_v46, %v2503_v8 }
 0x41f   : > { %v5074_v37 = vadd.f32 %v2687_v48, %v2610_v22 }
 0x422   : > { %v2475_v36 = vpop.f32.mrf.mxu3 }
 0x423   : > { %v2706_v3 = vpop.f32.mrf.mxu2  ;;  %v2506_v23 = vadd.f32 %v2475_v36, %v2399_v54 }
 0x424   : > { %v2497_v14 = vpop.f32.mrf.mxu0  ;;  %v2689_v44 = vpop.f32.mrf.mxu1 }
 0x425   : > { %v2613_v21 = vadd.f32 %v2582_v41, %v2506_v23  ;;  %v2510_v16 = vadd.f32 %v2497_v14, %v5054_v61 }
 0x427   : > { %v5076_v60 = vadd.f32 %v2689_v44, %v2613_v21 }
 0x42a   : > { %v2478_v5 = vpop.f32.mrf.mxu3 }
 0x42b   : > { %v2708_v6 = vpop.f32.mrf.mxu2  ;;  %v2509_v28 = vadd.f32 %v2478_v5, %v2402_v52 }
 0x42c   : > { %v2499_v33 = vpop.f32.mrf.mxu0  ;;  %v5078_v59 = vpop.f32.mrf.mxu1 }
 0x42d   : > { %v5080_v30 = vadd.f32 %v2585_v63, %v2509_v28  ;;  %v2513_v62 = vadd.f32 %v2499_v33, %v5057_v47 }
 0x432   : > { %v2480_v12 = vpop.f32.mrf.mxu3 }
 0x433   : > { %v2711_v39 = vpop.f32.mrf.mxu2  ;;  %v2512_v34 = vadd.f32 %v2480_v12, %v2405_v1 }
 0x434   : > { %v2668_v9 = vpop.f32.mrf.mxu0  ;;  %v5082_v32 = vpop.f32.mrf.mxu1 }
 0x435   : > { %v5084_v55 = vadd.f32 %v2587_v58, %v2512_v34  ;;  %v2716_v5 = vadd.f32 %v2668_v9, %v5062_v35 }
 0x43a   : > { %v2599_v2 = vpop.f32.mrf.mxu3 }
 0x43b   : > { %v2713_v4 = vpop.f32.mrf.mxu2  ;;  %v2611_v25 = vadd.f32 %v2599_v2, %v2504_v26 }
 0x43c   : > { %v5087_v15 = vpop.f32.mrf.mxu0  ;;  %v2813_v45 = vpop.f32.mrf.mxu1 }
 0x43d   : > { %v2718_v42 = vadd.f32 %v2706_v3, %v2611_v25 }
 0x43f   : > { %v2825_v54 = vadd.f32 %v2813_v45, %v2718_v42 }
 0x441   : > { %v3777_v56 = vmul.f32 -1.442695, %v2825_v54 }
 0x442   : > { %v2601_v10 = vpop.f32.mrf.mxu3 }
 0x443   : > { %v5089_v11 = vpop.f32.mrf.mxu2  ;;  %3924 = vpow2.f32 %v3777_v56  ;;  %v2614_v46 = vadd.f32 %v2601_v10, %v2507_v13 }
 0x444   : > { %v5091_v17 = vpop.f32.mrf.mxu0  ;;  %v2815_v24 = vpop.f32.mrf.mxu1 }
 0x445   : > { %v2721_v20 = vadd.f32 %v2708_v6, %v2614_v46 }
 0x447   : > { %v2828_v52 = vadd.f32 %v2815_v24, %v2721_v20 }
 0x449   : > { %v3925_v7 = vpop.eup %3924  ;;  %v3780_v27 = vmul.f32 -1.442695, %v2828_v52 }
 0x44a   : > { %v2846_v41 = vadd.f32 1.0, %v3925_v7  ;;  %v2604_v40 = vpop.f32.mrf.mxu3 }
 0x44b   : > { %v3192_v51 = vpop.f32.mrf.mxu2  ;;  %3926 = vpow2.f32 %v3780_v27  ;;  %v2617_v31 = vadd.f32 %v2604_v40, %v2510_v16 }
 0x44c   : > { %3928 = vrcp.f32 %v2846_v41  ;;  %v5094_v1 = vpop.f32.mrf.mxu0  ;;  %v2818_v43 = vpop.f32.mrf.mxu1  ;;  %v2886_v23 = vand.u32 2147483647, %v2846_v41  ;;  %v2888_v47 = vand.u32 2147483648, %v2846_v41  ;;  %vm2882_vm13 = vweird.f32 %v2846_v41 }
 0x44d   : > { %v2724_v49 = vadd.f32 %v2711_v39, %v2617_v31  ;;  %v2719_v31 = vadd.f32 %v5087_v15, %v5068_v18 }
 0x44e   : > { %vm2887_vm12 = vcmp.eq.f32.partialorder %v2886_v23, 8.507059e+37 }
 0x44f   : > { %v2831_v63 = vadd.f32 %v2818_v43, %v2724_v49 }
 0x451   : > { %v3927_v0 = vpop.eup %3926  ;;  %v3783_v57 = vmul.f32 -1.442695, %v2831_v63 }
 0x452   : > { %v3929_v19 = vpop.eup %3928  ;;  %v5097_v50 = vadd.f32 1.0, %v3927_v0  ;;  %v2606_v61 = vpop.f32.mrf.mxu3 }
 0x453   : > { %v5099_v58 = vpop.f32.mrf.mxu2  ;;  %v2878_v8 = vmul.f32 %v3929_v19, %v2846_v41  ;;  %3930 = vpow2.f32 %v3783_v57  ;;  %v2620_v29 = vadd.f32 %v2606_v61, %v2513_v62  ;;  %vm2883_vm4 = vweird.f32 %v3929_v19 }
 0x454   : > { %3932 = vrcp.f32 %v5097_v50  ;;  %v2794_v48 = vpop.f32.mrf.mxu0  ;;  %v2820_v13 = vpop.f32.mrf.mxu1  ;;  %vm2884_vm6 = vmor %vm2882_vm13, %vm2883_vm4  ;;  %v2946_v20 = vand.u32 2147483647, %v5097_v50  ;;  %v2723_v41 = vadd.f32 %v5078_v59, %v5080_v30  ;;  %vm2942_vm0 = vweird.f32 %v5097_v50 }
 0x455   : > { %v2879_v22 = vsub.f32 1.0, %v2878_v8  ;;  %v2824_v36 = vadd.f32 %v2794_v48, %v5074_v37  ;;  %v2727_v3 = vadd.f32 %v2713_v4, %v2620_v29  ;;  %3934 = vtanh.f32 %v2828_v52 }
 0x456   : > { %v2889_v37 = vor.u32 1.1754944e-38, %v2888_v47  ;;  %v2948_v52 = vand.u32 2147483648, %v5097_v50  ;;  %v2722_v59 = vadd.f32 %v5091_v17, %v5070_v53  ;;  %vm5141_vm8 = vcmp.eq.f32.partialorder %v2946_v20, 8.507059e+37 }
 0x457   : > { %v2880_v14 = vmul.f32 %v3929_v19, %v2879_v22  ;;  %v3776_v44 = vmul.f32 -1.442695, %v2824_v36  ;;  %v2834_v21 = vadd.f32 %v2820_v13, %v2727_v3  ;;  %v5157_v3 = vadd.f32 %v5094_v1, %v5072_v38 }
 0x458   : > { %v2949_v0 = vor.u32 1.1754944e-38, %v2948_v52 }
 0x459   : > { %v3931_v6 = vpop.eup %3930  ;;  %v2881_v28 = vadd.f32 %v3929_v19, %v2880_v14  ;;  %3936 = vpow2.f32 %v3776_v44  ;;  %v3786_v33 = vmul.f32 -1.442695, %v2834_v21 }
 0x45a   : > { %v5104_v12 = vpop.eup %3932  ;;  %v5106_v39 = vadd.f32 1.0, %v3931_v6  ;;  %v2775_v34 = vpop.f32.mrf.mxu3 }
 0x45b   : > { %v3218_v26 = vpop.f32.mrf.mxu2  ;;  %v2885_v2 = vsel %vm2884_vm6, %v3929_v19, %v2881_v28  ;;  %v2938_v4 = vmul.f32 %v5104_v12, %v5097_v50  ;;  %3938 = vpow2.f32 %v3786_v33  ;;  %v2823_v35 = vadd.f32 %v2775_v34, %v2716_v5  ;;  %v3935_v9 = vpop.eup %3934 }
 0x45c   : > { %v2890_v25 = vsel %vm2887_vm12, %v2889_v37, %v2885_v2  ;;  %3940 = vrcp.f32 %v5106_v39  ;;  %v2796_v45 = vpop.f32.mrf.mxu0  ;;  %vm2943_vm15 = vweird.f32 %v5104_v12  ;;  %v3021_v62 = vand.u32 2147483647, %v5106_v39  ;;  %v5169_v33 = vpop.permute.xlu1 %3223 }
 0x45d   : > { %v2939_v42 = vsub.f32 1.0, %v2938_v4  ;;  %v5111_v54 = vmul.f32 %v3935_v9, %v2890_v25  ;;  %v3775_v56 = vmul.f32 -1.442695, %v2823_v35  ;;  %v2827_v10 = vadd.f32 %v2796_v45, %v5076_v60  ;;  %vm5137_vm11 = vmor %vm2942_vm0, %vm2943_vm15 }
 0x45e   : > { %v5125_v60 = vadd.f32 %v5082_v32, %v5084_v55  ;;  %v3023_v57 = vand.u32 2147483648, %v5106_v39  ;;  %vm3017_vm14 = vweird.f32 %v5106_v39  ;;  %vm3022_vm2 = vcmp.eq.f32.partialorder %v3021_v62, 8.507059e+37 }
 0x45f   : > { %v3937_v46 = vpop.eup %3936  ;;  %3942 = vtanh.f32 %v5111_v54  ;;  %v2940_v24 = vmul.f32 %v5104_v12, %v2939_v42  ;;  %v3779_v16 = vmul.f32 -1.442695, %v2827_v10  ;;  %v5175_v34 = vmul.f32 %v5169_v33, %v5099_v58 }
 0x460   : > { %v5118_v7 = vadd.f32 1.0, %v3937_v46  ;;  %3944 = vpow2.f32 %v3775_v56 }
 0x461   : > { %v3939_v27 = vpop.eup %3938  ;;  %v2941_v40 = vadd.f32 %v5104_v12, %v2940_v24 }
 0x462   : > { %v3941_v51 = vpop.eup %3940  ;;  %3946 = vrcp.f32 %v5118_v7  ;;  %v5131_v43 = vadd.f32 1.0, %v3939_v27  ;;  %v2777_v49 = vpop.f32.mrf.mxu3  ;;  %v2871_v6 = vand.u32 2147483647, %v5118_v7  ;;  %v2873_v38 = vand.u32 2147483648, %v5118_v7 }
 0x463   : > { %v3013_v30 = vmul.f32 %v3941_v51, %v5106_v39  ;;  %3948 = vpow2.f32 %v3779_v16  ;;  %v2826_v18 = vadd.f32 %v2777_v49, %v2719_v31  ;;  %v2945_v63 = vsel %vm5137_vm11, %v5104_v12, %v2941_v40 }
 0x464   : > { %3950 = vtanh.f32 %v2834_v21  ;;  %v2799_v15 = vpop.f32.mrf.mxu0  ;;  %vm3018_vm9 = vweird.f32 %v3941_v51  ;;  %v2950_v22 = vsel %vm5141_vm8, %v2949_v0, %v2945_v63  ;;  %v3024_v21 = vor.u32 1.1754944e-38, %v3023_v57 }
 0x465   : > { %v3943_v53 = vpop.eup %3942  ;;  %v3014_v17 = vsub.f32 1.0, %v3013_v30  ;;  %v2830_v19 = vadd.f32 %v2799_v15, %v2723_v41  ;;  %3952 = vrcp.f32 %v5131_v43  ;;  %v3778_v61 = vmul.f32 -1.442695, %v2826_v18  ;;  %vm3019_vm5 = vmor %vm3017_vm14, %vm3018_vm9 }
 0x466   : > { %v3945_v50 = vpop.eup %3944  ;;  %v2963_v8 = vrot.slane %v3943_v53, 4  ;;  %vm2867_vm3 = vweird.f32 %v5118_v7  ;;  %vm5179_vm4 = vcmp.eq.f32.partialorder %v2871_v6, 8.507059e+37  ;;  %v2874_v42 = vor.u32 1.1754944e-38, %v2873_v38 }
 0x467   : > { %v3015_v29 = vmul.f32 %v3941_v51, %v3014_v17  ;;  %v5151_v48 = vadd.f32 1.0, %v3945_v50  ;;  %v3782_v13 = vmul.f32 -1.442695, %v2830_v19  ;;  %3954 = vpow2.f32 %v3778_v61 }
 0x468   : > { %v3947_v36 = vpop.eup %3946  ;;  %v5160_v23 = vmul.f32 %v2963_v8, %v2950_v22  ;;  %v3081_v53 = vand.u32 2147483647, %v5131_v43  ;;  %v3083_v57 = vand.u32 2147483648, %v5131_v43 }
 0x469   : > { %v3949_v47 = vpop.eup %3948  ;;  %v2863_v14 = vmul.f32 %v3947_v36, %v5118_v7  ;;  %v3016_v44 = vadd.f32 %v3941_v51, %v3015_v29  ;;  %3956 = vrcp.f32 %v5151_v48  ;;  %vm2868_vm1 = vweird.f32 %v3947_v36 }
 0x46a   : > { %v3951_v5 = vpop.eup %3950  ;;  %3958 = vtanh.f32 %v2827_v10  ;;  %v5167_v1 = vadd.f32 1.0, %v3949_v47  ;;  %v2780_v28 = vpop.f32.mrf.mxu3  ;;  %v2856_v24 = vand.u32 2147483647, %v5151_v48  ;;  %vm2869_vm13 = vmor %vm2867_vm3, %vm2868_vm1  ;;  %v2858_v41 = vand.u32 2147483648, %v5151_v48 }
 0x46b   : > { %v2864_v12 = vsub.f32 1.0, %v2863_v14  ;;  %v3020_v37 = vsel %vm3019_vm5, %v3941_v51, %v3016_v44  ;;  %3960 = vpow2.f32 %v3782_v13  ;;  %v5171_v39 = vpop.eup %3952  ;;  %v2829_v9 = vadd.f32 %v2780_v28, %v2722_v59 }
 0x46c   : > { %v3025_v26 = vsel %vm3022_vm2, %v3024_v21, %v3020_v37  ;;  %3962 = vrcp.f32 %v5167_v1  ;;  %v2801_v2 = vpop.f32.mrf.mxu0  ;;  %v5195_v16 = vmul.f32 %v5171_v39, %v5131_v43  ;;  %vm2852_vm12 = vweird.f32 %v5151_v48 }
 0x46d   : > { %v2865_v4 = vmul.f32 %v3947_v36, %v2864_v12  ;;  %v3089_v35 = vmul.f32 %v3951_v5, %v3025_v26  ;;  %v3955_v25 = vpop.eup %3954  ;;  %3964 = vtanh.f32 %v2826_v18  ;;  %v2833_v58 = vadd.f32 %v2801_v2, %v5125_v60  ;;  %v5297_v2 = vpop.permute.xlu0 %3138 }
 0x46e   : > { %v5191_v20 = vadd.f32 1.0, %v3955_v25  ;;  %v3781_v60 = vmul.f32 -1.442695, %v2829_v9  ;;  %vm2857_vm15 = vcmp.eq.f32.partialorder %v2856_v24, 8.507059e+37  ;;  %v2859_v50 = vor.u32 1.1754944e-38, %v2858_v41 }
 0x46f   : > { %v3957_v56 = vpop.eup %3956  ;;  %v3122_v10 = vrot.slane %v3089_v35, 4  ;;  %v2866_v46 = vadd.f32 %v3947_v36, %v2865_v4  ;;  %v3785_v49 = vmul.f32 -1.442695, %v2833_v58  ;;  %v3074_v8 = vsub.f32 1.0, %v5195_v16 }
 0x470   : > { %v3959_v52 = vpop.eup %3958  ;;  %v2848_v27 = vmul.f32 %v3957_v56, %v5151_v48  ;;  %3966 = vrcp.f32 %v5191_v20  ;;  %vm2853_vm6 = vweird.f32 %v3957_v56  ;;  %vm2927_vm11 = vweird.f32 %v5167_v1 }
 0x471   : > { %v3961_v40 = vpop.eup %3960  ;;  %v3128_v51 = vsel %vm1824_vm7, %v5111_v54, %v3122_v10  ;;  %v2870_v31 = vsel %vm2869_vm13, %v3947_v36, %v2866_v46  ;;  %3968 = vpow2.f32 %v3781_v60  ;;  %vm2854_vm0 = vmor %vm2852_vm12, %vm2853_vm6  ;;  %v2931_v29 = vand.u32 2147483647, %v5167_v1 }
 0x472   : > { %v5205_v59 = vpop.eup %3962  ;;  %3134 = vst.msk [vmem:[%s5188_s26 + $0x10] sm:$0xff] %vm1842_vm10, %v3128_v51  ;;  %v2849_v30 = vsub.f32 1.0, %v2848_v27  ;;  %v2875_v7 = vsel %vm5179_vm4, %v2874_v42, %v2870_v31  ;;  %v5211_v32 = vadd.f32 1.0, %v3961_v40  ;;  %v2782_v55 = vpop.f32.mrf.mxu3  ;;  %3970 = vpow2.f32 %v3785_v49 }
 0x473   : > { %v2923_v18 = vmul.f32 %v5205_v59, %v5167_v1  ;;  %v5215_v54 = vmul.f32 %v3959_v52, %v2875_v7  ;;  %v2832_v15 = vadd.f32 %v2782_v55, %v5157_v3  ;;  %v3965_v63 = vpop.eup %3964  ;;  %v2933_v37 = vand.u32 2147483648, %v5167_v1 }
 0x474   : > { %v2850_v0 = vmul.f32 %v3957_v56, %v2849_v30  ;;  %3972 = vrcp.f32 %v5211_v32  ;;  %v3006_v36 = vand.u32 2147483647, %v5211_v32  ;;  %vm3002_vm8 = vweird.f32 %v5211_v32 }
 0x475   : > { %v2924_v17 = vsub.f32 1.0, %v2923_v18  ;;  %v3784_v62 = vmul.f32 -1.442695, %v2832_v15  ;;  %3974 = vtanh.f32 %v5215_v54  ;;  %v3008_v4 = vand.u32 2147483648, %v5211_v32 }
 0x476   : > { %v2851_v19 = vadd.f32 %v3957_v56, %v2850_v0  ;;  %v5223_v61 = vpop.eup %3966  ;;  %vm5245_vm9 = vcmp.eq.f32.partialorder %v3006_v36, 8.507059e+37  ;;  %vm2912_vm5 = vweird.f32 %v5191_v20  ;;  %v2918_v10 = vand.u32 2147483648, %v5191_v20 }
 0x477   : > { %3976 = vpow2.f32 %v3784_v62  ;;  %v3969_v48 = vpop.eup %3968  ;;  %v2908_v22 = vmul.f32 %v5223_v61, %v5191_v20  ;;  %v2925_v44 = vmul.f32 %v5205_v59, %v2924_v17  ;;  %vm2913_vm14 = vweird.f32 %v5223_v61 }
 0x478   : > { %3978 = vtanh.f32 %v3089_v35  ;;  %v2855_v13 = vsel %vm2854_vm0, %v3957_v56, %v2851_v19  ;;  %v3971_v3 = vpop.eup %3970  ;;  %v5231_v14 = vadd.f32 1.0, %v3969_v48  ;;  %v2916_v56 = vand.u32 2147483647, %v5191_v20  ;;  %vm5264_vm3 = vmor %vm2912_vm5, %vm2913_vm14 }
 0x479   : > { %v2860_v47 = vsel %vm2857_vm15, %v2859_v50, %v2855_v13  ;;  %3980 = vtanh.f32 %v2833_v58  ;;  %v2909_v5 = vsub.f32 1.0, %v2908_v22  ;;  %v5236_v38 = vadd.f32 1.0, %v3971_v3 }
 0x47a   : > { %v3973_v21 = vpop.eup %3972  ;;  %v5234_v6 = vmul.f32 %v3965_v63, %v2860_v47  ;;  %3982 = vtanh.f32 %v2832_v15  ;;  %v5238_v28 = vpop.f32.mrf.mxu3  ;;  %v2926_v45 = vadd.f32 %v5205_v59, %v2925_v44  ;;  %vm2928_vm1 = vweird.f32 %v5205_v59 }
 0x47b   : > { %v2998_v12 = vmul.f32 %v3973_v21, %v5211_v32  ;;  %3984 = vrcp.f32 %v5231_v14  ;;  %v3975_v26 = vpop.eup %3974  ;;  %v2910_v25 = vmul.f32 %v5223_v61, %v2909_v5  ;;  %vm3003_vm2 = vweird.f32 %v3973_v21  ;;  %vm2929_vm4 = vmor %vm2927_vm11, %vm2928_vm1 }
 0x47c   : > { %3986 = vtanh.f32 %v5234_v6  ;;  %v3009_v60 = vor.u32 1.1754944e-38, %v3008_v4  ;;  %v2934_v20 = vor.u32 1.1754944e-38, %v2933_v37  ;;  %v2962_v40 = vrot.slane %v3975_v26, 4  ;;  %vm3004_vm6 = vmor %vm3002_vm8, %vm3003_vm2 }
 0x47d   : > { %v3977_v35 = vpop.eup %3976  ;;  %v2999_v9 = vsub.f32 1.0, %v2998_v12  ;;  %3988 = vrcp.f32 %v5236_v38  ;;  %v2911_v52 = vadd.f32 %v5223_v61, %v2910_v25  ;;  %v2930_v30 = vsel %vm2929_vm4, %v5205_v59, %v2926_v45 }
 0x47e   : > { %v5254_v42 = vpop.eup %3978  ;;  %v5256_v58 = vadd.f32 1.0, %v3977_v35  ;;  %vm2932_vm13 = vcmp.eq.f32.partialorder %v2931_v29, 8.507059e+37  ;;  %v2993_v1 = vand.u32 2147483648, %v5231_v14  ;;  %v2919_v18 = vor.u32 1.1754944e-38, %v2918_v10 }
 0x47f   : > { %v3981_v46 = vpop.eup %3980  ;;  %v3000_v24 = vmul.f32 %v3973_v21, %v2999_v9  ;;  %v2915_v49 = vsel %vm5264_vm3, %v5223_v61, %v2911_v52  ;;  %v2935_v15 = vsel %vm2932_vm13, %v2934_v20, %v2930_v30  ;;  %vm2917_vm12 = vcmp.eq.f32.partialorder %v2916_v56, 8.507059e+37 }
 0x480   : > { %v3983_v41 = vpop.eup %3982  ;;  %3990 = vrcp.f32 %v5256_v58  ;;  %v5281_v19 = vmul.f32 %v2962_v40, %v2935_v15  ;;  %vm3077_vm15 = vweird.f32 %v5131_v43  ;;  %v2920_v61 = vsel %vm2917_vm12, %v2919_v18, %v2915_v49  ;;  %v3148_v49 = vpop.permute.xlu2 %3147 }
 0x481   : > { %v3985_v51 = vpop.eup %3984  ;;  %v3001_v31 = vadd.f32 %v3973_v21, %v3000_v24  ;;  %vm2987_vm0 = vweird.f32 %v5231_v14  ;;  %v2991_v48 = vand.u32 2147483647, %v5231_v14  ;;  %v2994_v47 = vor.u32 1.1754944e-38, %v2993_v1  ;;  %v3233_v1 = vpop.permute.xlu0 %3232 }
 0x482   : > { %v3987_v7 = vpop.eup %3986  ;;  %v2983_v55 = vmul.f32 %v3985_v51, %v5231_v14  ;;  %v3205_v63 = vpop.f32.mrf.mxu3  ;;  %vm2988_vm11 = vweird.f32 %v3985_v51  ;;  %v3066_v37 = vand.u32 2147483647, %v5236_v38  ;;  %v3068_v26 = vand.u32 2147483648, %v5236_v38 }
 0x483   : > { %v3989_v0 = vpop.eup %3988  ;;  %v3005_v17 = vsel %vm3004_vm6, %v3973_v21, %v3001_v31  ;;  %v2961_v62 = vrot.slane %v3987_v7, 4  ;;  %v3075_v9 = vmul.f32 %v5171_v39, %v3074_v8  ;;  %vm3078_vm14 = vweird.f32 %v5171_v39 }
 0x484   : > { %v2984_v59 = vsub.f32 1.0, %v2983_v55  ;;  %v3010_v50 = vsel %vm5245_vm9, %v3009_v60, %v3005_v17  ;;  %v3058_v32 = vmul.f32 %v3989_v0, %v5236_v38  ;;  %vm3063_vm8 = vweird.f32 %v3989_v0  ;;  %vm2989_vm9 = vmor %vm2987_vm0, %vm2988_vm11 }
 0x485   : > { %v3088_v29 = vmul.f32 %v3981_v46, %v3010_v50  ;;  %v5289_v13 = vmul.f32 %v2961_v62, %v2920_v61  ;;  %vm2992_vm5 = vcmp.eq.f32.partialorder %v2991_v48, 8.507059e+37  ;;  %vm3062_vm2 = vweird.f32 %v5236_v38  ;;  %vm3079_vm4 = vmor %vm3077_vm15, %vm3078_vm14 }
 0x486   : > { %v5291_v22 = vpop.eup %3990  ;;  %v2985_v36 = vmul.f32 %v3985_v51, %v2984_v59  ;;  %v3059_v3 = vsub.f32 1.0, %v3058_v32  ;;  %vm5312_vm1 = vmor %vm3062_vm2, %vm3063_vm8  ;;  %v3076_v16 = vadd.f32 %v5171_v39, %v3075_v9  ;;  %v3084_v38 = vor.u32 1.1754944e-38, %v3083_v57 }
 0x487   : > { %3992 = vtanh.f32 %v3088_v29  ;;  %v3121_v44 = vrot.slane %v3088_v29, 4  ;;  %v3043_v21 = vmul.f32 %v5291_v22, %v5256_v58  ;;  %vm3048_vm3 = vweird.f32 %v5291_v22 }
 0x488   : > { %v2986_v5 = vadd.f32 %v3985_v51, %v2985_v36  ;;  %v3060_v12 = vmul.f32 %v3989_v0, %v3059_v3  ;;  %v3098_v46 = vrot.slane %v5254_v42, 4  ;;  %vm3067_vm13 = vcmp.eq.f32.partialorder %v3066_v37, 8.507059e+37 }
 0x489   : > { %v3127_v4 = vsel %vm1824_vm7, %v5215_v54, %v3121_v44  ;;  %v3044_v35 = vsub.f32 1.0, %v3043_v21  ;;  %v3069_v52 = vor.u32 1.1754944e-38, %v3068_v26  ;;  %v3080_v27 = vsel %vm3079_vm4, %v5171_v39, %v3076_v16 }
 0x48a   : > { %3133 = vst [vmem:[%s5188_s26 + $0x8] sm:$0xff] %v3127_v4  ;;  %v2990_v25 = vsel %vm2989_vm9, %v3985_v51, %v2986_v5  ;;  %v3061_v45 = vadd.f32 %v3989_v0, %v3060_v12  ;;  %vm3082_vm6 = vcmp.eq.f32.partialorder %v3081_v53, 8.507059e+37  ;;  %v3110_v51 = vrot.slane %v5160_v23, 4 }
 0x48b   : > { %v2995_v56 = vsel %vm2992_vm5, %v2994_v47, %v2990_v25  ;;  %v3045_v10 = vmul.f32 %v5291_v22, %v3044_v35  ;;  %v3085_v60 = vsel %vm3082_vm6, %v3084_v38, %v3080_v27  ;;  %v3053_v39 = vand.u32 2147483648, %v5256_v58 }
 0x48c   : > { %v3087_v8 = vmul.f32 %v3983_v41, %v2995_v56  ;;  %v3065_v14 = vsel %vm5312_vm1, %v3989_v0, %v3061_v45  ;;  %v3104_v40 = vmul.f32 %v3098_v46, %v3085_v60  ;;  %v3109_v31 = vrot.slane %v5281_v19, 4 }
 0x48d   : > { %v3993_v24 = vpop.eup %3992  ;;  %v3046_v57 = vadd.f32 %v5291_v22, %v3045_v10  ;;  %v3070_v42 = vsel %vm3067_vm13, %v3069_v52, %v3065_v14  ;;  %vm3047_vm12 = vweird.f32 %v5256_v58  ;;  %v3051_v30 = vand.u32 2147483647, %v5256_v58 }
 0x48e   : > { %3994 = vtanh.f32 %v3087_v8  ;;  %v3120_v41 = vrot.slane %v3087_v8, 4  ;;  %v3097_v20 = vrot.slane %v3993_v24, 4  ;;  %v3116_v7 = vsel %vm1824_vm7, %v3110_v51, %v3104_v40  ;;  %vm5345_vm15 = vmor %vm3047_vm12, %vm3048_vm3 }
 0x48f   : > { %3131 = vst.msk [vmem:[%s5331_s28 + $0x10] sm:$0xff] %vm1842_vm10, %v3116_v7  ;;  %v3143_v55 = vmul.f32 %v5297_v2, %v3116_v7  ;;  %v3050_v18 = vsel %vm5345_vm15, %v5291_v22, %v3046_v57  ;;  %v3237_v15 = vadd.f32 %v3233_v1, %v5175_v34  ;;  %v3054_v63 = vor.u32 1.1754944e-38, %v3053_v39 }
 0x490   : > { %v3126_v43 = vsel %vm1824_vm7, %v5234_v6, %v3120_v41  ;;  %v3103_v53 = vmul.f32 %v3097_v20, %v3070_v42  ;;  %vm3052_vm0 = vcmp.eq.f32.partialorder %v3051_v30, 8.507059e+37  ;;  %v3227_v19 = vmul.f32 %v5169_v33, %v5238_v28 }
 0x491   : > { %3132 = vst [vmem:[%s5188_s26] sm:$0xff] %v3126_v43  ;;  %v3152_v17 = vadd.f32 %v3148_v49, %v3143_v55  ;;  %v3055_v59 = vsel %vm3052_vm0, %v3054_v63, %v3050_v18  ;;  %v3108_v61 = vrot.slane %v5289_v13, 4  ;;  %v3226_v29 = vmul.f32 %v5169_v33, %v5089_v11 }
 0x492   : > { %v3115_v6 = vsel %vm1824_vm7, %v3109_v31, %v3103_v53  ;;  %vm3247_vm10 = vcmask 551936   ;;  %v3236_v36 = vadd.f32 %v3233_v1, %v3227_v19 }
 0x493   : > { %3130 = vst [vmem:[%s5331_s28 + $0x8] sm:$0xff] %v3115_v6  ;;  %v3142_v0 = vmul.f32 %v5297_v2, %v3115_v6  ;;  %v3240_v50 = vadd.f32 %v3237_v15, %v3152_v17  ;;  %v3235_v47 = vadd.f32 %v3233_v1, %v3226_v29 }
 0x494   : > { %v3995_v58 = vpop.eup %3994 }
 0x495   : > { %v3096_v62 = vrot.slane %v3995_v58, 4  ;;  %v3151_v34 = vadd.f32 %v3148_v49, %v3142_v0  ;;  %v3243_v48 = vmax.f32 %v3240_v50, 0.0 }
 0x497   : > { %v3102_v32 = vmul.f32 %v3096_v62, %v3055_v59  ;;  %v3245_v3 = vpack.c.bf16 %v3243_v48, %v3243_v48  ;;  %v3239_v13 = vadd.f32 %v3236_v36, %v3151_v34 }
 0x499   : > { %v3114_v22 = vsel %vm1824_vm7, %v3108_v61, %v3102_v32  ;;  %3248 = vst.msk [vmem:[%s523_s23 + $0x8] sm:$0xf] %vm3247_vm10, %v3245_v3  ;;  %v3242_v33 = vmax.f32 %v3239_v13, 0.0 }
 0x49a   : > { %3129 = vst [vmem:[%s5331_s28] sm:$0xff] %v3114_v22  ;;  %v3141_v28 = vmul.f32 %v5297_v2, %v3114_v22 }
 0x49c   : > { %v3150_v44 = vadd.f32 %v3148_v49, %v3141_v28 }
 0x49e   : > { %v3238_v21 = vadd.f32 %v3235_v47, %v3150_v44 }
 0x4a0   : > { %v3241_v11 = vmax.f32 %v3238_v21, 0.0 }
 0x4a2   : > { %v3244_v5 = vpack.c.bf16 %v3242_v33, %v3241_v11 }
 0x4a4   : > { %3246 = vst [vmem:[%s523_s23] sm:$0xff] %v3244_v5 }
 0x4a5 PF: > { %s26_s18 = sadd.s32 1, %s4002_s18  }
 0x4a6   : > { %p23_p4 = scmp.ge.s32.totalorder %s26_s18, 4  }
 0x4a8   :  { %25 = sbr.rel (!%p23_p4) target bundleno = 1 (0x1), region = 158 }

</bundles_post_ra>
